<compile_context>
chip_gen: v6e
topology: v6e:2x2x1
jax: 0.10.0
libtpu: 0.0.40
codegen_flags: <defaults>
</compile_context>

<pallas_src>
import jax
import jax.numpy as jnp
from jax import lax
from jax.experimental import pallas as pl
from jax.experimental.pallas import tpu as pltpu

LANE = 128                    # TPU lane width: channel dims are padded to this
MM_DTYPE = jnp.bfloat16       # MXU operand dtype (f32 accumulation)


def _round_up(n, m):
    return ((n + m - 1) // m) * m


# ----------------------------------------------------------------------------
# Kernels
# ----------------------------------------------------------------------------
def _spade_kernel_a(xt_ref, w0_ref, b0_ref, ws_ref, sc0_ref, sh0_ref,
                    scs_ref, shs_ref, d0_ref, xs_ref, st_ref, h_ref, col_ref):
    # xt_ref : (TH+2, W+2, Cin_p) f32 haloed input tile
    # w0_ref : (9*Cin_p, Fh_p)    bf16 conv_0 weights (im2col layout)
    # ws_ref : (Cin_p, Fout_p)    bf16 1x1 shortcut weights
    # d0_ref : (TH*W, Fh_p)       f32 output (pre-bn_1 activations)
    # xs_ref : (TH*W, Fout_p)     f32 output (shortcut branch)
    # st_ref : (8, Fh_p)          f32 output (row0 = sum(d0), row1 = sum(d0^2))
    th = xt_ref.shape[0] - 2
    w = xt_ref.shape[1] - 2
    cin_p = xt_ref.shape[2]

    # bn_0 (folded scale/shift) + leaky_relu(0.2) over the haloed tile.  Halo
    # cells were pre-filled with -shift/scale so they become exactly 0 here.
    x = xt_ref[...]
    h = x * sc0_ref[...].reshape(1, 1, cin_p) + sh0_ref[...].reshape(1, 1, cin_p)
    h_ref[...] = jnp.where(h > 0.0, h, 0.2 * h)

    # im2col: build one (TH*W, 9*Cin_p) slab, then a single MXU matmul.
    for tap in range(9):
        dy, dx = tap // 3, tap % 3
        col_ref[:, tap * cin_p:(tap + 1) * cin_p] = (
            h_ref[dy:dy + th, dx:dx + w, :]
            .reshape(th * w, cin_p).astype(col_ref.dtype))
    d0 = jnp.dot(col_ref[...], w0_ref[...], preferred_element_type=jnp.float32)
    d0f = d0 + b0_ref[...]
    d0_ref[...] = d0f

    # Per-tile partial batch statistics of d0 (for bn_1), fused here so the
    # wrapper never re-reads the full d0 tensor just to compute mean/var.
    s1 = jnp.sum(d0f, axis=0, keepdims=True)                 # (1, Fh_p)
    s2 = jnp.sum(d0f * d0f, axis=0, keepdims=True)           # (1, Fh_p)
    st_ref[...] = jnp.concatenate(
        [s1, s2, jnp.zeros((6, s1.shape[1]), jnp.float32)], axis=0)

    # learned shortcut: 1x1 conv of bn_s(x) on the tile interior (no halo).
    xin = xt_ref[1:th + 1, 1:w + 1, :].reshape(th * w, cin_p)
    xs = xin * scs_ref[...] + shs_ref[...]
    xs_ref[...] = jnp.dot(xs.astype(ws_ref.dtype), ws_ref[...],
                          preferred_element_type=jnp.float32)


def _spade_kernel_b(d0t_ref, xs_ref, w1_ref, b1_ref, sc1_ref, sh1_ref,
                    out_ref, h_ref, col_ref):
    # d0t_ref: (TH+2, W+2, Fh_p) f32 haloed d0 tile
    # xs_ref : (TH*W, Fout_p)    f32 shortcut branch
    # out_ref: (TH*W, Fout_p)    f32 final output tile
    th = d0t_ref.shape[0] - 2
    w = d0t_ref.shape[1] - 2
    fh_p = d0t_ref.shape[2]

    d = d0t_ref[...]
    h = d * sc1_ref[...].reshape(1, 1, fh_p) + sh1_ref[...].reshape(1, 1, fh_p)
    h_ref[...] = jnp.where(h > 0.0, h, 0.2 * h)

    for tap in range(9):
        dy, dx = tap // 3, tap % 3
        col_ref[:, tap * fh_p:(tap + 1) * fh_p] = (
            h_ref[dy:dy + th, dx:dx + w, :]
            .reshape(th * w, fh_p).astype(col_ref.dtype))
    d1 = jnp.dot(col_ref[...], w1_ref[...], preferred_element_type=jnp.float32)

    # out = x_s + 1.0 * dx  (fused epilogue add, lane-dense store)
    out_ref[...] = xs_ref[...] + d1 + b1_ref[...]


# ----------------------------------------------------------------------------
# Wrapper-side helpers (layout plumbing + hoisted BN statistics)
# ----------------------------------------------------------------------------
def _fold_from_stats(mean, var, gamma, beta, c_pad, eps=1e-5):
    """Fold BatchNorm (mean, var, gamma, beta) into padded (scale, shift)."""
    scale = gamma * lax.rsqrt(var + eps)
    shift = beta - mean * scale
    c = scale.shape[0]
    if c_pad > c:                      # identity on padded channels (0 -> 0)
        scale = jnp.concatenate([scale, jnp.ones((c_pad - c,), scale.dtype)])
        shift = jnp.concatenate([shift, jnp.zeros((c_pad - c,), shift.dtype)])
    return scale.reshape(1, c_pad), shift.reshape(1, c_pad)


def _bn_fold(v_real, gamma, beta, c_pad, eps=1e-5):
    """Training-mode BatchNorm2d folded to per-channel (scale, shift), padded."""
    red = tuple(range(v_real.ndim - 1))
    mean = jnp.mean(v_real, axis=red)
    var = jnp.mean(jnp.square(v_real - mean), axis=red)
    return _fold_from_stats(mean, var, gamma, beta, c_pad, eps)


def _pad_channels(a, c_pad):
    c = a.shape[-1]
    if c_pad == c:
        return a
    return jnp.pad(a, [(0, 0)] * (a.ndim - 1) + [(0, c_pad - c)])


def _halo_tiles(a_nhwc, halo_fill, th):
    """(N,H,W,C) -> (N*T, th+2, W+2, C) overlapping row tiles.

    Border cells are filled with the per-channel value `halo_fill` (chosen so
    that the in-kernel affine + lrelu maps them to exactly zero).
    """
    n, h, w, c = a_nhwc.shape
    t = h // th
    full = jnp.broadcast_to(halo_fill.reshape(1, 1, 1, c), (n, h + 2, w + 2, c))
    full = lax.dynamic_update_slice(full, a_nhwc, (0, 1, 1, 0))
    tiles = jnp.stack(
        [lax.dynamic_slice_in_dim(full, i * th, th + 2, axis=1) for i in range(t)],
        axis=1)                                   # (N, T, th+2, W+2, C)
    return tiles.reshape(n * t, th + 2, w + 2, c)


def _prep_conv3x3(w_oihw, cin_p, cout_p):
    """OIHW (O,I,3,3) -> im2col weight (9*cin_p, cout_p) in MM_DTYPE."""
    w = jnp.transpose(w_oihw, (2, 3, 1, 0))       # (3,3,I,O)
    kh, kw, i, o = w.shape
    w = jnp.pad(w, ((0, 0), (0, 0), (0, cin_p - i), (0, cout_p - o)))
    return w.reshape(kh * kw * cin_p, cout_p).astype(MM_DTYPE)


def _halo_fill(scale, shift):
    return (-shift / jnp.where(scale != 0, scale, 1.0)).reshape(-1)


# ----------------------------------------------------------------------------
# Forward pass
# ----------------------------------------------------------------------------
def spade_resnet_block(x_nchw, params, *, tile_h=8):
    n, cin, h, w = x_nchw.shape
    w0 = params['w0_oihw']
    w1 = params['w1_oihw']
    fh = w0.shape[0]
    fout = w1.shape[0]

    cin_p = _round_up(cin, LANE)
    fh_p = _round_up(fh, LANE)
    fout_p = _round_up(fout, LANE)

    th = tile_h if (h % tile_h == 0) else h
    t = h // th
    nt = n * t

    x = jnp.transpose(x_nchw, (0, 2, 3, 1))              # NHWC, real channels

    # ---- hoisted batch-norm statistics (bn_0 / bn_s over x) ----
    sc0, sh0 = _bn_fold(x, params['g0'], params['be0'], cin_p)
    learned = (cin != fout)
    if learned:
        scs, shs = _bn_fold(x, params['gs'], params['bes'], cin_p)
        ws = jnp.transpose(params['ws_oihw'][:, :, 0, 0], (1, 0))   # (fin,fout)
    else:
        # Pass-through shortcut (stride==1): identity norm + identity 1x1 conv.
        scs = jnp.ones((1, cin_p), jnp.float32)
        shs = jnp.zeros((1, cin_p), jnp.float32)
        ws = jnp.eye(cin, dtype=jnp.float32)

    wsk = jnp.pad(ws, ((0, cin_p - ws.shape[0]),
                       (0, fout_p - ws.shape[1]))).astype(MM_DTYPE)
    w0k = _prep_conv3x3(w0, cin_p, fh_p)
    w1k = _prep_conv3x3(w1, fh_p, fout_p)
    b0k = jnp.pad(params['b0'], (0, fh_p - fh)).reshape(1, fh_p)
    b1k = jnp.pad(params['b1'], (0, fout_p - fout)).reshape(1, fout_p)

    x_tiles = _halo_tiles(_pad_channels(x, cin_p), _halo_fill(sc0, sh0), th)

    cparams = pltpu.CompilerParams(
        dimension_semantics=("parallel",),           # megacore-shardable
        vmem_limit_bytes=32 * 1024 * 1024)

    full2d = lambda r, c: pl.BlockSpec((r, c), lambda i: (0, 0))
    tile_in = pl.BlockSpec((None, th + 2, w + 2, cin_p), lambda i: (i, 0, 0, 0))

    cost_a = pl.CostEstimate(
        flops=2 * nt * th * w * (9 * cin_p * fh_p + cin_p * fout_p),
        transcendentals=0,
        bytes_accessed=int(4 * (x_tiles.size
                                + nt * th * w * (fh_p + fout_p)
                                + nt * 8 * fh_p)
                           + 2 * (w0k.size + wsk.size)))

    d0_t, xs_t, st_t = pl.pallas_call(
        _spade_kernel_a,
        grid=(nt,),
        in_specs=[
            tile_in,
            full2d(9 * cin_p, fh_p),      # w0
            full2d(1, fh_p),              # b0
            full2d(cin_p, fout_p),        # ws
            full2d(1, cin_p),             # scale_0
            full2d(1, cin_p),             # shift_0
            full2d(1, cin_p),             # scale_s
            full2d(1, cin_p),             # shift_s
        ],
        out_specs=(
            pl.BlockSpec((None, th * w, fh_p), lambda i: (i, 0, 0)),
            pl.BlockSpec((None, th * w, fout_p), lambda i: (i, 0, 0)),
            pl.BlockSpec((None, 8, fh_p), lambda i: (i, 0, 0)),
        ),
        out_shape=(
            jax.ShapeDtypeStruct((nt, th * w, fh_p), jnp.float32),
            jax.ShapeDtypeStruct((nt, th * w, fout_p), jnp.float32),
            jax.ShapeDtypeStruct((nt, 8, fh_p), jnp.float32),
        ),
        scratch_shapes=[
            pltpu.VMEM((th + 2, w + 2, cin_p), jnp.float32),   # activated tile
            pltpu.VMEM((th * w, 9 * cin_p), MM_DTYPE),         # im2col slab
        ],
        compiler_params=cparams,
        cost_estimate=cost_a,
    )(x_tiles, w0k, b0k, wsk, sc0, sh0, scs, shs)

    # ---- bn_1 statistics: tiny reduction over the per-tile partial sums
    # (d0 itself is not re-read from HBM for the statistics pass) ----
    d0_full = d0_t.reshape(n, h, w, fh_p)
    cnt = jnp.float32(n * h * w)
    ssum = jnp.sum(st_t, axis=0)                      # (8, fh_p)
    mean1 = ssum[0, :fh] / cnt
    var1 = jnp.maximum(ssum[1, :fh] / cnt - mean1 * mean1, 0.0)
    sc1, sh1 = _fold_from_stats(mean1, var1, params['g1'], params['be1'], fh_p)
    d0_tiles = _halo_tiles(d0_full, _halo_fill(sc1, sh1), th)

    cost_b = pl.CostEstimate(
        flops=2 * nt * th * w * 9 * fh_p * fout_p,
        transcendentals=0,
        bytes_accessed=int(4 * (d0_tiles.size + 2 * nt * th * w * fout_p)
                           + 2 * w1k.size))

    out_t = pl.pallas_call(
        _spade_kernel_b,
        grid=(nt,),
        in_specs=[
            pl.BlockSpec((None, th + 2, w + 2, fh_p), lambda i: (i, 0, 0, 0)),
            pl.BlockSpec((None, th * w, fout_p), lambda i: (i, 0, 0)),
            full2d(9 * fh_p, fout_p),     # w1
            full2d(1, fout_p),            # b1
            full2d(1, fh_p),              # scale_1
            full2d(1, fh_p),              # shift_1
        ],
        out_specs=pl.BlockSpec((None, th * w, fout_p), lambda i: (i, 0, 0)),
        out_shape=jax.ShapeDtypeStruct((nt, th * w, fout_p), jnp.float32),
        scratch_shapes=[
            pltpu.VMEM((th + 2, w + 2, fh_p), jnp.float32),
            pltpu.VMEM((th * w, 9 * fh_p), MM_DTYPE),
        ],
        compiler_params=cparams,
        cost_estimate=cost_b,
    )(d0_tiles, xs_t, w1k, b1k, sc1, sh1)

    out = out_t.reshape(n, h, w, fout_p)[..., :fout]
    return jnp.transpose(out, (0, 3, 1, 2))
    # TODO(synk): BatchNorm2d running-stats buffer updates (training-time side
    # effect) are not materialized; the normalization itself matches training mode.


# ----------------------------------------------------------------------------
# Parameter init (module-form) + pure-JAX reference
# ----------------------------------------------------------------------------
def spectral_normalize(w_oihw, key, n_power_iterations=1, eps=1e-12):
    # torch.nn.utils.spectral_norm semantics: divide by the top singular value of
    # the weight reshaped to (out_channels, -1), estimated by power iteration.
    wm = w_oihw.reshape(w_oihw.shape[0], -1)
    u = jax.random.normal(key, (wm.shape[0],), dtype=jnp.float32)
    u = u / (jnp.linalg.norm(u) + eps)
    v = None
    for _ in range(n_power_iterations):
        v = wm.T @ u
        v = v / (jnp.linalg.norm(v) + eps)
        u = wm @ v
        u = u / (jnp.linalg.norm(u) + eps)
    sigma = u @ (wm @ v)
    return w_oihw / sigma


def init_params(key, fin, fout):
    fh = min(fin, fout)
    ks = jax.random.split(key, 12)
    w0 = 0.1 * jax.random.normal(ks[0], (fh, fin, 3, 3), jnp.float32)    # conv_0 OIHW
    b0 = 0.1 * jax.random.normal(ks[1], (fh,), jnp.float32)
    w1 = 0.1 * jax.random.normal(ks[2], (fout, fh, 3, 3), jnp.float32)   # conv_1 OIHW
    b1 = 0.1 * jax.random.normal(ks[3], (fout,), jnp.float32)
    ws = 0.1 * jax.random.normal(ks[4], (fout, fin, 1, 1), jnp.float32)  # conv_s (no bias)

    w0 = spectral_normalize(w0, ks[5])
    w1 = spectral_normalize(w1, ks[6])
    ws = spectral_normalize(ws, ks[7])

    g0 = 1.0 + 0.1 * jax.random.normal(ks[8], (fin,), jnp.float32)
    be0 = 0.1 * jax.random.normal(ks[9], (fin,), jnp.float32)
    g1 = 1.0 + 0.1 * jax.random.normal(ks[10], (fh,), jnp.float32)
    be1 = 0.1 * jax.random.normal(ks[11], (fh,), jnp.float32)
    gs = jnp.ones((fin,), jnp.float32)
    bes = jnp.zeros((fin,), jnp.float32)
    return dict(w0_oihw=w0, b0=b0, w1_oihw=w1, b1=b1, ws_oihw=ws,
                g0=g0, be0=be0, g1=g1, be1=be1, gs=gs, bes=bes)


def reference_forward(x, p):
    # pure-JAX NCHW reference mirroring the PyTorch forward (training-mode BN)
    def bn(v, g, b):
        mean = jnp.mean(v, axis=(0, 2, 3), keepdims=True)
        var = jnp.mean((v - mean) ** 2, axis=(0, 2, 3), keepdims=True)
        return ((v - mean) / jnp.sqrt(var + 1e-5)
                * g.reshape(1, -1, 1, 1) + b.reshape(1, -1, 1, 1))

    def lrelu(v):
        return jnp.where(v > 0, v, 0.2 * v)

    def conv(v, w, b, pad):
        out = lax.conv_general_dilated(v, w, (1, 1), [(pad, pad), (pad, pad)],
                                       dimension_numbers=('NCHW', 'OIHW', 'NCHW'))
        if b is not None:
            out = out + b.reshape(1, -1, 1, 1)
        return out

    fin, fout = x.shape[1], p['w1_oihw'].shape[0]
    if fin != fout:
        x_s = conv(bn(x, p['gs'], p['bes']), p['ws_oihw'], None, 0)
    else:
        x_s = x
    d = conv(lrelu(bn(x, p['g0'], p['be0'])), p['w0_oihw'], p['b0'], 1)
    d = conv(lrelu(bn(d, p['g1'], p['be1'])), p['w1_oihw'], p['b1'], 1)
    return x_s + 1.0 * d


if __name__ == "__main__":
    key = jax.random.PRNGKey(0)
    kx, kp = jax.random.split(key)
    N, FIN, FOUT, H, W = 2, 4, 8, 16, 16
    x = jax.random.normal(kx, (N, FIN, H, W), jnp.float32)   # NCHW, like PyTorch
    params = init_params(kp, FIN, FOUT)

    fwd = jax.jit(spade_resnet_block)
    out = jax.block_until_ready(fwd(x, params))
    assert out.shape == (N, FOUT, H, W), out.shape

    ref = reference_forward(x, params)
    max_err = float(jnp.max(jnp.abs(out - ref)))
    mean_err = float(jnp.mean(jnp.abs(out - ref)))
    # bf16 MXU operands with f32 accumulation -> small rounding vs f32 reference
    assert max_err < 5e-2 and mean_err < 1e-2, (max_err, mean_err)
    print("KERNEL_OK")
</pallas_src>

<mosaic_0001>
module attributes {stable_mosaic.version = 11 : i64} {
  func.func @_spade_kernel_a(%arg0: i32, %arg1: memref<1x10x18x128xf32, #tpu.memory_space<vmem>>, %arg2: memref<1152x128xbf16, #tpu.memory_space<vmem>>, %arg3: memref<1x128xf32, #tpu.memory_space<vmem>>, %arg4: memref<128x128xbf16, #tpu.memory_space<vmem>>, %arg5: memref<1x128xf32, #tpu.memory_space<vmem>>, %arg6: memref<1x128xf32, #tpu.memory_space<vmem>>, %arg7: memref<1x128xf32, #tpu.memory_space<vmem>>, %arg8: memref<1x128xf32, #tpu.memory_space<vmem>>, %arg9: memref<1x128x128xf32, #tpu.memory_space<vmem>>, %arg10: memref<1x128x128xf32, #tpu.memory_space<vmem>>, %arg11: memref<1x8x128xf32, #tpu.memory_space<vmem>>, %arg12: memref<10x18x128xf32, #tpu.memory_space<vmem>>, %arg13: memref<128x1152xbf16, #tpu.memory_space<vmem>>) attributes {dimension_semantics = [#tpu.dimension_semantics<parallel>], iteration_bounds = array<i64: 4>, scalar_prefetch = 0 : i64, scratch_operands = 2 : i64, tpu.core_type = #tpu.core_type<tc>, window_params = [{transform_indices = @transform_0, window_bounds = array<i64: 1, 10, 18, 128>}, {pipeline_mode = #tpu.pipeline_mode<synchronous>, transform_indices = @transform_1, window_bounds = array<i64: 1152, 128>}, {pipeline_mode = #tpu.pipeline_mode<synchronous>, transform_indices = @transform_2, window_bounds = array<i64: 1, 128>}, {pipeline_mode = #tpu.pipeline_mode<synchronous>, transform_indices = @transform_3, window_bounds = array<i64: 128, 128>}, {pipeline_mode = #tpu.pipeline_mode<synchronous>, transform_indices = @transform_4, window_bounds = array<i64: 1, 128>}, {pipeline_mode = #tpu.pipeline_mode<synchronous>, transform_indices = @transform_5, window_bounds = array<i64: 1, 128>}, {pipeline_mode = #tpu.pipeline_mode<synchronous>, transform_indices = @transform_6, window_bounds = array<i64: 1, 128>}, {pipeline_mode = #tpu.pipeline_mode<synchronous>, transform_indices = @transform_7, window_bounds = array<i64: 1, 128>}, {transform_indices = @transform_8, window_bounds = array<i64: 1, 128, 128>}, {transform_indices = @transform_9, window_bounds = array<i64: 1, 128, 128>}, {transform_indices = @transform_10, window_bounds = array<i64: 1, 8, 128>}]} {
    %c0 = arith.constant 0 : index
    %c0_0 = arith.constant 0 : index
    %c0_1 = arith.constant 0 : index
    %c0_2 = arith.constant 0 : index
    %0 = vector.load %arg1[%c0, %c0_0, %c0_1, %c0_2] : memref<1x10x18x128xf32, #tpu.memory_space<vmem>>, vector<1x10x18x128xf32>
    %1 = vector.shape_cast %0 : vector<1x10x18x128xf32> to vector<10x18x128xf32>
    %c0_3 = arith.constant 0 : index
    %c0_4 = arith.constant 0 : index
    %2 = vector.load %arg5[%c0_3, %c0_4] : memref<1x128xf32, #tpu.memory_space<vmem>>, vector<1x128xf32>
    %3 = vector.shape_cast %2 : vector<1x128xf32> to vector<1x1x128xf32>
    %4 = vector.broadcast %3 : vector<1x1x128xf32> to vector<10x18x128xf32>
    %5 = arith.mulf %1, %4 : vector<10x18x128xf32>
    %c0_5 = arith.constant 0 : index
    %c0_6 = arith.constant 0 : index
    %6 = vector.load %arg6[%c0_5, %c0_6] : memref<1x128xf32, #tpu.memory_space<vmem>>, vector<1x128xf32>
    %7 = vector.shape_cast %6 : vector<1x128xf32> to vector<1x1x128xf32>
    %8 = vector.broadcast %7 : vector<1x1x128xf32> to vector<10x18x128xf32>
    %9 = arith.addf %5, %8 : vector<10x18x128xf32>
    %cst = arith.constant 0.000000e+00 : f32
    %10 = vector.broadcast %cst : f32 to vector<10x18x128xf32>
    %11 = arith.cmpf ogt, %9, %10 : vector<10x18x128xf32>
    %cst_7 = arith.constant 2.000000e-01 : f32
    %12 = vector.broadcast %cst_7 : f32 to vector<10x18x128xf32>
    %13 = arith.mulf %12, %9 : vector<10x18x128xf32>
    %14 = arith.select %11, %9, %13 : vector<10x18x128xi1>, vector<10x18x128xf32>
    %c0_8 = arith.constant 0 : index
    %c0_9 = arith.constant 0 : index
    %c0_10 = arith.constant 0 : index
    %15 = vector.load %arg12[%c0_8, %c0_9, %c0_10] : memref<10x18x128xf32, #tpu.memory_space<vmem>>, vector<10x18x128xf32>
    tpu.vector_store %arg12[%c0_8, %c0_9, %c0_10], %14 {strides = array<i32>} : memref<10x18x128xf32, #tpu.memory_space<vmem>>, vector<10x18x128xf32>,
    %c0_11 = arith.constant 0 : index
    %c0_12 = arith.constant 0 : index
    %c0_13 = arith.constant 0 : index
    %16 = vector.load %arg12[%c0_11, %c0_12, %c0_13] : memref<10x18x128xf32, #tpu.memory_space<vmem>>, vector<8x16x128xf32>
    %17 = vector.shape_cast %16 : vector<8x16x128xf32> to vector<128x128xf32>
    %18 = arith.truncf %17 : vector<128x128xf32> to vector<128x128xbf16>
    %c0_14 = arith.constant 0 : index
    %c0_15 = arith.constant 0 : index
    %19 = vector.load %arg13[%c0_14, %c0_15] : memref<128x1152xbf16, #tpu.memory_space<vmem>>, vector<128x128xbf16>
    tpu.vector_store %arg13[%c0_14, %c0_15], %18 {strides = array<i32>} : memref<128x1152xbf16, #tpu.memory_space<vmem>>, vector<128x128xbf16>,
    %c0_16 = arith.constant 0 : index
    %c1 = arith.constant 1 : index
    %c0_17 = arith.constant 0 : index
    %20 = vector.load %arg12[%c0_16, %c1, %c0_17] : memref<10x18x128xf32, #tpu.memory_space<vmem>>, vector<8x16x128xf32>
    %21 = vector.shape_cast %20 : vector<8x16x128xf32> to vector<128x128xf32>
    %22 = arith.truncf %21 : vector<128x128xf32> to vector<128x128xbf16>
    %c0_18 = arith.constant 0 : index
    %c128 = arith.constant 128 : index
    %23 = vector.load %arg13[%c0_18, %c128] : memref<128x1152xbf16, #tpu.memory_space<vmem>>, vector<128x128xbf16>
    tpu.vector_store %arg13[%c0_18, %c128], %22 {strides = array<i32>} : memref<128x1152xbf16, #tpu.memory_space<vmem>>, vector<128x128xbf16>,
    %c0_19 = arith.constant 0 : index
    %c2 = arith.constant 2 : index
    %c0_20 = arith.constant 0 : index
    %24 = vector.load %arg12[%c0_19, %c2, %c0_20] : memref<10x18x128xf32, #tpu.memory_space<vmem>>, vector<8x16x128xf32>
    %25 = vector.shape_cast %24 : vector<8x16x128xf32> to vector<128x128xf32>
    %26 = arith.truncf %25 : vector<128x128xf32> to vector<128x128xbf16>
    %c0_21 = arith.constant 0 : index
    %c256 = arith.constant 256 : index
    %27 = vector.load %arg13[%c0_21, %c256] : memref<128x1152xbf16, #tpu.memory_space<vmem>>, vector<128x128xbf16>
    tpu.vector_store %arg13[%c0_21, %c256], %26 {strides = array<i32>} : memref<128x1152xbf16, #tpu.memory_space<vmem>>, vector<128x128xbf16>,
    %c1_22 = arith.constant 1 : index
    %c0_23 = arith.constant 0 : index
    %c0_24 = arith.constant 0 : index
    %28 = vector.load %arg12[%c1_22, %c0_23, %c0_24] : memref<10x18x128xf32, #tpu.memory_space<vmem>>, vector<8x16x128xf32>
    %29 = vector.shape_cast %28 : vector<8x16x128xf32> to vector<128x128xf32>
    %30 = arith.truncf %29 : vector<128x128xf32> to vector<128x128xbf16>
    %c0_25 = arith.constant 0 : index
    %c384 = arith.constant 384 : index
    %31 = vector.load %arg13[%c0_25, %c384] : memref<128x1152xbf16, #tpu.memory_space<vmem>>, vector<128x128xbf16>
    tpu.vector_store %arg13[%c0_25, %c384], %30 {strides = array<i32>} : memref<128x1152xbf16, #tpu.memory_space<vmem>>, vector<128x128xbf16>,
    %c1_26 = arith.constant 1 : index
    %c1_27 = arith.constant 1 : index
    %c0_28 = arith.constant 0 : index
    %32 = vector.load %arg12[%c1_26, %c1_27, %c0_28] : memref<10x18x128xf32, #tpu.memory_space<vmem>>, vector<8x16x128xf32>
    %33 = vector.shape_cast %32 : vector<8x16x128xf32> to vector<128x128xf32>
    %34 = arith.truncf %33 : vector<128x128xf32> to vector<128x128xbf16>
    %c0_29 = arith.constant 0 : index
    %c512 = arith.constant 512 : index
    %35 = vector.load %arg13[%c0_29, %c512] : memref<128x1152xbf16, #tpu.memory_space<vmem>>, vector<128x128xbf16>
    tpu.vector_store %arg13[%c0_29, %c512], %34 {strides = array<i32>} : memref<128x1152xbf16, #tpu.memory_space<vmem>>, vector<128x128xbf16>,
    %c1_30 = arith.constant 1 : index
    %c2_31 = arith.constant 2 : index
    %c0_32 = arith.constant 0 : index
    %36 = vector.load %arg12[%c1_30, %c2_31, %c0_32] : memref<10x18x128xf32, #tpu.memory_space<vmem>>, vector<8x16x128xf32>
    %37 = vector.shape_cast %36 : vector<8x16x128xf32> to vector<128x128xf32>
    %38 = arith.truncf %37 : vector<128x128xf32> to vector<128x128xbf16>
    %c0_33 = arith.constant 0 : index
    %c640 = arith.constant 640 : index
    %39 = vector.load %arg13[%c0_33, %c640] : memref<128x1152xbf16, #tpu.memory_space<vmem>>, vector<128x128xbf16>
    tpu.vector_store %arg13[%c0_33, %c640], %38 {strides = array<i32>} : memref<128x1152xbf16, #tpu.memory_space<vmem>>, vector<128x128xbf16>,
    %c2_34 = arith.constant 2 : index
    %c0_35 = arith.constant 0 : index
    %c0_36 = arith.constant 0 : index
    %40 = vector.load %arg12[%c2_34, %c0_35, %c0_36] : memref<10x18x128xf32, #tpu.memory_space<vmem>>, vector<8x16x128xf32>
    %41 = vector.shape_cast %40 : vector<8x16x128xf32> to vector<128x128xf32>
    %42 = arith.truncf %41 : vector<128x128xf32> to vector<128x128xbf16>
    %c0_37 = arith.constant 0 : index
    %c768 = arith.constant 768 : index
    %43 = vector.load %arg13[%c0_37, %c768] : memref<128x1152xbf16, #tpu.memory_space<vmem>>, vector<128x128xbf16>
    tpu.vector_store %arg13[%c0_37, %c768], %42 {strides = array<i32>} : memref<128x1152xbf16, #tpu.memory_space<vmem>>, vector<128x128xbf16>,
    %c2_38 = arith.constant 2 : index
    %c1_39 = arith.constant 1 : index
    %c0_40 = arith.constant 0 : index
    %44 = vector.load %arg12[%c2_38, %c1_39, %c0_40] : memref<10x18x128xf32, #tpu.memory_space<vmem>>, vector<8x16x128xf32>
    %45 = vector.shape_cast %44 : vector<8x16x128xf32> to vector<128x128xf32>
    %46 = arith.truncf %45 : vector<128x128xf32> to vector<128x128xbf16>
    %c0_41 = arith.constant 0 : index
    %c896 = arith.constant 896 : index
    %47 = vector.load %arg13[%c0_41, %c896] : memref<128x1152xbf16, #tpu.memory_space<vmem>>, vector<128x128xbf16>
    tpu.vector_store %arg13[%c0_41, %c896], %46 {strides = array<i32>} : memref<128x1152xbf16, #tpu.memory_space<vmem>>, vector<128x128xbf16>,
    %c2_42 = arith.constant 2 : index
    %c2_43 = arith.constant 2 : index
    %c0_44 = arith.constant 0 : index
    %48 = vector.load %arg12[%c2_42, %c2_43, %c0_44] : memref<10x18x128xf32, #tpu.memory_space<vmem>>, vector<8x16x128xf32>
    %49 = vector.shape_cast %48 : vector<8x16x128xf32> to vector<128x128xf32>
    %50 = arith.truncf %49 : vector<128x128xf32> to vector<128x128xbf16>
    %c0_45 = arith.constant 0 : index
    %c1024 = arith.constant 1024 : index
    %51 = vector.load %arg13[%c0_45, %c1024] : memref<128x1152xbf16, #tpu.memory_space<vmem>>, vector<128x128xbf16>
    tpu.vector_store %arg13[%c0_45, %c1024], %50 {strides = array<i32>} : memref<128x1152xbf16, #tpu.memory_space<vmem>>, vector<128x128xbf16>,
    %c0_46 = arith.constant 0 : index
    %c0_47 = arith.constant 0 : index
    %52 = vector.load %arg13[%c0_46, %c0_47] : memref<128x1152xbf16, #tpu.memory_space<vmem>>, vector<128x1152xbf16>
    %c0_48 = arith.constant 0 : index
    %c0_49 = arith.constant 0 : index
    %53 = vector.load %arg2[%c0_48, %c0_49] : memref<1152x128xbf16, #tpu.memory_space<vmem>>, vector<1152x128xbf16>
    %cst_50 = arith.constant dense<0.000000e+00> : vector<128x128xf32>
    %54 = tpu.matmul %52, %53, %cst_50 {dimension_numbers = #tpu.dot_dimension_numbers<[1], [0], [0], [1], [0, 0, 1, 1], [], []>} : vector<128x1152xbf16>, vector<1152x128xbf16>, vector<128x128xf32> -> vector<128x128xf32>
    %c0_51 = arith.constant 0 : index
    %c0_52 = arith.constant 0 : index
    %55 = vector.load %arg3[%c0_51, %c0_52] : memref<1x128xf32, #tpu.memory_space<vmem>>, vector<1x128xf32>
    %56 = vector.broadcast %55 : vector<1x128xf32> to vector<128x128xf32>
    %57 = arith.addf %54, %56 : vector<128x128xf32>
    %c0_53 = arith.constant 0 : index
    %c0_54 = arith.constant 0 : index
    %c0_55 = arith.constant 0 : index
    %58 = vector.load %arg9[%c0_53, %c0_54, %c0_55] : memref<1x128x128xf32, #tpu.memory_space<vmem>>, vector<1x128x128xf32>
    %59 = vector.shape_cast %58 : vector<1x128x128xf32> to vector<128x128xf32>
    %60 = vector.shape_cast %57 : vector<128x128xf32> to vector<1x128x128xf32>
    tpu.vector_store %arg9[%c0_53, %c0_54, %c0_55], %60 {strides = array<i32>} : memref<1x128x128xf32, #tpu.memory_space<vmem>>, vector<1x128x128xf32>,
    %cst_56 = arith.constant dense<0.000000e+00> : vector<128xf32>
    %61 = vector.multi_reduction <add>, %57, %cst_56 [0] : vector<128x128xf32> to vector<128xf32>
    %62 = vector.shape_cast %61 : vector<128xf32> to vector<1x128xf32>
    %63 = arith.mulf %57, %57 : vector<128x128xf32>
    %cst_57 = arith.constant dense<0.000000e+00> : vector<128xf32>
    %64 = vector.multi_reduction <add>, %63, %cst_57 [0] : vector<128x128xf32> to vector<128xf32>
    %65 = vector.shape_cast %64 : vector<128xf32> to vector<1x128xf32>
    %cst_58 = arith.constant 0.000000e+00 : f32
    %66 = vector.broadcast %cst_58 : f32 to vector<6x128xf32>
    %67 = tpu.concatenate %62, %65, %66 in 0 : vector<1x128xf32>, vector<1x128xf32>, vector<6x128xf32> -> vector<8x128xf32>
    %c0_59 = arith.constant 0 : index
    %c0_60 = arith.constant 0 : index
    %c0_61 = arith.constant 0 : index
    %68 = vector.load %arg11[%c0_59, %c0_60, %c0_61] : memref<1x8x128xf32, #tpu.memory_space<vmem>>, vector<1x8x128xf32>
    %69 = vector.shape_cast %68 : vector<1x8x128xf32> to vector<8x128xf32>
    %70 = vector.shape_cast %67 : vector<8x128xf32> to vector<1x8x128xf32>
    tpu.vector_store %arg11[%c0_59, %c0_60, %c0_61], %70 {strides = array<i32>} : memref<1x8x128xf32, #tpu.memory_space<vmem>>, vector<1x8x128xf32>,
    %c0_62 = arith.constant 0 : index
    %c1_63 = arith.constant 1 : index
    %c1_64 = arith.constant 1 : index
    %c0_65 = arith.constant 0 : index
    %71 = vector.load %arg1[%c0_62, %c1_63, %c1_64, %c0_65] : memref<1x10x18x128xf32, #tpu.memory_space<vmem>>, vector<1x8x16x128xf32>
    %72 = vector.shape_cast %71 : vector<1x8x16x128xf32> to vector<8x16x128xf32>
    %73 = vector.shape_cast %72 : vector<8x16x128xf32> to vector<128x128xf32>
    %c0_66 = arith.constant 0 : index
    %c0_67 = arith.constant 0 : index
    %74 = vector.load %arg7[%c0_66, %c0_67] : memref<1x128xf32, #tpu.memory_space<vmem>>, vector<1x128xf32>
    %75 = vector.broadcast %74 : vector<1x128xf32> to vector<128x128xf32>
    %76 = arith.mulf %73, %75 : vector<128x128xf32>
    %c0_68 = arith.constant 0 : index
    %c0_69 = arith.constant 0 : index
    %77 = vector.load %arg8[%c0_68, %c0_69] : memref<1x128xf32, #tpu.memory_space<vmem>>, vector<1x128xf32>
    %78 = vector.broadcast %77 : vector<1x128xf32> to vector<128x128xf32>
    %79 = arith.addf %76, %78 : vector<128x128xf32>
    %80 = arith.truncf %79 : vector<128x128xf32> to vector<128x128xbf16>
    %c0_70 = arith.constant 0 : index
    %c0_71 = arith.constant 0 : index
    %81 = vector.load %arg4[%c0_70, %c0_71] : memref<128x128xbf16, #tpu.memory_space<vmem>>, vector<128x128xbf16>
    %cst_72 = arith.constant dense<0.000000e+00> : vector<128x128xf32>
    %82 = tpu.matmul %80, %81, %cst_72 {dimension_numbers = #tpu.dot_dimension_numbers<[1], [0], [0], [1], [0, 0, 1, 1], [], []>} : vector<128x128xbf16>, vector<128x128xbf16>, vector<128x128xf32> -> vector<128x128xf32>
    %c0_73 = arith.constant 0 : index
    %c0_74 = arith.constant 0 : index
    %c0_75 = arith.constant 0 : index
    %83 = vector.load %arg10[%c0_73, %c0_74, %c0_75] : memref<1x128x128xf32, #tpu.memory_space<vmem>>, vector<1x128x128xf32>
    %84 = vector.shape_cast %83 : vector<1x128x128xf32> to vector<128x128xf32>
    %85 = vector.shape_cast %82 : vector<128x128xf32> to vector<1x128x128xf32>
    tpu.vector_store %arg10[%c0_73, %c0_74, %c0_75], %85 {strides = array<i32>} : memref<1x128x128xf32, #tpu.memory_space<vmem>>, vector<1x128x128xf32>,
    return
  }
  func.func @transform_0(%arg0: i32) -> (i32, i32, i32, i32) {
    %c0_i32 = arith.constant 0 : i32
    %c0_i32_0 = arith.constant 0 : i32
    %c0_i32_1 = arith.constant 0 : i32
    %c0_i32_2 = arith.constant 0 : i32
    return %arg0, %c0_i32, %c0_i32_0, %c0_i32_1 : i32, i32, i32, i32
  }
  func.func @transform_1(%arg0: i32) -> (i32, i32) {
    %c0_i32 = arith.constant 0 : i32
    %c0_i32_0 = arith.constant 0 : i32
    %c0_i32_1 = arith.constant 0 : i32
    return %c0_i32, %c0_i32_0 : i32, i32
  }
  func.func @transform_2(%arg0: i32) -> (i32, i32) {
    %c0_i32 = arith.constant 0 : i32
    %c0_i32_0 = arith.constant 0 : i32
    %c0_i32_1 = arith.constant 0 : i32
    return %c0_i32, %c0_i32_0 : i32, i32
  }
  func.func @transform_3(%arg0: i32) -> (i32, i32) {
    %c0_i32 = arith.constant 0 : i32
    %c0_i32_0 = arith.constant 0 : i32
    %c0_i32_1 = arith.constant 0 : i32
    return %c0_i32, %c0_i32_0 : i32, i32
  }
  func.func @transform_4(%arg0: i32) -> (i32, i32) {
    %c0_i32 = arith.constant 0 : i32
    %c0_i32_0 = arith.constant 0 : i32
    %c0_i32_1 = arith.constant 0 : i32
    return %c0_i32, %c0_i32_0 : i32, i32
  }
  func.func @transform_5(%arg0: i32) -> (i32, i32) {
    %c0_i32 = arith.constant 0 : i32
    %c0_i32_0 = arith.constant 0 : i32
    %c0_i32_1 = arith.constant 0 : i32
    return %c0_i32, %c0_i32_0 : i32, i32
  }
  func.func @transform_6(%arg0: i32) -> (i32, i32) {
    %c0_i32 = arith.constant 0 : i32
    %c0_i32_0 = arith.constant 0 : i32
    %c0_i32_1 = arith.constant 0 : i32
    return %c0_i32, %c0_i32_0 : i32, i32
  }
  func.func @transform_7(%arg0: i32) -> (i32, i32) {
    %c0_i32 = arith.constant 0 : i32
    %c0_i32_0 = arith.constant 0 : i32
    %c0_i32_1 = arith.constant 0 : i32
    return %c0_i32, %c0_i32_0 : i32, i32
  }
  func.func @transform_8(%arg0: i32) -> (i32, i32, i32) {
    %c0_i32 = arith.constant 0 : i32
    %c0_i32_0 = arith.constant 0 : i32
    %c0_i32_1 = arith.constant 0 : i32
    return %arg0, %c0_i32, %c0_i32_0 : i32, i32, i32
  }
  func.func @transform_9(%arg0: i32) -> (i32, i32, i32) {
    %c0_i32 = arith.constant 0 : i32
    %c0_i32_0 = arith.constant 0 : i32
    %c0_i32_1 = arith.constant 0 : i32
    return %arg0, %c0_i32, %c0_i32_0 : i32, i32, i32
  }
  func.func @transform_10(%arg0: i32) -> (i32, i32, i32) {
    %c0_i32 = arith.constant 0 : i32
    %c0_i32_0 = arith.constant 0 : i32
    %c0_i32_1 = arith.constant 0 : i32
    return %arg0, %c0_i32, %c0_i32_0 : i32, i32, i32
  }
}

module attributes {stable_mosaic.version = 11 : i64} {
  func.func @_spade_kernel_b(%arg0: i32, %arg1: memref<1x10x18x128xf32, #tpu.memory_space<vmem>>, %arg2: memref<1x128x128xf32, #tpu.memory_space<vmem>>, %arg3: memref<1152x128xbf16, #tpu.memory_space<vmem>>, %arg4: memref<1x128xf32, #tpu.memory_space<vmem>>, %arg5: memref<1x128xf32, #tpu.memory_space<vmem>>, %arg6: memref<1x128xf32, #tpu.memory_space<vmem>>, %arg7: memref<1x128x128xf32, #tpu.memory_space<vmem>>, %arg8: memref<10x18x128xf32, #tpu.memory_space<vmem>>, %arg9: memref<128x1152xbf16, #tpu.memory_space<vmem>>) attributes {dimension_semantics = [#tpu.dimension_semantics<parallel>], iteration_bounds = array<i64: 4>, scalar_prefetch = 0 : i64, scratch_operands = 2 : i64, tpu.core_type = #tpu.core_type<tc>, window_params = [{transform_indices = @transform_0, window_bounds = array<i64: 1, 10, 18, 128>}, {transform_indices = @transform_1, window_bounds = array<i64: 1, 128, 128>}, {pipeline_mode = #tpu.pipeline_mode<synchronous>, transform_indices = @transform_2, window_bounds = array<i64: 1152, 128>}, {pipeline_mode = #tpu.pipeline_mode<synchronous>, transform_indices = @transform_3, window_bounds = array<i64: 1, 128>}, {pipeline_mode = #tpu.pipeline_mode<synchronous>, transform_indices = @transform_4, window_bounds = array<i64: 1, 128>}, {pipeline_mode = #tpu.pipeline_mode<synchronous>, transform_indices = @transform_5, window_bounds = array<i64: 1, 128>}, {transform_indices = @transform_6, window_bounds = array<i64: 1, 128, 128>}]} {
    %c0 = arith.constant 0 : index
    %c0_0 = arith.constant 0 : index
    %c0_1 = arith.constant 0 : index
    %c0_2 = arith.constant 0 : index
    %0 = vector.load %arg1[%c0, %c0_0, %c0_1, %c0_2] : memref<1x10x18x128xf32, #tpu.memory_space<vmem>>, vector<1x10x18x128xf32>
    %1 = vector.shape_cast %0 : vector<1x10x18x128xf32> to vector<10x18x128xf32>
    %c0_3 = arith.constant 0 : index
    %c0_4 = arith.constant 0 : index
    %2 = vector.load %arg5[%c0_3, %c0_4] : memref<1x128xf32, #tpu.memory_space<vmem>>, vector<1x128xf32>
    %3 = vector.shape_cast %2 : vector<1x128xf32> to vector<1x1x128xf32>
    %4 = vector.broadcast %3 : vector<1x1x128xf32> to vector<10x18x128xf32>
    %5 = arith.mulf %1, %4 : vector<10x18x128xf32>
    %c0_5 = arith.constant 0 : index
    %c0_6 = arith.constant 0 : index
    %6 = vector.load %arg6[%c0_5, %c0_6] : memref<1x128xf32, #tpu.memory_space<vmem>>, vector<1x128xf32>
    %7 = vector.shape_cast %6 : vector<1x128xf32> to vector<1x1x128xf32>
    %8 = vector.broadcast %7 : vector<1x1x128xf32> to vector<10x18x128xf32>
    %9 = arith.addf %5, %8 : vector<10x18x128xf32>
    %cst = arith.constant 0.000000e+00 : f32
    %10 = vector.broadcast %cst : f32 to vector<10x18x128xf32>
    %11 = arith.cmpf ogt, %9, %10 : vector<10x18x128xf32>
    %cst_7 = arith.constant 2.000000e-01 : f32
    %12 = vector.broadcast %cst_7 : f32 to vector<10x18x128xf32>
    %13 = arith.mulf %12, %9 : vector<10x18x128xf32>
    %14 = arith.select %11, %9, %13 : vector<10x18x128xi1>, vector<10x18x128xf32>
    %c0_8 = arith.constant 0 : index
    %c0_9 = arith.constant 0 : index
    %c0_10 = arith.constant 0 : index
    %15 = vector.load %arg8[%c0_8, %c0_9, %c0_10] : memref<10x18x128xf32, #tpu.memory_space<vmem>>, vector<10x18x128xf32>
    tpu.vector_store %arg8[%c0_8, %c0_9, %c0_10], %14 {strides = array<i32>} : memref<10x18x128xf32, #tpu.memory_space<vmem>>, vector<10x18x128xf32>,
    %c0_11 = arith.constant 0 : index
    %c0_12 = arith.constant 0 : index
    %c0_13 = arith.constant 0 : index
    %16 = vector.load %arg8[%c0_11, %c0_12, %c0_13] : memref<10x18x128xf32, #tpu.memory_space<vmem>>, vector<8x16x128xf32>
    %17 = vector.shape_cast %16 : vector<8x16x128xf32> to vector<128x128xf32>
    %18 = arith.truncf %17 : vector<128x128xf32> to vector<128x128xbf16>
    %c0_14 = arith.constant 0 : index
    %c0_15 = arith.constant 0 : index
    %19 = vector.load %arg9[%c0_14, %c0_15] : memref<128x1152xbf16, #tpu.memory_space<vmem>>, vector<128x128xbf16>
    tpu.vector_store %arg9[%c0_14, %c0_15], %18 {strides = array<i32>} : memref<128x1152xbf16, #tpu.memory_space<vmem>>, vector<128x128xbf16>,
    %c0_16 = arith.constant 0 : index
    %c1 = arith.constant 1 : index
    %c0_17 = arith.constant 0 : index
    %20 = vector.load %arg8[%c0_16, %c1, %c0_17] : memref<10x18x128xf32, #tpu.memory_space<vmem>>, vector<8x16x128xf32>
    %21 = vector.shape_cast %20 : vector<8x16x128xf32> to vector<128x128xf32>
    %22 = arith.truncf %21 : vector<128x128xf32> to vector<128x128xbf16>
    %c0_18 = arith.constant 0 : index
    %c128 = arith.constant 128 : index
    %23 = vector.load %arg9[%c0_18, %c128] : memref<128x1152xbf16, #tpu.memory_space<vmem>>, vector<128x128xbf16>
    tpu.vector_store %arg9[%c0_18, %c128], %22 {strides = array<i32>} : memref<128x1152xbf16, #tpu.memory_space<vmem>>, vector<128x128xbf16>,
    %c0_19 = arith.constant 0 : index
    %c2 = arith.constant 2 : index
    %c0_20 = arith.constant 0 : index
    %24 = vector.load %arg8[%c0_19, %c2, %c0_20] : memref<10x18x128xf32, #tpu.memory_space<vmem>>, vector<8x16x128xf32>
    %25 = vector.shape_cast %24 : vector<8x16x128xf32> to vector<128x128xf32>
    %26 = arith.truncf %25 : vector<128x128xf32> to vector<128x128xbf16>
    %c0_21 = arith.constant 0 : index
    %c256 = arith.constant 256 : index
    %27 = vector.load %arg9[%c0_21, %c256] : memref<128x1152xbf16, #tpu.memory_space<vmem>>, vector<128x128xbf16>
    tpu.vector_store %arg9[%c0_21, %c256], %26 {strides = array<i32>} : memref<128x1152xbf16, #tpu.memory_space<vmem>>, vector<128x128xbf16>,
    %c1_22 = arith.constant 1 : index
    %c0_23 = arith.constant 0 : index
    %c0_24 = arith.constant 0 : index
    %28 = vector.load %arg8[%c1_22, %c0_23, %c0_24] : memref<10x18x128xf32, #tpu.memory_space<vmem>>, vector<8x16x128xf32>
    %29 = vector.shape_cast %28 : vector<8x16x128xf32> to vector<128x128xf32>
    %30 = arith.truncf %29 : vector<128x128xf32> to vector<128x128xbf16>
    %c0_25 = arith.constant 0 : index
    %c384 = arith.constant 384 : index
    %31 = vector.load %arg9[%c0_25, %c384] : memref<128x1152xbf16, #tpu.memory_space<vmem>>, vector<128x128xbf16>
    tpu.vector_store %arg9[%c0_25, %c384], %30 {strides = array<i32>} : memref<128x1152xbf16, #tpu.memory_space<vmem>>, vector<128x128xbf16>,
    %c1_26 = arith.constant 1 : index
    %c1_27 = arith.constant 1 : index
    %c0_28 = arith.constant 0 : index
    %32 = vector.load %arg8[%c1_26, %c1_27, %c0_28] : memref<10x18x128xf32, #tpu.memory_space<vmem>>, vector<8x16x128xf32>
    %33 = vector.shape_cast %32 : vector<8x16x128xf32> to vector<128x128xf32>
    %34 = arith.truncf %33 : vector<128x128xf32> to vector<128x128xbf16>
    %c0_29 = arith.constant 0 : index
    %c512 = arith.constant 512 : index
    %35 = vector.load %arg9[%c0_29, %c512] : memref<128x1152xbf16, #tpu.memory_space<vmem>>, vector<128x128xbf16>
    tpu.vector_store %arg9[%c0_29, %c512], %34 {strides = array<i32>} : memref<128x1152xbf16, #tpu.memory_space<vmem>>, vector<128x128xbf16>,
    %c1_30 = arith.constant 1 : index
    %c2_31 = arith.constant 2 : index
    %c0_32 = arith.constant 0 : index
    %36 = vector.load %arg8[%c1_30, %c2_31, %c0_32] : memref<10x18x128xf32, #tpu.memory_space<vmem>>, vector<8x16x128xf32>
    %37 = vector.shape_cast %36 : vector<8x16x128xf32> to vector<128x128xf32>
    %38 = arith.truncf %37 : vector<128x128xf32> to vector<128x128xbf16>
    %c0_33 = arith.constant 0 : index
    %c640 = arith.constant 640 : index
    %39 = vector.load %arg9[%c0_33, %c640] : memref<128x1152xbf16, #tpu.memory_space<vmem>>, vector<128x128xbf16>
    tpu.vector_store %arg9[%c0_33, %c640], %38 {strides = array<i32>} : memref<128x1152xbf16, #tpu.memory_space<vmem>>, vector<128x128xbf16>,
    %c2_34 = arith.constant 2 : index
    %c0_35 = arith.constant 0 : index
    %c0_36 = arith.constant 0 : index
    %40 = vector.load %arg8[%c2_34, %c0_35, %c0_36] : memref<10x18x128xf32, #tpu.memory_space<vmem>>, vector<8x16x128xf32>
    %41 = vector.shape_cast %40 : vector<8x16x128xf32> to vector<128x128xf32>
    %42 = arith.truncf %41 : vector<128x128xf32> to vector<128x128xbf16>
    %c0_37 = arith.constant 0 : index
    %c768 = arith.constant 768 : index
    %43 = vector.load %arg9[%c0_37, %c768] : memref<128x1152xbf16, #tpu.memory_space<vmem>>, vector<128x128xbf16>
    tpu.vector_store %arg9[%c0_37, %c768], %42 {strides = array<i32>} : memref<128x1152xbf16, #tpu.memory_space<vmem>>, vector<128x128xbf16>,
    %c2_38 = arith.constant 2 : index
    %c1_39 = arith.constant 1 : index
    %c0_40 = arith.constant 0 : index
    %44 = vector.load %arg8[%c2_38, %c1_39, %c0_40] : memref<10x18x128xf32, #tpu.memory_space<vmem>>, vector<8x16x128xf32>
    %45 = vector.shape_cast %44 : vector<8x16x128xf32> to vector<128x128xf32>
    %46 = arith.truncf %45 : vector<128x128xf32> to vector<128x128xbf16>
    %c0_41 = arith.constant 0 : index
    %c896 = arith.constant 896 : index
    %47 = vector.load %arg9[%c0_41, %c896] : memref<128x1152xbf16, #tpu.memory_space<vmem>>, vector<128x128xbf16>
    tpu.vector_store %arg9[%c0_41, %c896], %46 {strides = array<i32>} : memref<128x1152xbf16, #tpu.memory_space<vmem>>, vector<128x128xbf16>,
    %c2_42 = arith.constant 2 : index
    %c2_43 = arith.constant 2 : index
    %c0_44 = arith.constant 0 : index
    %48 = vector.load %arg8[%c2_42, %c2_43, %c0_44] : memref<10x18x128xf32, #tpu.memory_space<vmem>>, vector<8x16x128xf32>
    %49 = vector.shape_cast %48 : vector<8x16x128xf32> to vector<128x128xf32>
    %50 = arith.truncf %49 : vector<128x128xf32> to vector<128x128xbf16>
    %c0_45 = arith.constant 0 : index
    %c1024 = arith.constant 1024 : index
    %51 = vector.load %arg9[%c0_45, %c1024] : memref<128x1152xbf16, #tpu.memory_space<vmem>>, vector<128x128xbf16>
    tpu.vector_store %arg9[%c0_45, %c1024], %50 {strides = array<i32>} : memref<128x1152xbf16, #tpu.memory_space<vmem>>, vector<128x128xbf16>,
    %c0_46 = arith.constant 0 : index
    %c0_47 = arith.constant 0 : index
    %52 = vector.load %arg9[%c0_46, %c0_47] : memref<128x1152xbf16, #tpu.memory_space<vmem>>, vector<128x1152xbf16>
    %c0_48 = arith.constant 0 : index
    %c0_49 = arith.constant 0 : index
    %53 = vector.load %arg3[%c0_48, %c0_49] : memref<1152x128xbf16, #tpu.memory_space<vmem>>, vector<1152x128xbf16>
    %cst_50 = arith.constant dense<0.000000e+00> : vector<128x128xf32>
    %54 = tpu.matmul %52, %53, %cst_50 {dimension_numbers = #tpu.dot_dimension_numbers<[1], [0], [0], [1], [0, 0, 1, 1], [], []>} : vector<128x1152xbf16>, vector<1152x128xbf16>, vector<128x128xf32> -> vector<128x128xf32>
    %c0_51 = arith.constant 0 : index
    %c0_52 = arith.constant 0 : index
    %c0_53 = arith.constant 0 : index
    %55 = vector.load %arg2[%c0_51, %c0_52, %c0_53] : memref<1x128x128xf32, #tpu.memory_space<vmem>>, vector<1x128x128xf32>
    %56 = vector.shape_cast %55 : vector<1x128x128xf32> to vector<128x128xf32>
    %57 = arith.addf %56, %54 : vector<128x128xf32>
    %c0_54 = arith.constant 0 : index
    %c0_55 = arith.constant 0 : index
    %58 = vector.load %arg4[%c0_54, %c0_55] : memref<1x128xf32, #tpu.memory_space<vmem>>, vector<1x128xf32>
    %59 = vector.broadcast %58 : vector<1x128xf32> to vector<128x128xf32>
    %60 = arith.addf %57, %59 : vector<128x128xf32>
    %c0_56 = arith.constant 0 : index
    %c0_57 = arith.constant 0 : index
    %c0_58 = arith.constant 0 : index
    %61 = vector.load %arg7[%c0_56, %c0_57, %c0_58] : memref<1x128x128xf32, #tpu.memory_space<vmem>>, vector<1x128x128xf32>
    %62 = vector.shape_cast %61 : vector<1x128x128xf32> to vector<128x128xf32>
    %63 = vector.shape_cast %60 : vector<128x128xf32> to vector<1x128x128xf32>
    tpu.vector_store %arg7[%c0_56, %c0_57, %c0_58], %63 {strides = array<i32>} : memref<1x128x128xf32, #tpu.memory_space<vmem>>, vector<1x128x128xf32>,
    return
  }
  func.func @transform_0(%arg0: i32) -> (i32, i32, i32, i32) {
    %c0_i32 = arith.constant 0 : i32
    %c0_i32_0 = arith.constant 0 : i32
    %c0_i32_1 = arith.constant 0 : i32
    %c0_i32_2 = arith.constant 0 : i32
    return %arg0, %c0_i32, %c0_i32_0, %c0_i32_1 : i32, i32, i32, i32
  }
  func.func @transform_1(%arg0: i32) -> (i32, i32, i32) {
    %c0_i32 = arith.constant 0 : i32
    %c0_i32_0 = arith.constant 0 : i32
    %c0_i32_1 = arith.constant 0 : i32
    return %arg0, %c0_i32, %c0_i32_0 : i32, i32, i32
  }
  func.func @transform_2(%arg0: i32) -> (i32, i32) {
    %c0_i32 = arith.constant 0 : i32
    %c0_i32_0 = arith.constant 0 : i32
    %c0_i32_1 = arith.constant 0 : i32
    return %c0_i32, %c0_i32_0 : i32, i32
  }
  func.func @transform_3(%arg0: i32) -> (i32, i32) {
    %c0_i32 = arith.constant 0 : i32
    %c0_i32_0 = arith.constant 0 : i32
    %c0_i32_1 = arith.constant 0 : i32
    return %c0_i32, %c0_i32_0 : i32, i32
  }
  func.func @transform_4(%arg0: i32) -> (i32, i32) {
    %c0_i32 = arith.constant 0 : i32
    %c0_i32_0 = arith.constant 0 : i32
    %c0_i32_1 = arith.constant 0 : i32
    return %c0_i32, %c0_i32_0 : i32, i32
  }
  func.func @transform_5(%arg0: i32) -> (i32, i32) {
    %c0_i32 = arith.constant 0 : i32
    %c0_i32_0 = arith.constant 0 : i32
    %c0_i32_1 = arith.constant 0 : i32
    return %c0_i32, %c0_i32_0 : i32, i32
  }
  func.func @transform_6(%arg0: i32) -> (i32, i32, i32) {
    %c0_i32 = arith.constant 0 : i32
    %c0_i32_0 = arith.constant 0 : i32
    %c0_i32_1 = arith.constant 0 : i32
    return %arg0, %c0_i32, %c0_i32_0 : i32, i32, i32
  }
}

</mosaic_0001>

<bundles_post_ra>
// kernel: spade_resnet_block.2
= control target key start
LH: loop header
LB: loop body
LE: loop exit
PB: predicated region body
PF: predicated region fallthrough
CT: control target
= control target key end

     0   :  { %s4522_s13 = smov 0   ;;  %s5231_s0 = inlined_call_operand.vmem [shape: f32[4,10,18,128], index: 0, kind: input, shape index: {}]   ;;  %s5232_s1 = inlined_call_operand.vmem [shape: bf16[1152,128], index: 1, kind: input, shape index: {}]   ;;  %s5233_s2 = inlined_call_operand.vmem [shape: f32[1,128], index: 2, kind: input, shape index: {}]   ;;  %s5234_s3 = inlined_call_operand.vmem [shape: bf16[128,128], index: 3, kind: input, shape index: {}]   ;;  %s5235_s4 = inlined_call_operand.vmem [shape: f32[1,128], index: 4, kind: input, shape index: {}]   ;;  %s5236_s5 = inlined_call_operand.vmem [shape: f32[1,128], index: 5, kind: input, shape index: {}]   ;;  %s5237_s6 = inlined_call_operand.vmem [shape: f32[1,128], index: 6, kind: input, shape index: {}]   ;;  %s5238_s7 = inlined_call_operand.vmem [shape: f32[1,128], index: 7, kind: input, shape index: {}]   ;;  %s5239_s8 = inlined_call_operand.vmem [shape: f32[4,128,128], index: 8, kind: output, shape index: {0}]   ;;  %s5240_s9 = inlined_call_operand.vmem [shape: f32[4,128,128], index: 9, kind: output, shape index: {1}]   ;;  %s5241_s10 = inlined_call_operand.vmem [shape: f32[4,8,128], index: 10, kind: output, shape index: {2}]  }
   0x1 LB: > { %s3436_s14 = sadd.s32 4294967295, %s4465_s13   ;;  %p3440_p0 = scmp.ge.s32.totalorder %s4465_s13, 1  ;;  %s4465_s13 = sphi %s4522_s13, %s21_s13  }
   0x2   : > { %p317_p1 = scmp.lt.s32.totalorder %s4465_s13, 5 }
   0x4   : > { %p318_p2 = pnand %p3440_p0, %p317_p1 }
   0x6   : > { %321 = sbr.rel (%p318_p2) target bundleno = 440 (0x1b8), region = 52 }
   0xb   : > { %v4273_v0 = vld [vmem:[%s5232_s1 + $0x78] sm:$0xff]   ;;  %v4276_v3 = vld [vmem:[%s5232_s1 + $0x70] sm:$0xff]   ;;  %v4280_v7 = vld [vmem:[%s5232_s1 + $0x68] sm:$0xff]   ;;  %p364_p3 = scmp.lt.s32.totalorder %s3436_s14, 3 }
   0xc   : > { %v4274_v1 = vld [vmem:[%s5232_s1 + $0x38] sm:$0xff]   ;;  %3912 = vmatprep.subr.bf16.mxu0 %v4273_v0  ;;  %v4278_v5 = vld [vmem:[%s5232_s1 + $0x30] sm:$0xff]   ;;  %v4282_v9 = vld [vmem:[%s5232_s1 + $0x28] sm:$0xff]  }
   0xd   : > { %v4275_v2 = vld [vmem:[%s5232_s1 + $0xf8] sm:$0xff]   ;;  %3913 = vmatpush3.bf16.msra.mxu0 %v4274_v1  ;;  %v4279_v6 = vld [vmem:[%s5232_s1 + $0xf0] sm:$0xff]   ;;  %v4283_v10 = vld [vmem:[%s5232_s1 + $0xe8] sm:$0xff]   ;;  %s5281_s14 = smov (!%p364_p3, %s3436_s14), 3 }
   0xe   : > { %3976 = vmatprep.subr.bf16.mxu1 %v4275_v2  ;;  %v4277_v4 = vld [vmem:[%s5232_s1 + $0xb8] sm:$0xff]   ;;  %3914 = vmatprep.subr.bf16.mxu0 %v4276_v3  ;;  %v4281_v8 = vld [vmem:[%s5232_s1 + $0xb0] sm:$0xff]   ;;  %v4284_v11 = vld [vmem:[%s5232_s1 + $0x60] sm:$0xff]   ;;  %s4264_s29 = smul.u32 240, %s5281_s14  ;;  %s3766_s18 = sshll.u32 %s5281_s14, 7 }
   0xf   : > { %3977 = vmatpush3.bf16.msra.mxu1 %v4277_v4  ;;  %v4285_v12 = vld [vmem:[%s5232_s1 + $0xa8] sm:$0xff]   ;;  %v4286_v13 = vld [vmem:[%s5232_s1 + $0x20] sm:$0xff]   ;;  %v4288_v15 = vld [vmem:[%s5232_s1 + $0x58] sm:$0xff]   ;;  %s5128_s21 = scalar_lea.vmem %s5240_s9, %s3766_s18  ;;  %s5133_s25 = scalar_lea.vmem %s5239_s8, %s3766_s18 }
  0x10   : > { %3978 = vmatprep.subr.bf16.mxu1 %v4279_v6  ;;  %v4287_v14 = vld [vmem:[%s5232_s1 + $0xe0] sm:$0xff]   ;;  %v4290_v17 = vld [vmem:[%s5232_s1 + $0x18] sm:$0xff]   ;;  %v4292_v19 = vld [vmem:[%s5232_s1 + $0x50] sm:$0xff]   ;;  %s4627_s22 = scalar_lea.vmem %s5231_s0, %s4264_s29  ;;  %s3446_s26 = sshll.u32 %s5281_s14, 3 }
  0x11   : > { %3915 = vmatpush3.bf16.msra.mxu0 %v4278_v5  ;;  %v4289_v16 = vld [vmem:[%s5232_s1 + $0xa0] sm:$0xff]   ;;  %v4291_v18 = vld [vmem:[%s5232_s1 + $0xd8] sm:$0xff]   ;;  %v4294_v21 = vld [vmem:[%s5232_s1 + $0x10] sm:$0xff]   ;;  %s382_s29 = scalar_lea.vmem %s5241_s10, %s3446_s26 }
  0x12   : > { %3916 = vmatprep.subr.bf16.mxu0 %v4280_v7  ;;  %v4293_v20 = vld [vmem:[%s5232_s1 + $0x98] sm:$0xff]   ;;  %v4295_v22 = vld [vmem:[%s5232_s1 + $0xd0] sm:$0xff]   ;;  %v4296_v23 = vld [vmem:[%s5232_s1 + $0x48] sm:$0xff]  }
  0x13   : > { %3979 = vmatpush3.bf16.msra.mxu1 %v4281_v8  ;;  %v4297_v24 = vld [vmem:[%s5232_s1 + $0x90] sm:$0xff]   ;;  %v4298_v25 = vld [vmem:[%s5232_s1 + $0x8] sm:$0xff]   ;;  %v4300_v27 = vld [vmem:[%s5232_s1 + $0x40] sm:$0xff]  }
  0x14   : > { %3980 = vmatprep.subr.bf16.mxu1 %v4283_v10  ;;  %v4299_v26 = vld [vmem:[%s5232_s1 + $0xc8] sm:$0xff]   ;;  %v4302_v29 = vld [vmem:[%s5232_s1] sm:$0xff]   ;;  %v386_v33 = vld [vmem:[%s4627_s22 + $0x10] sm:$0x3] }
  0x15   : > { %3917 = vmatpush3.bf16.msra.mxu0 %v4282_v9  ;;  %v4301_v28 = vld [vmem:[%s5232_s1 + $0x88] sm:$0xff]   ;;  %v4303_v30 = vld [vmem:[%s5232_s1 + $0xc0] sm:$0xff]   ;;  %v4308_v40 = vld [vmem:[%s5232_s1 + $0x178] sm:$0xff]  }
  0x16   : > { %3918 = vmatprep.subr.bf16.mxu0 %v4284_v11  ;;  %v384_v31 = vld [vmem:[%s4627_s22] sm:$0xff]  ;;  %v385_v32 = vld [vmem:[%s4627_s22 + $0x8] sm:$0xff]  ;;  %v387_v44 = vld [vmem:[%s4627_s22 + $0x18] sm:$0xff] }
  0x17   : > { %3981 = vmatpush3.bf16.msra.mxu1 %v4285_v12  ;;  %v4641_v34 = vld [vmem:[%s5235_s4] ss:$0 sm:$0xff]  ;;  %v389_v47 = vld [vmem:[%s4627_s22 + $0x28] sm:$0x3]  ;;  %v390_v59 = vld [vmem:[%s4627_s22 + $0x30] sm:$0xff] }
  0x18   : > { %3982 = vmatprep.subr.bf16.mxu1 %v4287_v14  ;;  %v4646_v35 = vld [vmem:[%s5236_s5] ss:$0 sm:$0xff]  ;;  %v421_v36 = vmul.f32 %v4641_v34, %v384_v31  ;;  %v422_v37 = vmul.f32 %v4641_v34, %v385_v32  ;;  %v423_v38 = vmul.f32 %v4641_v34, %v386_v33  ;;  %v424_v46 = vmul.f32 %v4641_v34, %v387_v44  ;;  %v391_v60 = vld [vmem:[%s4627_s22 + $0x38] sm:$0xff]  ;;  %v393_v7 = vld [vmem:[%s4627_s22 + $0x48] sm:$0xff] }
  0x19   : > { %3919 = vmatpush3.bf16.msra.mxu0 %v4286_v13  ;;  %v4307_v39 = vld [vmem:[%s5232_s1 + $0x80] sm:$0xff]   ;;  %v426_v54 = vmul.f32 %v4641_v34, %v389_v47  ;;  %v427_v2 = vmul.f32 %v4641_v34, %v390_v59  ;;  %v428_v3 = vmul.f32 %v4641_v34, %v391_v60  ;;  %v394_v12 = vld [vmem:[%s4627_s22 + $0x50] sm:$0xff] }
  0x1a   : > { %3920 = vmatprep.subr.bf16.mxu0 %v4288_v15  ;;  %v458_v41 = vadd.f32 %v4646_v35, %v421_v36  ;;  %v459_v42 = vadd.f32 %v4646_v35, %v422_v37  ;;  %v460_v43 = vadd.f32 %v4646_v35, %v423_v38  ;;  %v388_v45 = vld [vmem:[%s4627_s22 + $0x20] sm:$0xff]  ;;  %v461_v52 = vadd.f32 %v4646_v35, %v424_v46 }
  0x1b   : > { %3983 = vmatpush3.bf16.msra.mxu1 %v4289_v16  ;;  %v425_v51 = vmul.f32 %v4641_v34, %v388_v45  ;;  %v392_v61 = vld [vmem:[%s4627_s22 + $0x40] sm:$0x3]  ;;  %v463_v0 = vadd.f32 %v4646_v35, %v426_v54  ;;  %v464_v10 = vadd.f32 %v4646_v35, %v427_v2  ;;  %v465_v11 = vadd.f32 %v4646_v35, %v428_v3 }
  0x1c   : > { %3984 = vmatprep.subr.bf16.mxu1 %v4291_v18  ;;  %vm488_vm0 = vcmp.gt.f32.partialorder %v458_v41, 0.0  ;;  %vm489_vm1 = vcmp.gt.f32.partialorder %v459_v42, 0.0  ;;  %vm490_vm2 = vcmp.gt.f32.partialorder %v460_v43, 0.0  ;;  %v518_v48 = vmul.f32 0.2, %v458_v41  ;;  %v396_v46 = vld [vmem:[%s4627_s22 + $0x60] sm:$0xff] }
  0x1d   : > { %3921 = vmatpush3.bf16.msra.mxu0 %v4290_v17  ;;  %v519_v49 = vmul.f32 0.2, %v459_v42  ;;  %v520_v50 = vmul.f32 0.2, %v460_v43  ;;  %v462_v58 = vadd.f32 %v4646_v35, %v425_v51  ;;  %vm491_vm3 = vcmp.gt.f32.partialorder %v461_v52, 0.0 }
  0x1e   : > { %3922 = vmatprep.subr.bf16.mxu0 %v4292_v19  ;;  %v548_v53 = vsel %vm488_vm0, %v458_v41, %v518_v48  ;;  %v521_v63 = vmul.f32 0.2, %v461_v52  ;;  %vm493_vm5 = vcmp.gt.f32.partialorder %v463_v0, 0.0  ;;  %v523_v5 = vmul.f32 0.2, %v463_v0 }
  0x1f   : > { %3985 = vmatpush3.bf16.msra.mxu1 %v4293_v20  ;;  %v549_v55 = vsel %vm489_vm1, %v459_v42, %v519_v49  ;;  %v550_v56 = vsel %vm490_vm2, %v460_v43, %v520_v50  ;;  %578 = vst [vmem:[#allocation2] sm:$0xff] %v548_v53  ;;  %v3768_v57 = vpack.c.bf16 %v548_v53, %v548_v53  ;;  %vm492_vm4 = vcmp.gt.f32.partialorder %v462_v58, 0.0  ;;  %v395_v17 = vld [vmem:[%s4627_s22 + $0x58] sm:$0x3] }
  0x20   : > { %3986 = vmatprep.subr.bf16.mxu1 %v4295_v22  ;;  %579 = vst [vmem:[#allocation2 + $0x8] sm:$0xff] %v549_v55  ;;  %580 = vst [vmem:[#allocation2 + $0x10] sm:$0x3] %v550_v56  ;;  %v3769_v62 = vpack.c.bf16 %v549_v55, %v549_v55  ;;  %v522_v1 = vmul.f32 0.2, %v462_v58  ;;  %v551_v4 = vsel %vm491_vm3, %v461_v52, %v521_v63  ;;  %vm494_vm6 = vcmp.gt.f32.partialorder %v464_v10, 0.0 }
  0x21   : > { %3923 = vmatpush3.bf16.msra.mxu0 %v4294_v21  ;;  %688 = vst [vmem:[#allocation3] sm:$0xf] %v3768_v57  ;;  %v429_v6 = vmul.f32 %v4641_v34, %v392_v61  ;;  %581 = vst [vmem:[#allocation2 + $0x18] sm:$0xff] %v551_v4  ;;  %v3816_v9 = vpack.c.bf16 %v551_v4, %v551_v4  ;;  %v553_v14 = vsel %vm493_vm5, %v463_v0, %v523_v5  ;;  %v397_v52 = vld [vmem:[%s4627_s22 + $0x68] sm:$0xff]  ;;  %v398_v57 = vld [vmem:[%s4627_s22 + $0x70] sm:$0x3] }
  0x22   : > { %3924 = vmatprep.subr.bf16.mxu0 %v4296_v23  ;;  %689 = vst [vmem:[#allocation3 + $0x24] sm:$0xf] %v3769_v62  ;;  %v552_v8 = vsel %vm492_vm4, %v462_v58, %v522_v1  ;;  %v430_v16 = vmul.f32 %v4641_v34, %v393_v7  ;;  %583 = vst [vmem:[#allocation2 + $0x28] sm:$0x3] %v553_v14  ;;  %vm495_vm7 = vcmp.gt.f32.partialorder %v465_v11, 0.0  ;;  %v4332_v23 = vld [vmem:[%s5232_s1 + $0x1f8] sm:$0xff]  }
  0x23   : > { %3987 = vmatpush3.bf16.msra.mxu1 %v4297_v24  ;;  %582 = vst [vmem:[#allocation2 + $0x20] sm:$0xff] %v552_v8  ;;  %v3817_v13 = vpack.c.bf16 %v552_v8, %v552_v8  ;;  %v466_v15 = vadd.f32 %v4646_v35, %v429_v6  ;;  %977 = vst [vmem:[#allocation3 + $0xc] sm:$0xf] %v3816_v9  ;;  %v524_v18 = vmul.f32 0.2, %v464_v10  ;;  %v4309_v1 = vld [vmem:[%s5232_s1 + $0x138] sm:$0xff]  }
  0x24   : > { %3988 = vmatprep.subr.bf16.mxu1 %v4299_v26  ;;  %690 = vst [vmem:[#allocation3 + $0x48] sm:$0xf] %v3816_v9  ;;  %v525_v19 = vmul.f32 0.2, %v465_v11  ;;  %v431_v21 = vmul.f32 %v4641_v34, %v394_v12  ;;  %v467_v22 = vadd.f32 %v4646_v35, %v430_v16  ;;  %v433_v60 = vmul.f32 %v4641_v34, %v396_v46  ;;  %v4315_v7 = vld [vmem:[%s5232_s1 + $0x170] sm:$0xff]   ;;  %v4335_v8 = vld [vmem:[%s5232_s1 + $0x1b8] sm:$0xff]  }
  0x25   : > { %3925 = vmatpush3.bf16.msra.mxu0 %v4298_v25  ;;  %978 = vst [vmem:[#allocation3 + $0x30] sm:$0xf] %v3817_v13  ;;  %691 = vst [vmem:[#allocation3 + $0x6c] sm:$0xf] %v3817_v13  ;;  %vm496_vm8 = vcmp.gt.f32.partialorder %v466_v15, 0.0  ;;  %v434_v61 = vmul.f32 %v4641_v34, %v397_v52  ;;  %v435_v0 = vmul.f32 %v4641_v34, %v398_v57  ;;  %v4342_v12 = vld [vmem:[%s5232_s1 + $0x1f0] sm:$0xff]  }
  0x26   : > { %3926 = vmatprep.subr.bf16.mxu0 %v4300_v27  ;;  %v526_v20 = vmul.f32 0.2, %v466_v15  ;;  %v554_v27 = vsel %vm494_vm6, %v464_v10, %v524_v18  ;;  %vm497_vm9 = vcmp.gt.f32.partialorder %v467_v22, 0.0  ;;  %v527_v41 = vmul.f32 0.2, %v467_v22  ;;  %v4317_v16 = vld [vmem:[%s5232_s1 + $0x130] sm:$0xff]  }
  0x27   : > { %3989 = vmatpush3.bf16.msra.mxu1 %v4301_v28  ;;  %v704_v24 = vld [vmem:[#allocation2 + $0x1] sm:$0xff]  ;;  %v705_v25 = vld [vmem:[#allocation2 + $0x9] sm:$0xff]  ;;  %v555_v28 = vsel %vm495_vm7, %v465_v11, %v525_v19  ;;  %584 = vst [vmem:[#allocation2 + $0x30] sm:$0xff] %v554_v27  ;;  %v3818_v36 = vpack.c.bf16 %v554_v27, %v554_v27  ;;  %v470_v5 = vadd.f32 %v4646_v35, %v433_v60  ;;  %v399_v46 = vld [vmem:[%s4627_s22 + $0x78] sm:$0xff] }
  0x28   : > { %3990 = vmatprep.subr.bf16.mxu1 %v4303_v30  ;;  %v800_v26 = vld [vmem:[#allocation2 + $0x2] sm:$0xff]  ;;  %v3784_v30 = vpack.c.bf16 %v704_v24, %v704_v24  ;;  %v3785_v31 = vpack.c.bf16 %v705_v25, %v705_v25  ;;  %v801_v32 = vld [vmem:[#allocation2 + $0xa] sm:$0xff]  ;;  %585 = vst [vmem:[#allocation2 + $0x38] sm:$0xff] %v555_v28  ;;  %v3819_v38 = vpack.c.bf16 %v555_v28, %v555_v28 }
  0x29   : > { %3927 = vmatpush3.bf16.msra.mxu0 %v4302_v29  ;;  %v432_v29 = vmul.f32 %v4641_v34, %v395_v17  ;;  %v3800_v33 = vpack.c.bf16 %v800_v26, %v800_v26  ;;  %v3801_v37 = vpack.c.bf16 %v801_v32, %v801_v32  ;;  %979 = vst [vmem:[#allocation3 + $0x54] sm:$0xf] %v3818_v36  ;;  %692 = vst [vmem:[#allocation3 + $0x90] sm:$0xf] %v3818_v36  ;;  %v4304_v6 = vld [vmem:[#allocation3] ss:$36 sps:$4 sm:$0xff]  }
  0x2a   : > { %4040 = vmatprep.subr.bf16.mxu0 %v4308_v40  ;;  %v468_v40 = vadd.f32 %v4646_v35, %v431_v21  ;;  %784 = vst [vmem:[#allocation3 + $0x4] sm:$0xf] %v3784_v30  ;;  %785 = vst [vmem:[#allocation3 + $0x28] sm:$0xf] %v3785_v31  ;;  %v706_v43 = vld [vmem:[#allocation2 + $0x19] sm:$0xff]  ;;  %v707_v47 = vld [vmem:[#allocation2 + $0x21] sm:$0xff]  ;;  %v557_v51 = vsel %vm497_vm9, %v467_v22, %v527_v41  ;;  %v471_v9 = vadd.f32 %v4646_v35, %v434_v61 }
  0x2b   : > { %3991 = vmatpush3.bf16.msra.mxu1 %v4307_v39  ;;  %v556_v39 = vsel %vm496_vm8, %v466_v15, %v526_v20  ;;  %880 = vst [vmem:[#allocation3 + $0x8] sm:$0xf] %v3800_v33  ;;  %v469_v42 = vadd.f32 %v4646_v35, %v432_v29  ;;  %1266 = vst [vmem:[#allocation3 + $0x18] sm:$0xf] %v3818_v36  ;;  %v802_v44 = vld [vmem:[#allocation2 + $0x1a] sm:$0xff]  ;;  %v3786_v48 = vpack.c.bf16 %v706_v43, %v706_v43  ;;  %v803_v49 = vld [vmem:[#allocation2 + $0x22] sm:$0xff] }
  0x2c   : > { %4104 = vmatprep.subr.bf16.mxu1 %v4332_v23  ;;  %586 = vst [vmem:[#allocation2 + $0x40] sm:$0x3] %v556_v39  ;;  %881 = vst [vmem:[#allocation3 + $0x2c] sm:$0xf] %v3801_v37  ;;  %vm498_vm10 = vcmp.gt.f32.partialorder %v468_v40, 0.0  ;;  %v3802_v50 = vpack.c.bf16 %v802_v44, %v802_v44  ;;  %v3787_v53 = vpack.c.bf16 %v707_v47, %v707_v47  ;;  %vm500_vm12 = vcmp.gt.f32.partialorder %v470_v5, 0.0 }
  0x2d   : > { %980 = vst [vmem:[#allocation3 + $0x78] sm:$0xf] %v3819_v38  ;;  %693 = vst [vmem:[#allocation3 + $0xb4] sm:$0xf] %v3819_v38  ;;  %v528_v45 = vmul.f32 0.2, %v468_v40  ;;  %v3803_v54 = vpack.c.bf16 %v803_v49, %v803_v49  ;;  %v3820_v56 = vpack.c.bf16 %v557_v51, %v557_v51  ;;  %v472_v10 = vadd.f32 %v4646_v35, %v435_v0 }
  0x2e   : > { %1267 = vst [vmem:[#allocation3 + $0x3c] sm:$0xf] %v3819_v38  ;;  %vm499_vm11 = vcmp.gt.f32.partialorder %v469_v42, 0.0  ;;  %587 = vst [vmem:[#allocation2 + $0x48] sm:$0xff] %v557_v51  ;;  %v529_v59 = vmul.f32 0.2, %v469_v42 }
  0x2f   : > { %v558_v55 = vsel %vm498_vm10, %v468_v40, %v528_v45  ;;  %786 = vst [vmem:[#allocation3 + $0x4c] sm:$0xf] %v3786_v48  ;;  %882 = vst [vmem:[#allocation3 + $0x50] sm:$0xf] %v3802_v50  ;;  %v708_v62 = vld [vmem:[#allocation2 + $0x31] sm:$0xff]  ;;  %vm501_vm13 = vcmp.gt.f32.partialorder %v471_v9, 0.0 }
  0x30   : > { %588 = vst [vmem:[#allocation2 + $0x50] sm:$0xff] %v558_v55  ;;  %v3821_v58 = vpack.c.bf16 %v558_v55, %v558_v55  ;;  %1073 = vst [vmem:[#allocation3 + $0x10] sm:$0xf] %v3786_v48  ;;  %v804_v63 = vld [vmem:[#allocation2 + $0x32] sm:$0xff]  ;;  %v3788_v2 = vpack.c.bf16 %v708_v62, %v708_v62  ;;  %v559_v4 = vsel %vm499_vm11, %v469_v42, %v529_v59  ;;  %v4312_v14 = vld [vmem:[#allocation3 + $0xc] ss:$36 sps:$4 sm:$0xff]  }
  0x31   : > { %1169 = vst [vmem:[#allocation3 + $0x14] sm:$0xf] %v3802_v50  ;;  %787 = vst [vmem:[#allocation3 + $0x70] sm:$0xf] %v3787_v53  ;;  %v3804_v3 = vpack.c.bf16 %v804_v63, %v804_v63  ;;  %v4306_v11 = vld [vmem:[#allocation3 + $0x4] ss:$36 sps:$4 sm:$0xff]   ;;  %2634 = vmatprep.mubr.bf16.mxu1 %v4312_v14  ;;  %v436_v48 = vmul.f32 %v4641_v34, %v399_v46 }
  0x32   : > { %883 = vst [vmem:[#allocation3 + $0x74] sm:$0xf] %v3803_v54  ;;  %981 = vst [vmem:[#allocation3 + $0x9c] sm:$0xf] %v3820_v56  ;;  %2537 = vmatprep.mubr.bf16.mxu0 %v4306_v11  ;;  %v530_v19 = vmul.f32 0.2, %v470_v5 }
  0x33   : > { %694 = vst [vmem:[#allocation3 + $0xd8] sm:$0xf] %v3820_v56  ;;  %1074 = vst [vmem:[#allocation3 + $0x34] sm:$0xf] %v3787_v53  ;;  %v4310_v13 = vld [vmem:[#allocation3 + $0x8] ss:$36 sps:$4 sm:$0xff]   ;;  %2538 = vmatmul.mubr.bf16.vlgmr.msra.gmra.mxu0 %v4304_v6 }
  0x34   : > { %1170 = vst [vmem:[#allocation3 + $0x38] sm:$0xf] %v3803_v54  ;;  %1268 = vst [vmem:[#allocation3 + $0x60] sm:$0xf] %v3820_v56  ;;  %v709_v15 = vld [vmem:[#allocation2 + $0x39] sm:$0xff]  ;;  %vm502_vm14 = vcmp.gt.f32.partialorder %v472_v10, 0.0  ;;  %4041 = vmatpush3.bf16.msra.mxu0 %v4309_v1  ;;  %2635 = vmatmul.mubr.bf16.vlgmr.msra.gmra.mxu1 %v4310_v13  ;;  %v560_v27 = vsel %vm500_vm12, %v470_v5, %v530_v19  ;;  %v473_v54 = vadd.f32 %v4646_v35, %v436_v48 }
  0x35   : > { %982 = vst [vmem:[#allocation3 + $0xc0] sm:$0xf] %v3821_v58  ;;  %695 = vst [vmem:[#allocation3 + $0xfc] sm:$0xf] %v3821_v58  ;;  %v3789_v17 = vpack.c.bf16 %v709_v15, %v709_v15  ;;  %v805_v18 = vld [vmem:[#allocation2 + $0x3a] sm:$0xff]  ;;  %v4323_v25 = vld [vmem:[%s5232_s1 + $0x168] sm:$0xff]   ;;  %4042 = vmatprep.subr.bf16.mxu0 %v4315_v7  ;;  %4105 = vmatpush3.bf16.msra.mxu1 %v4335_v8  ;;  %v3822_v31 = vpack.c.bf16 %v560_v27, %v560_v27 }
  0x36   : > { %1269 = vst [vmem:[#allocation3 + $0x84] sm:$0xf] %v3821_v58  ;;  %589 = vst [vmem:[#allocation2 + $0x58] sm:$0x3] %v559_v4  ;;  %v531_v20 = vmul.f32 0.2, %v471_v9  ;;  %v3805_v21 = vpack.c.bf16 %v805_v18, %v805_v18  ;;  %4106 = vmatprep.subr.bf16.mxu1 %v4342_v12 }
  0x37   : > { %788 = vst [vmem:[#allocation3 + $0x94] sm:$0xf] %v3788_v2  ;;  %884 = vst [vmem:[#allocation3 + $0x98] sm:$0xf] %v3804_v3  ;;  %v710_v22 = vld [vmem:[#allocation2 + $0x49] sm:$0xff]  ;;  %v4331_v42 = vld [vmem:[%s5232_s1 + $0x160] sm:$0xff]  }
  0x38   : > { %1362 = vst [vmem:[#allocation3 + $0x1c] sm:$0xf] %v3788_v2  ;;  %1075 = vst [vmem:[#allocation3 + $0x58] sm:$0xf] %v3788_v2  ;;  %v532_v23 = vmul.f32 0.2, %v472_v10  ;;  %v3790_v26 = vpack.c.bf16 %v710_v22, %v710_v22  ;;  %v561_v28 = vsel %vm501_vm13, %v471_v9, %v531_v20  ;;  %4043 = vmatpush3.bf16.msra.mxu0 %v4317_v16 }
  0x39   : > { %1171 = vst [vmem:[#allocation3 + $0x5c] sm:$0xf] %v3804_v3  ;;  %v4313_v24 = vld [vmem:[#allocation3 + $0x4c] ss:$36 sps:$4 sm:$0xff]   ;;  %789 = vst [vmem:[#allocation3 + $0xb8] sm:$0xf] %v3789_v17  ;;  %v3823_v32 = vpack.c.bf16 %v561_v28, %v561_v28  ;;  %4044 = vmatprep.subr.bf16.mxu0 %v4323_v25 }
  0x3a   : > { %1363 = vst [vmem:[#allocation3 + $0x40] sm:$0xf] %v3789_v17  ;;  %1076 = vst [vmem:[#allocation3 + $0x7c] sm:$0xf] %v3789_v17  ;;  %v4316_v29 = vld [vmem:[#allocation3 + $0x48] ss:$36 sps:$4 sm:$0xff]   ;;  %v562_v33 = vsel %vm502_vm14, %v472_v10, %v532_v23  ;;  %2545 = vmatprep.mubr.bf16.mxu0 %v4313_v24 }
  0x3b   : > { %v4318_v30 = vld [vmem:[#allocation3 + $0x54] ss:$36 sps:$4 sm:$0xff]   ;;  %885 = vst [vmem:[#allocation3 + $0xbc] sm:$0xf] %v3805_v21  ;;  %590 = vst [vmem:[#allocation2 + $0x60] sm:$0xff] %v560_v27  ;;  %v4345_v45 = vld [vmem:[%s5232_s1 + $0x1b0] sm:$0xff]   ;;  %2546 = vmatmul.mubr.bf16.gmra.mxu0 %v4316_v29 }
  0x3c   : > { %591 = vst [vmem:[#allocation2 + $0x68] sm:$0xff] %v561_v28  ;;  %1172 = vst [vmem:[#allocation3 + $0x80] sm:$0xf] %v3805_v21  ;;  %v4320_v36 = vld [vmem:[#allocation3 + $0x50] ss:$36 sps:$4 sm:$0xff]   ;;  %v4325_v37 = vld [vmem:[%s5232_s1 + $0x128] sm:$0xff]   ;;  %2642 = vmatprep.mubr.bf16.mxu1 %v4318_v30  ;;  %4107 = vmatpush3.bf16.msra.mxu1 %v4345_v45 }
  0x3d   : > { %v711_v38 = vld [vmem:[#allocation2 + $0x51] sm:$0xff]  ;;  %790 = vst [vmem:[#allocation3 + $0xdc] sm:$0xf] %v3790_v26  ;;  %592 = vst [vmem:[#allocation2 + $0x70] sm:$0x3] %v562_v33  ;;  %v400_v47 = vld [vmem:[%s4627_s22 + $0x80] sm:$0xff]  ;;  %2643 = vmatmul.mubr.bf16.gmra.mxu1 %v4320_v36  ;;  %4045 = vmatpush3.bf16.msra.mxu0 %v4325_v37 }
  0x3e   : > { %v806_v39 = vld [vmem:[#allocation2 + $0x4a] sm:$0xff]  ;;  %v807_v40 = vld [vmem:[#allocation2 + $0x52] sm:$0xff]  ;;  %1364 = vst [vmem:[#allocation3 + $0x64] sm:$0xf] %v3790_v26  ;;  %1077 = vst [vmem:[#allocation3 + $0xa0] sm:$0xf] %v3790_v26  ;;  %v3791_v41 = vpack.c.bf16 %v711_v38, %v711_v38  ;;  %v437_v50 = vmul.f32 %v4641_v34, %v400_v47  ;;  %4046 = vmatprep.subr.bf16.mxu0 %v4331_v42 }
  0x3f   : > { %v3806_v43 = vpack.c.bf16 %v806_v39, %v806_v39  ;;  %v3807_v44 = vpack.c.bf16 %v807_v40, %v807_v40  ;;  %983 = vst [vmem:[#allocation3 + $0xe4] sm:$0xf] %v3822_v31  ;;  %984 = vst [vmem:[#allocation3 + $0x108] sm:$0xf] %v3823_v32  ;;  %v401_v49 = vld [vmem:[%s4627_s22 + $0x88] sm:$0x3] }
  0x40   : > { %696 = vst [vmem:[#allocation3 + $0x120] sm:$0xf] %v3822_v31  ;;  %697 = vst [vmem:[#allocation3 + $0x144] sm:$0xf] %v3823_v32  ;;  %v438_v51 = vmul.f32 %v4641_v34, %v401_v49  ;;  %v4321_v52 = vld [vmem:[#allocation3 + $0x94] ss:$36 sps:$4 sm:$0xff]   ;;  %v474_v57 = vadd.f32 %v4646_v35, %v437_v50 }
  0x41   : > { %1270 = vst [vmem:[#allocation3 + $0xa8] sm:$0xf] %v3822_v31  ;;  %1271 = vst [vmem:[#allocation3 + $0xcc] sm:$0xf] %v3823_v32  ;;  %v4334_v53 = vld [vmem:[%s5232_s1 + $0x120] sm:$0xff]   ;;  %v4341_v56 = vld [vmem:[%s5232_s1 + $0x158] sm:$0xff]   ;;  %2553 = vmatprep.mubr.bf16.mxu0 %v4321_v52 }
  0x42   : > { %791 = vst [vmem:[#allocation3 + $0x100] sm:$0xf] %v3791_v41  ;;  %886 = vst [vmem:[#allocation3 + $0xe0] sm:$0xf] %v3806_v43  ;;  %v4326_v55 = vld [vmem:[#allocation3 + $0x9c] ss:$36 sps:$4 sm:$0xff]   ;;  %v475_v58 = vadd.f32 %v4646_v35, %v438_v51  ;;  %4047 = vmatpush3.bf16.msra.mxu0 %v4334_v53 }
  0x43   : > { %887 = vst [vmem:[#allocation3 + $0x104] sm:$0xf] %v3807_v44  ;;  %1365 = vst [vmem:[#allocation3 + $0x88] sm:$0xf] %v3791_v41  ;;  %v712_v59 = vld [vmem:[#allocation2 + $0x61] sm:$0xff]  ;;  %vm503_vm15 = vcmp.gt.f32.partialorder %v473_v54, 0.0  ;;  %2650 = vmatprep.mubr.bf16.mxu1 %v4326_v55  ;;  %4048 = vmatprep.subr.bf16.mxu0 %v4341_v56 }
  0x44   : > { %1078 = vst [vmem:[#allocation3 + $0xc4] sm:$0xf] %v3791_v41  ;;  %1173 = vst [vmem:[#allocation3 + $0xa4] sm:$0xf] %v3806_v43  ;;  %v713_v60 = vld [vmem:[#allocation2 + $0x69] sm:$0xff]  ;;  %v3792_v62 = vpack.c.bf16 %v712_v59, %v712_v59  ;;  %vm504_vm0 = vcmp.gt.f32.partialorder %v474_v57, 0.0 }
  0x45   : > { %1174 = vst [vmem:[#allocation3 + $0xc8] sm:$0xf] %v3807_v44  ;;  %v533_v61 = vmul.f32 0.2, %v473_v54  ;;  %v3793_v63 = vpack.c.bf16 %v713_v60, %v713_v60  ;;  %v534_v0 = vmul.f32 0.2, %v474_v57 }
  0x46   : > { %v808_v1 = vld [vmem:[#allocation2 + $0x62] sm:$0xff]  ;;  %v809_v2 = vld [vmem:[#allocation2 + $0x6a] sm:$0xff]  ;;  %v4344_v5 = vld [vmem:[%s5232_s1 + $0x118] sm:$0xff]   ;;  %792 = vst [vmem:[#allocation3 + $0x124] sm:$0xf] %v3792_v62  ;;  %vm505_vm1 = vcmp.gt.f32.partialorder %v475_v58, 0.0 }
  0x47   : > { %v4352_v3 = vld [vmem:[%s5232_s1 + $0x1e8] sm:$0xff]   ;;  %v4324_v4 = vld [vmem:[#allocation3 + $0x90] ss:$36 sps:$4 sm:$0xff]   ;;  %v563_v6 = vsel %vm503_vm15, %v473_v54, %v533_v61  ;;  %v3808_v7 = vpack.c.bf16 %v808_v1, %v808_v1  ;;  %v3809_v8 = vpack.c.bf16 %v809_v2, %v809_v2  ;;  %793 = vst [vmem:[#allocation3 + $0x148] sm:$0xf] %v3793_v63  ;;  %v564_v11 = vsel %vm504_vm0, %v474_v57, %v534_v0  ;;  %v4351_v16 = vld [vmem:[%s5232_s1 + $0x150] sm:$0xff]  }
  0x48   : > { %v4328_v9 = vld [vmem:[#allocation3 + $0x98] ss:$36 sps:$4 sm:$0xff]   ;;  %593 = vst [vmem:[#allocation2 + $0x78] sm:$0xff] %v563_v6  ;;  %v3824_v12 = vpack.c.bf16 %v563_v6, %v563_v6  ;;  %4108 = vmatprep.subr.bf16.mxu1 %v4352_v3  ;;  %1366 = vst [vmem:[#allocation3 + $0xac] sm:$0xf] %v3792_v62  ;;  %v3825_v14 = vpack.c.bf16 %v564_v11, %v564_v11  ;;  %2554 = vmatmul.mubr.bf16.gmra.mxu0 %v4324_v4  ;;  %v4354_v18 = vld [vmem:[%s5232_s1 + $0x110] sm:$0xff]  }
  0x49   : > { %v4329_v10 = vld [vmem:[#allocation3 + $0xdc] ss:$36 sps:$4 sm:$0xff]   ;;  %1367 = vst [vmem:[#allocation3 + $0xd0] sm:$0xf] %v3793_v63  ;;  %1079 = vst [vmem:[#allocation3 + $0xe8] sm:$0xf] %v3792_v62  ;;  %2651 = vmatmul.mubr.bf16.gmra.mxu1 %v4328_v9  ;;  %4049 = vmatpush3.bf16.msra.mxu0 %v4344_v5 }
  0x4a   : > { %1080 = vst [vmem:[#allocation3 + $0x10c] sm:$0xf] %v3793_v63  ;;  %v4336_v13 = vld [vmem:[#allocation3 + $0xe4] ss:$36 sps:$4 sm:$0xff]   ;;  %594 = vst [vmem:[#allocation2 + $0x80] sm:$0xff] %v564_v11  ;;  %v4355_v19 = vld [vmem:[%s5232_s1 + $0x1a8] sm:$0xff]   ;;  %2561 = vmatprep.mubr.bf16.mxu0 %v4329_v10  ;;  %4050 = vmatprep.subr.bf16.mxu0 %v4351_v16 }
  0x4b   : > { %888 = vst [vmem:[#allocation3 + $0x128] sm:$0xf] %v3808_v7  ;;  %889 = vst [vmem:[#allocation3 + $0x14c] sm:$0xf] %v3809_v8  ;;  %v535_v15 = vmul.f32 0.2, %v475_v58  ;;  %2658 = vmatprep.mubr.bf16.mxu1 %v4336_v13  ;;  %4109 = vmatpush3.bf16.msra.mxu1 %v4355_v19 }
  0x4c   : > { %1175 = vst [vmem:[#allocation3 + $0xec] sm:$0xf] %v3808_v7  ;;  %1176 = vst [vmem:[#allocation3 + $0x110] sm:$0xf] %v3809_v8  ;;  %v402_v20 = vld [vmem:[%s4627_s22 + $0x90] sm:$0xff]  ;;  %v403_v21 = vld [vmem:[%s4627_s22 + $0x98] sm:$0xff] }
  0x4d   : > { %985 = vst [vmem:[#allocation3 + $0x12c] sm:$0xf] %v3824_v12  ;;  %698 = vst [vmem:[#allocation3 + $0x168] sm:$0xf] %v3824_v12  ;;  %v565_v17 = vsel %vm505_vm1, %v475_v58, %v535_v15  ;;  %v439_v22 = vmul.f32 %v4641_v34, %v402_v20  ;;  %v4333_v23 = vld [vmem:[#allocation3 + $0xd8] ss:$36 sps:$4 sm:$0xff]   ;;  %v440_v24 = vmul.f32 %v4641_v34, %v403_v21  ;;  %4051 = vmatpush3.bf16.msra.mxu0 %v4354_v18 }
  0x4e   : > { %1272 = vst [vmem:[#allocation3 + $0xf0] sm:$0xf] %v3824_v12  ;;  %986 = vst [vmem:[#allocation3 + $0x150] sm:$0xf] %v3825_v14  ;;  %v4359_v25 = vld [vmem:[%s5232_s1 + $0x1e0] sm:$0xff]   ;;  %v4362_v29 = vld [vmem:[%s5232_s1 + $0x148] sm:$0xff]  }
  0x4f   : > { %699 = vst [vmem:[#allocation3 + $0x18c] sm:$0xf] %v3825_v14  ;;  %1273 = vst [vmem:[#allocation3 + $0x114] sm:$0xf] %v3825_v14  ;;  %v404_v26 = vld [vmem:[%s4627_s22 + $0xa0] sm:$0x3]  ;;  %v476_v27 = vadd.f32 %v4646_v35, %v439_v22  ;;  %v477_v31 = vadd.f32 %v4646_v35, %v440_v24  ;;  %4110 = vmatprep.subr.bf16.mxu1 %v4359_v25  ;;  %4052 = vmatprep.subr.bf16.mxu0 %v4362_v29 }
  0x50   : > { %595 = vst [vmem:[#allocation2 + $0x88] sm:$0x3] %v565_v17  ;;  %v441_v28 = vmul.f32 %v4641_v34, %v404_v26  ;;  %v4338_v30 = vld [vmem:[#allocation3 + $0xe0] ss:$36 sps:$4 sm:$0xff]   ;;  %v4363_v41 = vld [vmem:[%s5232_s1 + $0x1a0] sm:$0xff]   ;;  %2562 = vmatmul.mubr.bf16.gmra.mxu0 %v4333_v23  ;;  %v4365_v53 = vld [vmem:[%s5232_s1 + $0x108] sm:$0xff]  }
  0x51   : > { %v4339_v32 = vld [vmem:[#allocation3 + $0x124] ss:$36 sps:$4 sm:$0xff]   ;;  %vm506_vm2 = vcmp.gt.f32.partialorder %v476_v27, 0.0  ;;  %v536_v36 = vmul.f32 0.2, %v476_v27  ;;  %vm507_vm3 = vcmp.gt.f32.partialorder %v477_v31, 0.0  ;;  %4111 = vmatpush3.bf16.msra.mxu1 %v4363_v41  ;;  %4053 = vmatpush3.bf16.msra.mxu0 %v4365_v53 }
  0x52   : > { %v714_v33 = vld [vmem:[#allocation2 + $0x79] sm:$0xff]  ;;  %v478_v37 = vadd.f32 %v4646_v35, %v441_v28  ;;  %v537_v39 = vmul.f32 0.2, %v477_v31  ;;  %2659 = vmatmul.mubr.bf16.gmra.mxu1 %v4338_v30  ;;  %2569 = vmatprep.mubr.bf16.mxu0 %v4339_v32  ;;  %v4343_v54 = vld [vmem:[#allocation3 + $0x120] ss:$36 sps:$4 sm:$0xff]   ;;  %v405_v56 = vld [vmem:[%s4627_s22 + $0xa8] sm:$0xff] }
  0x53   : > { %v3794_v38 = vpack.c.bf16 %v714_v33, %v714_v33  ;;  %v810_v40 = vld [vmem:[#allocation2 + $0x7a] sm:$0xff]  ;;  %v566_v43 = vsel %vm506_vm2, %v476_v27, %v536_v36  ;;  %v406_v57 = vld [vmem:[%s4627_s22 + $0xb0] sm:$0xff]  ;;  %v442_v59 = vmul.f32 %v4641_v34, %v405_v56  ;;  %v407_v2 = vld [vmem:[%s4627_s22 + $0xb8] sm:$0x3]  ;;  %vm3064_vm14 = vcmask 1040384  }
  0x54   : > { %v3810_v44 = vpack.c.bf16 %v810_v40, %v810_v40  ;;  %vm508_vm4 = vcmp.gt.f32.partialorder %v478_v37, 0.0  ;;  %v567_v46 = vsel %vm507_vm3, %v477_v31, %v537_v39  ;;  %596 = vst [vmem:[#allocation2 + $0x90] sm:$0xff] %v566_v43  ;;  %v3826_v48 = vpack.c.bf16 %v566_v43, %v566_v43  ;;  %v4348_v58 = vld [vmem:[#allocation3 + $0x128] ss:$36 sps:$4 sm:$0xff]   ;;  %v4371_v1 = vld [vmem:[%s5232_s1 + $0x1d0] sm:$0xff]   ;;  %v4374_v4 = vld [vmem:[%s5232_s1 + $0x140] sm:$0xff]  }
  0x55   : > { %v4346_v42 = vld [vmem:[#allocation3 + $0x12c] ss:$36 sps:$4 sm:$0xff]   ;;  %794 = vst [vmem:[#allocation3 + $0x16c] sm:$0xf] %v3794_v38  ;;  %v538_v49 = vmul.f32 0.2, %v478_v37  ;;  %v3827_v52 = vpack.c.bf16 %v567_v46, %v567_v46  ;;  %v443_v60 = vmul.f32 %v4641_v34, %v406_v57  ;;  %v479_v63 = vadd.f32 %v4646_v35, %v442_v59  ;;  %4054 = vmatprep.subr.bf16.mxu0 %v4374_v4 }
  0x56   : > { %1368 = vst [vmem:[#allocation3 + $0xf4] sm:$0xf] %v3794_v38  ;;  %1081 = vst [vmem:[#allocation3 + $0x130] sm:$0xf] %v3794_v38  ;;  %2666 = vmatprep.mubr.bf16.mxu1 %v4346_v42  ;;  %v4369_v61 = vld [vmem:[%s5232_s1 + $0x1d8] sm:$0xff]   ;;  %v444_v3 = vmul.f32 %v4641_v34, %v407_v2  ;;  %v4375_v6 = vld [vmem:[%s5232_s1 + $0x190] sm:$0xff]  }
  0x57   : > { %v715_v45 = vld [vmem:[#allocation2 + $0x81] sm:$0xff]  ;;  %597 = vst [vmem:[#allocation2 + $0x98] sm:$0xff] %v567_v46  ;;  %890 = vst [vmem:[#allocation3 + $0x170] sm:$0xf] %v3810_v44  ;;  %v568_v55 = vsel %vm508_vm4, %v478_v37, %v538_v49  ;;  %v4370_v62 = vld [vmem:[%s5232_s1 + $0x198] sm:$0xff]   ;;  %v480_v0 = vadd.f32 %v4646_v35, %v443_v60  ;;  %4112 = vmatprep.subr.bf16.mxu1 %v4369_v61  ;;  %vm509_vm5 = vcmp.gt.f32.partialorder %v479_v63, 0.0 }
  0x58   : > { %v811_v47 = vld [vmem:[#allocation2 + $0x82] sm:$0xff]  ;;  %v3795_v50 = vpack.c.bf16 %v715_v45, %v715_v45  ;;  %1177 = vst [vmem:[#allocation3 + $0x134] sm:$0xf] %v3810_v44  ;;  %987 = vst [vmem:[#allocation3 + $0x174] sm:$0xf] %v3826_v48  ;;  %4113 = vmatpush3.bf16.msra.mxu1 %v4370_v62  ;;  %2570 = vmatmul.mubr.bf16.gmra.mxu0 %v4343_v54  ;;  %v481_v10 = vadd.f32 %v4646_v35, %v444_v3  ;;  %v4388_v49 = vld [vmem:[%s5232_s1 + $0x238] sm:$0xff]  }
  0x59   : > { %v3811_v51 = vpack.c.bf16 %v811_v47, %v811_v47  ;;  %700 = vst [vmem:[#allocation3 + $0x1b0] sm:$0xf] %v3826_v48  ;;  %1274 = vst [vmem:[#allocation3 + $0x138] sm:$0xf] %v3826_v48  ;;  %vm510_vm6 = vcmp.gt.f32.partialorder %v480_v0, 0.0  ;;  %4114 = vmatprep.subr.bf16.mxu1 %v4371_v1  ;;  %v4377_v24 = vld [vmem:[%s5232_s1 + $0x100] sm:$0xff]  }
  0x5a   : > { %795 = vst [vmem:[#allocation3 + $0x190] sm:$0xf] %v3795_v50  ;;  %988 = vst [vmem:[#allocation3 + $0x198] sm:$0xf] %v3827_v52  ;;  %v539_v5 = vmul.f32 0.2, %v479_v63  ;;  %2667 = vmatmul.mubr.bf16.gmra.mxu1 %v4348_v58  ;;  %4055 = vmatpush3.bf16.msra.mxu0 %v4377_v24 }
  0x5b   : > { %891 = vst [vmem:[#allocation3 + $0x194] sm:$0xf] %v3811_v51  ;;  %598 = vst [vmem:[#allocation2 + $0xa0] sm:$0x3] %v568_v55  ;;  %v540_v8 = vmul.f32 0.2, %v480_v0  ;;  %4200 = vmatprep.subr.bf16.mxu0 %v4388_v49 }
  0x5c   : > { %701 = vst [vmem:[#allocation3 + $0x1d4] sm:$0xf] %v3827_v52  ;;  %1369 = vst [vmem:[#allocation3 + $0x118] sm:$0xf] %v3795_v50  ;;  %v569_v11 = vsel %vm509_vm5, %v479_v63, %v539_v5  ;;  %v4353_v14 = vld [vmem:[#allocation3 + $0x168] ss:$36 sps:$4 sm:$0xff]   ;;  %4115 = vmatpush3.bf16.msra.mxu1 %v4375_v6 }
  0x5d   : > { %1082 = vst [vmem:[#allocation3 + $0x154] sm:$0xf] %v3795_v50  ;;  %1178 = vst [vmem:[#allocation3 + $0x158] sm:$0xf] %v3811_v51  ;;  %v570_v15 = vsel %vm510_vm6, %v480_v0, %v540_v8  ;;  %v3828_v16 = vpack.c.bf16 %v569_v11, %v569_v11  ;;  %vm511_vm7 = vcmp.gt.f32.partialorder %v481_v10, 0.0  ;;  %v408_v25 = vld [vmem:[%s4627_s22 + $0xc0] sm:$0xff] }
  0x5e   : > { %1275 = vst [vmem:[#allocation3 + $0x15c] sm:$0xf] %v3827_v52  ;;  %v716_v7 = vld [vmem:[#allocation2 + $0x91] sm:$0xff]  ;;  %599 = vst [vmem:[#allocation2 + $0xa8] sm:$0xff] %v569_v11  ;;  %v3829_v19 = vpack.c.bf16 %v570_v15, %v570_v15  ;;  %v541_v21 = vmul.f32 0.2, %v481_v10 }
  0x5f   : > { %v812_v9 = vld [vmem:[#allocation2 + $0x92] sm:$0xff]  ;;  %v3796_v34 = vpack.c.bf16 %v716_v7, %v716_v7  ;;  %600 = vst [vmem:[#allocation2 + $0xb0] sm:$0xff] %v570_v15  ;;  %989 = vst [vmem:[#allocation3 + $0x1bc] sm:$0xf] %v3828_v16  ;;  %v409_v26 = vld [vmem:[%s4627_s22 + $0xc8] sm:$0xff]  ;;  %vm3066_vm15 = vcmask 1041408  }
  0x60   : > { %v3812_v12 = vpack.c.bf16 %v812_v9, %v812_v9  ;;  %702 = vst [vmem:[#allocation3 + $0x1f8] sm:$0xf] %v3828_v16  ;;  %1276 = vst [vmem:[#allocation3 + $0x180] sm:$0xf] %v3828_v16  ;;  %v571_v27 = vsel %vm511_vm7, %v481_v10, %v541_v21  ;;  %v4819_v28 = vld [vmem:[%s5235_s4] ss:$0 sm:$0xff] }
  0x61   : > { %v4349_v13 = vld [vmem:[#allocation3 + $0x16c] ss:$36 sps:$4 sm:$0xff]   ;;  %v4356_v17 = vld [vmem:[#allocation3 + $0x174] ss:$36 sps:$4 sm:$0xff]   ;;  %796 = vst [vmem:[#allocation3 + $0x1b4] sm:$0xf] %v3796_v34  ;;  %v445_v29 = vmul.f32 %v4819_v28, %v408_v25  ;;  %v446_v30 = vmul.f32 %v4819_v28, %v409_v26 }
  0x62   : > { %v4358_v18 = vld [vmem:[#allocation3 + $0x170] ss:$36 sps:$4 sm:$0xff]   ;;  %892 = vst [vmem:[#allocation3 + $0x1b8] sm:$0xf] %v3812_v12  ;;  %1370 = vst [vmem:[#allocation3 + $0x13c] sm:$0xf] %v3796_v34  ;;  %2577 = vmatprep.mubr.bf16.mxu0 %v4349_v13  ;;  %2674 = vmatprep.mubr.bf16.mxu1 %v4356_v17 }
  0x63   : > { %1083 = vst [vmem:[#allocation3 + $0x178] sm:$0xf] %v3796_v34  ;;  %1179 = vst [vmem:[#allocation3 + $0x17c] sm:$0xf] %v3812_v12  ;;  %v717_v35 = vld [vmem:[#allocation2 + $0x99] sm:$0xff]  ;;  %v4381_v31 = vld [vmem:[%s5232_s1 + $0x1c8] sm:$0xff]   ;;  %2578 = vmatmul.mubr.bf16.gmra.mxu0 %v4353_v14  ;;  %2675 = vmatmul.mubr.bf16.gmra.mxu1 %v4358_v18 }
  0x64   : > { %v813_v20 = vld [vmem:[#allocation2 + $0x9a] sm:$0xff]  ;;  %v3797_v22 = vpack.c.bf16 %v717_v35, %v717_v35  ;;  %990 = vst [vmem:[#allocation3 + $0x1e0] sm:$0xf] %v3829_v19  ;;  %703 = vst [vmem:[#allocation3 + $0x21c] sm:$0xf] %v3829_v19  ;;  %v4382_v32 = vld [vmem:[%s5232_s1 + $0x188] sm:$0xff]   ;;  %4116 = vmatprep.subr.bf16.mxu1 %v4381_v31 }
  0x65   : > { %v3813_v23 = vpack.c.bf16 %v813_v20, %v813_v20  ;;  %1277 = vst [vmem:[#allocation3 + $0x1a4] sm:$0xf] %v3829_v19  ;;  %601 = vst [vmem:[#allocation2 + $0xb8] sm:$0x3] %v571_v27  ;;  %v4832_v33 = vld [vmem:[%s5236_s5] ss:$0 sm:$0xff]  ;;  %4117 = vmatpush3.bf16.msra.mxu1 %v4382_v32 }
  0x66   : > { %797 = vst [vmem:[#allocation3 + $0x1d8] sm:$0xf] %v3797_v22  ;;  %1371 = vst [vmem:[#allocation3 + $0x160] sm:$0xf] %v3797_v22  ;;  %v482_v36 = vadd.f32 %v4832_v33, %v445_v29  ;;  %v483_v37 = vadd.f32 %v4832_v33, %v446_v30  ;;  %v4383_v38 = vld [vmem:[%s5232_s1 + $0x1c0] sm:$0xff]   ;;  %v718_v39 = vld [vmem:[#allocation2 + $0xa9] sm:$0xff] }
  0x67   : > { %893 = vst [vmem:[#allocation3 + $0x1dc] sm:$0xf] %v3813_v23  ;;  %1084 = vst [vmem:[#allocation3 + $0x19c] sm:$0xf] %v3797_v22  ;;  %v3798_v41 = vpack.c.bf16 %v718_v39, %v718_v39  ;;  %v814_v43 = vld [vmem:[#allocation2 + $0xaa] sm:$0xff]  ;;  %4118 = vmatprep.subr.bf16.mxu1 %v4383_v38  ;;  %v4387_v46 = vld [vmem:[%s5232_s1 + $0x180] sm:$0xff]  }
  0x68   : > { %1180 = vst [vmem:[#allocation3 + $0x1a0] sm:$0xf] %v3813_v23  ;;  %vm512_vm8 = vcmp.gt.f32.partialorder %v482_v36, 0.0  ;;  %vm513_vm9 = vcmp.gt.f32.partialorder %v483_v37, 0.0  ;;  %v542_v40 = vmul.f32 0.2, %v482_v36  ;;  %v3814_v45 = vpack.c.bf16 %v814_v43, %v814_v43 }
  0x69   : > { %v543_v42 = vmul.f32 0.2, %v483_v37  ;;  %798 = vst [vmem:[#allocation3 + $0x1fc] sm:$0xf] %v3798_v41  ;;  %1372 = vst [vmem:[#allocation3 + $0x184] sm:$0xf] %v3798_v41  ;;  %4119 = vmatpush3.bf16.msra.mxu1 %v4387_v46 }
  0x6a   : > { %v572_v44 = vsel %vm512_vm8, %v482_v36, %v542_v40  ;;  %1085 = vst [vmem:[#allocation3 + $0x1c0] sm:$0xf] %v3798_v41  ;;  %v4364_v51 = vld [vmem:[#allocation3 + $0x1b0] ss:$36 sps:$4 sm:$0xff]   ;;  %894 = vst [vmem:[#allocation3 + $0x200] sm:$0xf] %v3814_v45 }
  0x6b   : > { %v573_v47 = vsel %vm513_vm9, %v483_v37, %v543_v42  ;;  %602 = vst [vmem:[#allocation2 + $0xc0] sm:$0xff] %v572_v44  ;;  %v3830_v48 = vpack.c.bf16 %v572_v44, %v572_v44  ;;  %1181 = vst [vmem:[#allocation3 + $0x1c4] sm:$0xf] %v3814_v45  ;;  %v4366_v53 = vld [vmem:[#allocation3 + $0x1bc] ss:$36 sps:$4 sm:$0xff]   ;;  %v4409_v1 = vld [vmem:[%s5234_s3 + $0x38] sm:$0xff]  }
  0x6c   : > { %603 = vst [vmem:[#allocation2 + $0xc8] sm:$0xff] %v573_v47  ;;  %v3831_v52 = vpack.c.bf16 %v573_v47, %v573_v47  ;;  %1468 = vst [vmem:[#allocation3 + $0x188] sm:$0xf] %v3814_v45  ;;  %v719_v55 = vld [vmem:[#allocation2 + $0xb1] sm:$0xff]  ;;  %2682 = vmatprep.mubr.bf16.mxu1 %v4366_v53  ;;  %v4386_v59 = vld [vmem:[#allocation3 + $0x14] ss:$36 sps:$4 sm:$0xff]   ;;  %4232 = vmatprep.subr.bf16.mxu1 %v4409_v1 }
  0x6d   : > { %v4360_v50 = vld [vmem:[#allocation3 + $0x1b4] ss:$36 sps:$4 sm:$0xff]   ;;  %991 = vst [vmem:[#allocation3 + $0x204] sm:$0xf] %v3830_v48  ;;  %1278 = vst [vmem:[#allocation3 + $0x1c8] sm:$0xf] %v3830_v48  ;;  %v3799_v57 = vpack.c.bf16 %v719_v55, %v719_v55 }
  0x6e   : > { %v4368_v54 = vld [vmem:[#allocation3 + $0x1b8] ss:$36 sps:$4 sm:$0xff]   ;;  %2585 = vmatprep.mubr.bf16.mxu0 %v4360_v50  ;;  %v815_v56 = vld [vmem:[#allocation2 + $0xb2] sm:$0xff]  ;;  %992 = vst [vmem:[#allocation3 + $0x228] sm:$0xf] %v3831_v52  ;;  %v4408_v13 = vld [vmem:[%s5232_s1 + $0x220] sm:$0xff]  }
  0x6f   : > { %1279 = vst [vmem:[#allocation3 + $0x1ec] sm:$0xf] %v3831_v52  ;;  %2586 = vmatmul.mubr.bf16.gmra.mxu0 %v4364_v51  ;;  %v3815_v58 = vpack.c.bf16 %v815_v56, %v815_v56  ;;  %2683 = vmatmul.mubr.bf16.gmra.mxu1 %v4368_v54  ;;  %799 = vst [vmem:[#allocation3 + $0x220] sm:$0xf] %v3799_v57  ;;  %v4391_v60 = vld [vmem:[#allocation3 + $0x1c] ss:$36 sps:$4 sm:$0xff]  }
  0x70   : > { %1373 = vst [vmem:[#allocation3 + $0x1a8] sm:$0xf] %v3799_v57  ;;  %1086 = vst [vmem:[#allocation3 + $0x1e4] sm:$0xf] %v3799_v57  ;;  %v4376_v62 = vld [vmem:[#allocation3 + $0x1f8] ss:$36 sps:$4 sm:$0xff]  }
  0x71   : > { %895 = vst [vmem:[#allocation3 + $0x224] sm:$0xf] %v3815_v58  ;;  %1182 = vst [vmem:[#allocation3 + $0x1e8] sm:$0xf] %v3815_v58  ;;  %v4384_v2 = vld [vmem:[#allocation3 + $0x10] ss:$36 sps:$4 sm:$0xff]  }
  0x72   : > { %1469 = vst [vmem:[#allocation3 + $0x1ac] sm:$0xf] %v3815_v58  ;;  %v4389_v3 = vld [vmem:[#allocation3 + $0x18] ss:$36 sps:$4 sm:$0xff]   ;;  %v4394_v5 = vld [vmem:[%s5232_s1 + $0x230] sm:$0xff]   ;;  %v4433_v14 = vld [vmem:[%s5234_s3 + $0x20] sm:$0xff]  }
  0x73   : > { %v4392_v4 = vld [vmem:[#allocation3 + $0x5c] ss:$36 sps:$4 sm:$0xff]   ;;  %v4396_v6 = vld [vmem:[#allocation3 + $0x64] ss:$36 sps:$4 sm:$0xff]   ;;  %v4403_v12 = vld [vmem:[#allocation3 + $0xac] ss:$36 sps:$4 sm:$0xff]  }
  0x74   : > { %v4417_v7 = vld [vmem:[%s5234_s3 + $0x30] sm:$0xff]   ;;  %v4401_v8 = vld [vmem:[%s5232_s1 + $0x228] sm:$0xff]   ;;  %v4416_v20 = vld [vmem:[%s5232_s1 + $0x218] sm:$0xff]  }
  0x75   : > { %v4378_v63 = vld [vmem:[#allocation3 + $0x204] ss:$36 sps:$4 sm:$0xff]   ;;  %v4395_v9 = vld [vmem:[#allocation3 + $0x58] ss:$36 sps:$4 sm:$0xff]   ;;  %v410_v15 = vld [vmem:[%s4627_s22 + $0xd0] sm:$0x3] }
  0x76   : > { %v4372_v61 = vld [vmem:[#allocation3 + $0x1fc] ss:$36 sps:$4 sm:$0xff]   ;;  %2690 = vmatprep.mubr.bf16.mxu1 %v4378_v63  ;;  %v4399_v11 = vld [vmem:[#allocation3 + $0xa4] ss:$36 sps:$4 sm:$0xff]   ;;  %v1294_v16 = vld [vmem:[#allocation2 + $0xc1] sm:$0xff]  ;;  %v447_v17 = vmul.f32 %v4819_v28, %v410_v15 }
  0x77   : > { %2593 = vmatprep.mubr.bf16.mxu0 %v4372_v61  ;;  %v4398_v10 = vld [vmem:[#allocation3 + $0x60] ss:$36 sps:$4 sm:$0xff]   ;;  %v4425_v34 = vld [vmem:[%s5234_s3 + $0x28] sm:$0xff]   ;;  %v3892_v18 = vpack.c.bf16 %v1294_v16, %v1294_v16  ;;  %v4405_v22 = vld [vmem:[#allocation3 + $0xa8] ss:$36 sps:$4 sm:$0xff]  }
  0x78   : > { %v4380_v0 = vld [vmem:[#allocation3 + $0x200] ss:$36 sps:$4 sm:$0xff]   ;;  %2594 = vmatmul.mubr.bf16.gmra.mxu0 %v4376_v62  ;;  %v1103_v19 = vld [vmem:[#allocation2 + $0xc2] sm:$0xff]  ;;  %v484_v24 = vadd.f32 %v4832_v33, %v447_v17  ;;  %v4441_v25 = vld [vmem:[%s5234_s3 + $0x18] sm:$0xff]  }
  0x79   : > { %2691 = vmatmul.mubr.bf16.gmra.mxu1 %v4380_v0  ;;  %2731 = vmatprep.mubr.bf16.mxu0 %v4386_v59  ;;  %v4402_v35 = vld [vmem:[#allocation3 + $0xa0] ss:$36 sps:$4 sm:$0xff]   ;;  %v3862_v21 = vpack.c.bf16 %v1103_v19, %v1103_v19  ;;  %v4406_v23 = vld [vmem:[#allocation3 + $0xec] ss:$36 sps:$4 sm:$0xff]   ;;  %1374 = vst [vmem:[#allocation3 + $0x1cc] sm:$0xf] %v3892_v18 }
  0x7a   : > { %2828 = vmatprep.mubr.bf16.mxu1 %v4391_v60  ;;  %1087 = vst [vmem:[#allocation3 + $0x208] sm:$0xf] %v3892_v18  ;;  %v411_v26 = vld [vmem:[%s4627_s22 + $0xd8] sm:$0xff]  ;;  %v412_v27 = vld [vmem:[%s4627_s22 + $0xe0] sm:$0xff]  ;;  %v413_v30 = vld [vmem:[%s4627_s22 + $0xe8] sm:$0x3] }
  0x7b   : > { %v4411_v29 = vld [vmem:[#allocation3 + $0xf4] ss:$36 sps:$4 sm:$0xff]   ;;  %1183 = vst [vmem:[#allocation3 + $0x20c] sm:$0xf] %v3862_v21  ;;  %v448_v31 = vmul.f32 %v4819_v28, %v411_v26  ;;  %v449_v32 = vmul.f32 %v4819_v28, %v412_v27  ;;  %v1378_v36 = vld [vmem:[#allocation2 + $0x32] sm:$0xff]  ;;  %v1379_v37 = vld [vmem:[#allocation2 + $0x3a] sm:$0xff]  ;;  %v450_v40 = vmul.f32 %v4819_v28, %v413_v30 }
  0x7c   : > { %1470 = vst [vmem:[#allocation3 + $0x1d0] sm:$0xf] %v3862_v21  ;;  %v4883_v38 = vld [vmem:[%s5232_s1 + $0x210] sm:$0xff]   ;;  %vm514_vm10 = vcmp.gt.f32.partialorder %v484_v24, 0.0  ;;  %v544_v39 = vmul.f32 0.2, %v484_v24  ;;  %v3896_v41 = vpack.c.bf16 %v1378_v36, %v1378_v36  ;;  %v3897_v44 = vpack.c.bf16 %v1379_v37, %v1379_v37 }
  0x7d   : > { %v485_v42 = vadd.f32 %v4832_v33, %v448_v31  ;;  %v486_v43 = vadd.f32 %v4832_v33, %v449_v32  ;;  %v4891_v45 = vld [vmem:[%s5234_s3 + $0x10] sm:$0xff]   ;;  %v1382_v50 = vld [vmem:[#allocation2 + $0x62] sm:$0xff]  ;;  %v4410_v57 = vld [vmem:[#allocation3 + $0xe8] ss:$36 sps:$4 sm:$0xff]  }
  0x7e   : > { %v1380_v46 = vld [vmem:[#allocation2 + $0x4a] sm:$0xff]  ;;  %v1381_v47 = vld [vmem:[#allocation2 + $0x52] sm:$0xff]  ;;  %v574_v48 = vsel %vm514_vm10, %v484_v24, %v544_v39  ;;  %1458 = vst [vmem:[#allocation3 + $0x20] sm:$0xf] %v3896_v41  ;;  %1459 = vst [vmem:[#allocation3 + $0x44] sm:$0xf] %v3897_v44  ;;  %v3900_v56 = vpack.c.bf16 %v1382_v50, %v1382_v50 }
  0x7f   : > { %v3898_v28 = vpack.c.bf16 %v1380_v46, %v1380_v46  ;;  %v1383_v51 = vld [vmem:[#allocation2 + $0x6a] sm:$0xff]  ;;  %604 = vst [vmem:[#allocation2 + $0xd0] sm:$0x3] %v574_v48  ;;  %vm515_vm11 = vcmp.gt.f32.partialorder %v485_v42, 0.0  ;;  %vm516_vm12 = vcmp.gt.f32.partialorder %v486_v43, 0.0  ;;  %v3899_v55 = vpack.c.bf16 %v1381_v47, %v1381_v47  ;;  %v1384_v61 = vld [vmem:[#allocation2 + $0x7a] sm:$0xff] }
  0x80   : > { %2732 = vmatmul.mubr.bf16.vlgmr.msra.gmra.mxu0 %v4384_v2  ;;  %v545_v52 = vmul.f32 0.2, %v485_v42  ;;  %v546_v53 = vmul.f32 0.2, %v486_v43  ;;  %v4432_v54 = vld [vmem:[%s5232_s1 + $0x208] sm:$0xff]   ;;  %v3901_v60 = vpack.c.bf16 %v1383_v51, %v1383_v51  ;;  %v4452_v16 = vld [vmem:[%s5234_s3] sm:$0xff]  }
  0x81   : > { %4201 = vmatpush3.bf16.msra.mxu0 %v4388_v49  ;;  %2829 = vmatmul.mubr.bf16.vlgmr.msra.gmra.mxu1 %v4389_v3  ;;  %v487_v49 = vadd.f32 %v4832_v33, %v450_v40  ;;  %1460 = vst [vmem:[#allocation3 + $0x68] sm:$0xf] %v3898_v28  ;;  %v1385_v62 = vld [vmem:[#allocation2 + $0x82] sm:$0xff]  ;;  %1461 = vst [vmem:[#allocation3 + $0x8c] sm:$0xf] %v3899_v55  ;;  %v3738_v36 = vld [vmem:[%s4627_s22 + $0x19] sm:$0xff] }
  0x82   : > { %2739 = vmatprep.mubr.bf16.mxu0 %v4392_v4  ;;  %4202 = vmatprep.subr.bf16.mxu0 %v4394_v5  ;;  %v575_v58 = vsel %vm515_vm11, %v485_v42, %v545_v52  ;;  %v576_v59 = vsel %vm516_vm12, %v486_v43, %v546_v53  ;;  %v4413_v63 = vld [vmem:[#allocation3 + $0xf0] ss:$36 sps:$4 sm:$0xff]   ;;  %1462 = vst [vmem:[#allocation3 + $0xb0] sm:$0xf] %v3900_v56  ;;  %1463 = vst [vmem:[#allocation3 + $0xd4] sm:$0xf] %v3901_v60 }
  0x83   : > { %2836 = vmatprep.mubr.bf16.mxu1 %v4396_v6  ;;  %4233 = vmatpush3.bf16.msra.mxu1 %v4409_v1  ;;  %vm517_vm13 = vcmp.gt.f32.partialorder %v487_v49, 0.0  ;;  %v547_v33 = vmul.f32 0.2, %v487_v49  ;;  %605 = vst [vmem:[#allocation2 + $0xd8] sm:$0xff] %v575_v58  ;;  %606 = vst [vmem:[#allocation2 + $0xe0] sm:$0xff] %v576_v59  ;;  %v3878_v1 = vpack.c.bf16 %v575_v58, %v575_v58  ;;  %v4450_v3 = vld [vmem:[%s5234_s3 + $0x8] sm:$0xff]  }
  0x84   : > { %4234 = vmatprep.subr.bf16.mxu1 %v4417_v7  ;;  %v3879_v2 = vpack.c.bf16 %v576_v59, %v576_v59  ;;  %v3902_v4 = vpack.c.bf16 %v1384_v61, %v1384_v61  ;;  %v1386_v6 = vld [vmem:[#allocation2 + $0x92] sm:$0xff]  ;;  %v4418_v17 = vld [vmem:[#allocation3 + $0x130] ss:$36 sps:$4 sm:$0xff]   ;;  %v3742_v28 = vld [vmem:[%s4627_s22 + $0x49] sm:$0xff] }
  0x85   : > { %4203 = vmatpush3.bf16.msra.mxu0 %v4394_v5  ;;  %v577_v0 = vsel %vm517_vm13, %v487_v49, %v547_v33  ;;  %v3903_v5 = vpack.c.bf16 %v1385_v62, %v1385_v62  ;;  %1280 = vst [vmem:[#allocation3 + $0x210] sm:$0xf] %v3878_v1  ;;  %v4429_v30 = vld [vmem:[#allocation3 + $0x180] ss:$36 sps:$4 sm:$0xff]   ;;  %v3739_v37 = vld [vmem:[%s4627_s22 + $0x21] sm:$0xff]  ;;  %v3741_v49 = vld [vmem:[%s4627_s22 + $0x39] sm:$0xff] }
  0x86   : > { %4204 = vmatprep.subr.bf16.mxu0 %v4401_v8  ;;  %607 = vst [vmem:[#allocation2 + $0xe8] sm:$0x3] %v577_v0  ;;  %1281 = vst [vmem:[#allocation3 + $0x234] sm:$0xf] %v3879_v2  ;;  %v4430_v31 = vld [vmem:[#allocation3 + $0x1c4] ss:$36 sps:$4 sm:$0xff]  }
  0x87   : > { %4235 = vmatpush3.bf16.msra.mxu1 %v4417_v7  ;;  %v1387_v7 = vld [vmem:[#allocation2 + $0x9a] sm:$0xff]  ;;  %1464 = vst [vmem:[#allocation3 + $0xf8] sm:$0xf] %v3902_v4  ;;  %1465 = vst [vmem:[#allocation3 + $0x11c] sm:$0xf] %v3903_v5  ;;  %v3740_v48 = vld [vmem:[%s4627_s22 + $0x31] sm:$0xff] }
  0x88   : > { %2740 = vmatmul.mubr.bf16.gmra.mxu0 %v4395_v9  ;;  %4236 = vmatprep.subr.bf16.mxu1 %v4425_v34  ;;  %v3904_v9 = vpack.c.bf16 %v1386_v6, %v1386_v6  ;;  %v4434_v39 = vld [vmem:[#allocation3 + $0x1c0] ss:$36 sps:$4 sm:$0xff]   ;;  %v4437_v40 = vld [vmem:[#allocation3 + $0x1c8] ss:$36 sps:$4 sm:$0xff]   ;;  %v3744_v62 = vld [vmem:[%s4627_s22 + $0x61] sm:$0xff] }
  0x89   : > { %2837 = vmatmul.mubr.bf16.gmra.mxu1 %v4398_v10  ;;  %2747 = vmatprep.mubr.bf16.mxu0 %v4399_v11  ;;  %v3905_v10 = vpack.c.bf16 %v1387_v7, %v1387_v7  ;;  %v4440_v11 = vld [vmem:[%s5232_s1 + $0x200] sm:$0xff]   ;;  %v3743_v50 = vld [vmem:[%s4627_s22 + $0x51] sm:$0xff] }
  0x8a   : > { %4205 = vmatpush3.bf16.msra.mxu0 %v4401_v8  ;;  %2844 = vmatprep.mubr.bf16.mxu1 %v4403_v12  ;;  %v4414_v8 = vld [vmem:[#allocation3 + $0x134] ss:$36 sps:$4 sm:$0xff]   ;;  %1466 = vst [vmem:[#allocation3 + $0x140] sm:$0xf] %v3904_v9  ;;  %v1296_v18 = vld [vmem:[#allocation2 + $0xd9] sm:$0xff] }
  0x8b   : > { %4206 = vmatprep.subr.bf16.mxu0 %v4408_v13  ;;  %4237 = vmatpush3.bf16.msra.mxu1 %v4425_v34  ;;  %v4419_v34 = vld [vmem:[#allocation3 + $0x13c] ss:$36 sps:$4 sm:$0xff]   ;;  %1467 = vst [vmem:[#allocation3 + $0x164] sm:$0xf] %v3905_v10  ;;  %v3746_v0 = vld [vmem:[%s4627_s22 + $0x79] sm:$0xff]  ;;  %v3747_v1 = vld [vmem:[%s4627_s22 + $0x81] sm:$0xff] }
  0x8c   : > { %4238 = vmatprep.subr.bf16.mxu1 %v4433_v14  ;;  %v1295_v12 = vld [vmem:[#allocation2 + $0xc9] sm:$0xff]  ;;  %v4448_v2 = vld [vmem:[#allocation3 + $0x68] ss:$36 sps:$4 sm:$0xff]  }
  0x8d   : > { %v1297_v19 = vld [vmem:[#allocation2 + $0xe1] sm:$0xff]  ;;  %v4446_v53 = vld [vmem:[#allocation3 + $0x20] ss:$36 sps:$4 sm:$0xff]  }
  0x8e   : > { %4207 = vmatpush3.bf16.msra.mxu0 %v4408_v13  ;;  %v1104_v13 = vld [vmem:[#allocation2 + $0xca] sm:$0xff]  ;;  %v3895_v21 = vpack.c.bf16 %v1297_v19, %v1297_v19  ;;  %v1393_v26 = vld [vmem:[#allocation2 + $0xe2] sm:$0xff] }
  0x8f   : > { %4208 = vmatprep.subr.bf16.mxu0 %v4416_v20  ;;  %4239 = vmatpush3.bf16.msra.mxu1 %v4433_v14  ;;  %v3893_v14 = vpack.c.bf16 %v1295_v12, %v1295_v12  ;;  %v3863_v15 = vpack.c.bf16 %v1104_v13, %v1104_v13  ;;  %v3911_v27 = vpack.c.bf16 %v1393_v26, %v1393_v26  ;;  %v4445_v52 = vld [vmem:[#allocation3 + $0x210] ss:$36 sps:$4 sm:$0xff]   ;;  %v3748_v13 = vld [vmem:[%s4627_s22 + $0x91] sm:$0xff] }
  0x90   : > { %2748 = vmatmul.mubr.bf16.gmra.mxu0 %v4402_v35  ;;  %4240 = vmatprep.subr.bf16.mxu1 %v4441_v25  ;;  %v3894_v35 = vpack.c.bf16 %v1296_v18, %v1296_v18  ;;  %1377 = vst [vmem:[#allocation3 + $0x238] sm:$0xf] %v3895_v21 }
  0x91   : > { %2845 = vmatmul.mubr.bf16.gmra.mxu1 %v4405_v22  ;;  %2755 = vmatprep.mubr.bf16.mxu0 %v4406_v23  ;;  %1375 = vst [vmem:[#allocation3 + $0x1f0] sm:$0xf] %v3893_v14  ;;  %1088 = vst [vmem:[#allocation3 + $0x22c] sm:$0xf] %v3893_v14  ;;  %v1392_v22 = vld [vmem:[#allocation2 + $0xda] sm:$0xff] }
  0x92   : > { %2852 = vmatprep.mubr.bf16.mxu1 %v4411_v29  ;;  %4209 = vmatpush3.bf16.msra.mxu0 %v4416_v20  ;;  %1184 = vst [vmem:[#allocation3 + $0x230] sm:$0xf] %v3863_v15  ;;  %1471 = vst [vmem:[#allocation3 + $0x1f4] sm:$0xf] %v3863_v15  ;;  %v4421_v20 = vld [vmem:[#allocation3 + $0x138] ss:$36 sps:$4 sm:$0xff]   ;;  %v3910_v24 = vpack.c.bf16 %v1392_v22, %v1392_v22 }
  0x93   : > { %4210 = vmatprep.subr.bf16.mxu0 %v4883_v38  ;;  %4241 = vmatpush3.bf16.msra.mxu1 %v4441_v25  ;;  %v4422_v23 = vld [vmem:[#allocation3 + $0x17c] ss:$36 sps:$4 sm:$0xff]   ;;  %1376 = vst [vmem:[#allocation3 + $0x214] sm:$0xf] %v3894_v35  ;;  %v4427_v25 = vld [vmem:[#allocation3 + $0x184] ss:$36 sps:$4 sm:$0xff]  }
  0x94   : > { %4242 = vmatprep.subr.bf16.mxu1 %v4891_v45  ;;  %1472 = vst [vmem:[#allocation3 + $0x218] sm:$0xf] %v3910_v24  ;;  %1473 = vst [vmem:[#allocation3 + $0x23c] sm:$0xf] %v3911_v27  ;;  %v4426_v29 = vld [vmem:[#allocation3 + $0x178] ss:$36 sps:$4 sm:$0xff]  }
  0x95   : > { %v3749_v14 = vld [vmem:[%s4627_s22 + $0x99] sm:$0xff]  ;;  %v3750_v15 = vld [vmem:[%s4627_s22 + $0xa9] sm:$0xff] }
  0x96   : > { %4211 = vmatpush3.bf16.msra.mxu0 %v4883_v38  ;;  %v4918_v38 = vld [vmem:[%s5237_s6] ss:$0 sm:$0xff]  ;;  %v4453_v18 = vld [vmem:[#allocation3 + $0x140] ss:$36 sps:$4 sm:$0xff]  }
  0x97   : > { %4212 = vmatprep.subr.bf16.mxu0 %v4432_v54  ;;  %4243 = vmatpush3.bf16.msra.mxu1 %v4891_v45  ;;  %v3093_v43 = vmul.f32 %v4918_v38, %v3738_v36  ;;  %v3094_v44 = vmul.f32 %v4918_v38, %v3739_v37  ;;  %v4925_v45 = vld [vmem:[%s5238_s7] ss:$0 sm:$0xff]  ;;  %v3096_v33 = vmul.f32 %v4918_v38, %v3741_v49 }
  0x98   : > { %2756 = vmatmul.mubr.bf16.gmra.mxu0 %v4410_v57  ;;  %4244 = vmatprep.subr.bf16.mxu1 %v4450_v3  ;;  %v4435_v32 = vld [vmem:[#allocation3 + $0x1cc] ss:$36 sps:$4 sm:$0xff]   ;;  %v3097_v56 = vmul.f32 %v4918_v38, %v3742_v28  ;;  %v3098_v57 = vmul.f32 %v4918_v38, %v3743_v50  ;;  %v3099_v5 = vmul.f32 %v4918_v38, %v3744_v62 }
  0x99   : > { %2853 = vmatmul.mubr.bf16.gmra.mxu1 %v4413_v63  ;;  %2763 = vmatprep.mubr.bf16.mxu0 %v4414_v8  ;;  %v4438_v41 = vld [vmem:[#allocation3 + $0x20c] ss:$36 sps:$4 sm:$0xff]   ;;  %v3116_v46 = vadd.f32 %v4925_v45, %v3093_v43  ;;  %v3117_v47 = vadd.f32 %v4925_v45, %v3094_v44  ;;  %v3119_v59 = vadd.f32 %v4925_v45, %v3096_v33  ;;  %v3745_v63 = vld [vmem:[%s4627_s22 + $0x69] sm:$0xff] }
  0x9a   : > { %2860 = vmatprep.mubr.bf16.mxu1 %v4419_v34  ;;  %4213 = vmatpush3.bf16.msra.mxu0 %v4432_v54  ;;  %v4443_v42 = vld [vmem:[#allocation3 + $0x214] ss:$36 sps:$4 sm:$0xff]   ;;  %v4442_v51 = vld [vmem:[#allocation3 + $0x208] ss:$36 sps:$4 sm:$0xff]   ;;  %v3095_v54 = vmul.f32 %v4918_v38, %v3740_v48  ;;  %v3120_v60 = vadd.f32 %v4925_v45, %v3097_v56  ;;  %v3121_v61 = vadd.f32 %v4925_v45, %v3098_v57  ;;  %v4974_v48 = vld [vmem:[%s5233_s2] ss:$0 sm:$0xff] }
  0x9b   : > { %4214 = vmatprep.subr.bf16.mxu0 %v4440_v11  ;;  %4245 = vmatpush3.bf16.msra.mxu1 %v4450_v3  ;;  %v3132_v55 = vpack.c.bf16 %v3117_v47, %v3116_v46  ;;  %v4449_v3 = vld [vmem:[#allocation3 + $0xb0] ss:$36 sps:$4 sm:$0xff]   ;;  %v3100_v6 = vmul.f32 %v4918_v38, %v3745_v63  ;;  %v3101_v8 = vmul.f32 %v4918_v38, %v3746_v0  ;;  %v4456_v43 = vld [vmem:[#allocation3 + $0x218] ss:$36 sps:$4 sm:$0xff]  }
  0x9c   : > { %4246 = vmatprep.subr.bf16.mxu1 %v4452_v16  ;;  %v3118_v58 = vadd.f32 %v4925_v45, %v3095_v54  ;;  %v3134_v7 = vpack.c.bf16 %v3121_v61, %v3120_v60  ;;  %v3102_v9 = vmul.f32 %v4918_v38, %v3747_v1  ;;  %v3122_v10 = vadd.f32 %v4925_v45, %v3099_v5 }
  0x9d   : > { %v3123_v34 = vadd.f32 %v4925_v45, %v3100_v6  ;;  %v3103_v35 = vmul.f32 %v4918_v38, %v3748_v13  ;;  %v3105_v22 = vmul.f32 %v4918_v38, %v3750_v15 }
  0x9e   : > { %4215 = vmatpush3.bf16.msra.mxu0 %v4440_v11  ;;  %v3133_v4 = vpack.c.bf16 %v3119_v59, %v3118_v58  ;;  %v3124_v11 = vadd.f32 %v4925_v45, %v3101_v8  ;;  %v3125_v12 = vadd.f32 %v4925_v45, %v3102_v9 }
  0x9f   : > { %4247 = vmatpush3.bf16.msra.mxu1 %v4452_v16  ;;  %v3751_v16 = vld [vmem:[%s4627_s22 + $0xb1] sm:$0xff]  ;;  %v3135_v19 = vpack.c.bf16 %v3123_v34, %v3122_v10  ;;  %v3126_v24 = vadd.f32 %v4925_v45, %v3103_v35  ;;  %v3128_v26 = vadd.f32 %v4925_v45, %v3105_v22 }
  0xa0   : > { %2764 = vmatmul.mubr.bf16.gmra.mxu0 %v4418_v17  ;;  %v4451_v17 = vld [vmem:[#allocation3 + $0xf8] ss:$36 sps:$4 sm:$0xff]   ;;  %v3136_v21 = vpack.c.bf16 %v3125_v12, %v3124_v11 }
  0xa1   : > { %2861 = vmatmul.mubr.bf16.gmra.mxu1 %v4421_v20  ;;  %2771 = vmatprep.mubr.bf16.mxu0 %v4422_v23  ;;  %v3104_v20 = vmul.f32 %v4918_v38, %v3749_v14  ;;  %v3106_v23 = vmul.f32 %v4918_v38, %v3751_v16 }
  0xa2   : > { %2868 = vmatprep.mubr.bf16.mxu1 %v4427_v25 }
  0xa3   : > { %v3127_v25 = vadd.f32 %v4925_v45, %v3104_v20  ;;  %v3129_v27 = vadd.f32 %v4925_v45, %v3106_v23 }
  0xa5   : > { %v3137_v36 = vpack.c.bf16 %v3127_v25, %v3126_v24 }
  0xa8   : > { %2772 = vmatmul.mubr.bf16.gmra.mxu0 %v4426_v29  ;;  %v3752_v29 = vld [vmem:[%s4627_s22 + $0xc1] sm:$0xff] }
  0xa9   : > { %2869 = vmatmul.mubr.bf16.gmra.mxu1 %v4429_v30  ;;  %2779 = vmatprep.mubr.bf16.mxu0 %v4430_v31  ;;  %v3753_v30 = vld [vmem:[%s4627_s22 + $0xc9] sm:$0xff]  ;;  %v4454_v31 = vld [vmem:[#allocation3 + $0x188] ss:$36 sps:$4 sm:$0xff]   ;;  %v3107_v37 = vmul.f32 %v4918_v38, %v3752_v29 }
  0xaa   : > { %2876 = vmatprep.mubr.bf16.mxu1 %v4435_v32  ;;  %v4455_v32 = vld [vmem:[#allocation3 + $0x1d0] ss:$36 sps:$4 sm:$0xff]  }
  0xb0   : > { %2780 = vmatmul.mubr.bf16.gmra.mxu0 %v4434_v39  ;;  %v3108_v39 = vmul.f32 %v4918_v38, %v3753_v30 }
  0xb1   : > { %2877 = vmatmul.mubr.bf16.gmra.mxu1 %v4437_v40  ;;  %2787 = vmatprep.mubr.bf16.mxu0 %v4438_v41  ;;  %v3138_v40 = vpack.c.bf16 %v3129_v27, %v3128_v26  ;;  %v3130_v41 = vadd.f32 %v4925_v45, %v3107_v37 }
  0xb2   : > { %2884 = vmatprep.mubr.bf16.mxu1 %v4443_v42  ;;  %v3131_v42 = vadd.f32 %v4925_v45, %v3108_v39 }
  0xb4   : > { %v3139_v44 = vpack.c.bf16 %v3131_v42, %v3130_v41 }
  0xb8   : > { %2788 = vmatmul.mubr.bf16.gmra.mxu0 %v4442_v51 }
  0xb9   : > { %2885 = vmatmul.mubr.bf16.gmra.mxu1 %v4445_v52  ;;  %4216 = vmatprep.mubr.bf16.mxu0 %v4446_v53 }
  0xba   : > { %4248 = vmatprep.mubr.bf16.mxu1 %v3132_v55 }
  0xc0   : > { %4217 = vmatmul.mubr.bf16.vlgmr.msra.gmra.mxu0 %v4448_v2 }
  0xc1   : > { %4220 = vmatprep.mubr.bf16.mxu0 %v4449_v3  ;;  %4249 = vmatmul.mubr.bf16.vlgmr.msra.gmra.mxu1 %v3133_v4 }
  0xc2   : > { %4252 = vmatprep.mubr.bf16.mxu1 %v3134_v7 }
  0xc8   : > { %4221 = vmatmul.mubr.bf16.gmra.mxu0 %v4451_v17 }
  0xc9   : > { %4224 = vmatprep.mubr.bf16.mxu0 %v4453_v18  ;;  %4253 = vmatmul.mubr.bf16.gmra.mxu1 %v3135_v19 }
  0xca   : > { %4256 = vmatprep.mubr.bf16.mxu1 %v3136_v21 }
  0xd0   : > { %4225 = vmatmul.mubr.bf16.gmra.mxu0 %v4454_v31 }
  0xd1   : > { %4228 = vmatprep.mubr.bf16.mxu0 %v4455_v32  ;;  %4257 = vmatmul.mubr.bf16.gmra.mxu1 %v3137_v36 }
  0xd2   : > { %4260 = vmatprep.mubr.bf16.mxu1 %v3138_v40 }
  0xd8   : > { %4229 = vmatmul.mubr.bf16.gmra.mxu0 %v4456_v43 }
  0xd9   : > { %4261 = vmatmul.mubr.bf16.gmra.mxu1 %v3139_v44 }
  0xf3   : > { %v3928_v46 = vpop.f32.mrf.mxu0 }
  0xf4   : > { %v3992_v47 = vpop.f32.mrf.mxu1 }
  0xf5   : > { %v3929_v38 = vpop.f32.mrf.mxu0 }
  0xf6   : > { %v3930_v49 = vadd.f32 %v3929_v38, %v3928_v46  ;;  %v3993_v28 = vpop.f32.mrf.mxu1 }
  0xf7   : > { %v3931_v50 = vpop.f32.mrf.mxu0  ;;  %v3994_v51 = vadd.f32 %v3993_v28, %v3992_v47 }
  0xf8   : > { %v2540_v52 = vadd.f32 %v3930_v49, %v4974_v48  ;;  %v3995_v45 = vpop.f32.mrf.mxu1 }
  0xf9   : > { %v3932_v53 = vpop.f32.mrf.mxu0 }
  0xfa   : > { %v4977_v54 = vadd.f32 %v3994_v51, %v2540_v52  ;;  %v3933_v33 = vadd.f32 %v3932_v53, %v3931_v50  ;;  %v3996_v55 = vpop.f32.mrf.mxu1 }
  0xfb   : > { %v3934_v56 = vpop.f32.mrf.mxu0  ;;  %v3997_v57 = vadd.f32 %v3996_v55, %v3995_v45 }
  0xfc   : > { %v2543_v58 = vadd.f32 %v3933_v33, %v4974_v48 }
  0xfd   : > { %v3998_v59 = vpop.f32.mrf.mxu1  ;;  %v3935_v60 = vpop.f32.mrf.mxu0 }
  0xfe   : > { %v4980_v61 = vadd.f32 %v3997_v57, %v2543_v58  ;;  %v3936_v62 = vadd.f32 %v3935_v60, %v3934_v56 }
  0xff   : > { %v3999_v63 = vpop.f32.mrf.mxu1  ;;  %v3937_v0 = vpop.f32.mrf.mxu0 }
 0x100   : > { %v4000_v1 = vadd.f32 %v3999_v63, %v3998_v59  ;;  %v2548_v2 = vadd.f32 %v3936_v62, %v4974_v48 }
 0x101   : > { %v4001_v3 = vpop.f32.mrf.mxu1  ;;  %v3938_v4 = vpop.f32.mrf.mxu0 }
 0x102   : > { %v4983_v5 = vadd.f32 %v4000_v1, %v2548_v2  ;;  %v3939_v6 = vadd.f32 %v3938_v4, %v3937_v0 }
 0x103   : > { %v4002_v7 = vpop.f32.mrf.mxu1 }
 0x104   : > { %v4003_v9 = vadd.f32 %v4002_v7, %v4001_v3  ;;  %v2551_v10 = vadd.f32 %v3939_v6, %v4974_v48 }
 0x106   : > { %v4986_v12 = vadd.f32 %v4003_v9, %v2551_v10 }
 0x108   : > { %v3940_v8 = vpop.f32.mrf.mxu0 }
 0x109   : > { %v4004_v34 = vpop.f32.mrf.mxu1 }
 0x10a   : > { %v3941_v11 = vpop.f32.mrf.mxu0 }
 0x10b   : > { %v3942_v13 = vadd.f32 %v3941_v11, %v3940_v8  ;;  %v4005_v14 = vpop.f32.mrf.mxu1 }
 0x10c   : > { %v3943_v15 = vpop.f32.mrf.mxu0  ;;  %v4006_v16 = vadd.f32 %v4005_v14, %v4004_v34 }
 0x10d   : > { %v2556_v17 = vadd.f32 %v3942_v13, %v4974_v48  ;;  %v4007_v18 = vpop.f32.mrf.mxu1 }
 0x10e   : > { %v3944_v19 = vpop.f32.mrf.mxu0 }
 0x10f   : > { %v4989_v35 = vadd.f32 %v4006_v16, %v2556_v17  ;;  %v3945_v20 = vadd.f32 %v3944_v19, %v3943_v15  ;;  %v4008_v21 = vpop.f32.mrf.mxu1 }
 0x110   : > { %v3946_v22 = vpop.f32.mrf.mxu0  ;;  %v4009_v23 = vadd.f32 %v4008_v21, %v4007_v18 }
 0x111   : > { %v2559_v24 = vadd.f32 %v3945_v20, %v4974_v48 }
 0x112   : > { %v4010_v25 = vpop.f32.mrf.mxu1  ;;  %v3947_v26 = vpop.f32.mrf.mxu0 }
 0x113   : > { %v4992_v27 = vadd.f32 %v4009_v23, %v2559_v24  ;;  %v3948_v29 = vadd.f32 %v3947_v26, %v3946_v22 }
 0x114   : > { %v4011_v30 = vpop.f32.mrf.mxu1  ;;  %v3949_v31 = vpop.f32.mrf.mxu0 }
 0x115   : > { %v4012_v32 = vadd.f32 %v4011_v30, %v4010_v25  ;;  %v2564_v36 = vadd.f32 %v3948_v29, %v4974_v48 }
 0x116   : > { %v4013_v37 = vpop.f32.mrf.mxu1  ;;  %v3950_v39 = vpop.f32.mrf.mxu0 }
 0x117   : > { %v4995_v40 = vadd.f32 %v4012_v32, %v2564_v36  ;;  %v3951_v41 = vadd.f32 %v3950_v39, %v3949_v31 }
 0x118   : > { %v4014_v42 = vpop.f32.mrf.mxu1  ;;  %v3952_v43 = vpop.f32.mrf.mxu0 }
 0x119   : > { %v4015_v44 = vadd.f32 %v4014_v42, %v4013_v37  ;;  %v2567_v46 = vadd.f32 %v3951_v41, %v4974_v48 }
 0x11a   : > { %v4016_v47 = vpop.f32.mrf.mxu1  ;;  %v3953_v38 = vpop.f32.mrf.mxu0 }
 0x11b   : > { %v4998_v49 = vadd.f32 %v4015_v44, %v2567_v46  ;;  %v3954_v28 = vadd.f32 %v3953_v38, %v3952_v43 }
 0x11c   : > { %v4017_v50 = vpop.f32.mrf.mxu1  ;;  %v3955_v51 = vpop.f32.mrf.mxu0 }
 0x11d   : > { %v4018_v52 = vadd.f32 %v4017_v50, %v4016_v47  ;;  %v2572_v45 = vadd.f32 %v3954_v28, %v4974_v48 }
 0x11e   : > { %v4019_v53 = vpop.f32.mrf.mxu1  ;;  %v3956_v33 = vpop.f32.mrf.mxu0 }
 0x11f   : > { %v5001_v55 = vadd.f32 %v4018_v52, %v2572_v45  ;;  %v3957_v56 = vadd.f32 %v3956_v33, %v3955_v51 }
 0x120   : > { %v4020_v57 = vpop.f32.mrf.mxu1 }
 0x121   : > { %v4021_v59 = vadd.f32 %v4020_v57, %v4019_v53  ;;  %v2575_v60 = vadd.f32 %v3957_v56, %v4974_v48 }
 0x123   : > { %v3958_v58 = vpop.f32.mrf.mxu0  ;;  %v4022_v62 = vpop.f32.mrf.mxu1  ;;  %v5004_v0 = vadd.f32 %v4021_v59, %v2575_v60 }
 0x125   : > { %v3959_v63 = vpop.f32.mrf.mxu0  ;;  %5242 = vst [vmem:[#allocation4_spill] sm:$0xff] %v5004_v0  ;;  %v4023_v2 = vpop.f32.mrf.mxu1 }
 0x126   : > { %v3960_v1 = vadd.f32 %v3959_v63, %v3958_v58  ;;  %v4024_v4 = vadd.f32 %v4023_v2, %v4022_v62 }
 0x127   : > { %v3961_v3 = vpop.f32.mrf.mxu0  ;;  %v4025_v7 = vpop.f32.mrf.mxu1 }
 0x128   : > { %v2580_v6 = vadd.f32 %v3960_v1, %v4974_v48 }
 0x129   : > { %v3962_v8 = vpop.f32.mrf.mxu0  ;;  %v4026_v34 = vpop.f32.mrf.mxu1 }
 0x12a   : > { %v5007_v9 = vadd.f32 %v4024_v4, %v2580_v6  ;;  %v3963_v10 = vadd.f32 %v3962_v8, %v3961_v3  ;;  %v4027_v11 = vadd.f32 %v4026_v34, %v4025_v7 }
 0x12c   : > { %v2583_v13 = vadd.f32 %v3963_v10, %v4974_v48 }
 0x12e   : > { %v5010_v16 = vadd.f32 %v4027_v11, %v2583_v13 }
 0x12f   : > { %v3964_v14 = vpop.f32.mrf.mxu0  ;;  %v4028_v15 = vpop.f32.mrf.mxu1 }
 0x130   : > { %5243 = vst [vmem:[#allocation5_spill] sm:$0xff] %v5010_v16 }
 0x131   : > { %v3965_v17 = vpop.f32.mrf.mxu0  ;;  %v4029_v19 = vpop.f32.mrf.mxu1 }
 0x132   : > { %v3966_v18 = vadd.f32 %v3965_v17, %v3964_v14  ;;  %v4030_v21 = vadd.f32 %v4029_v19, %v4028_v15 }
 0x133   : > { %v3967_v20 = vpop.f32.mrf.mxu0  ;;  %v4031_v23 = vpop.f32.mrf.mxu1 }
 0x134   : > { %v2588_v22 = vadd.f32 %v3966_v18, %v4974_v48 }
 0x135   : > { %v3968_v24 = vpop.f32.mrf.mxu0  ;;  %v4032_v29 = vpop.f32.mrf.mxu1 }
 0x136   : > { %v5013_v25 = vadd.f32 %v4030_v21, %v2588_v22  ;;  %v3969_v26 = vadd.f32 %v3968_v24, %v3967_v20  ;;  %v4033_v30 = vadd.f32 %v4032_v29, %v4031_v23 }
 0x138   : > { %5244 = vst [vmem:[#allocation6_spill] sm:$0xff] %v5013_v25  ;;  %v2591_v31 = vadd.f32 %v3969_v26, %v4974_v48  ;;  %v3970_v36 = vpop.f32.mrf.mxu0 }
 0x139   : > { %v4034_v37 = vpop.f32.mrf.mxu1 }
 0x13a   : > { %v5016_v32 = vadd.f32 %v4033_v30, %v2591_v31  ;;  %v3971_v39 = vpop.f32.mrf.mxu0 }
 0x13b   : > { %v3972_v41 = vadd.f32 %v3971_v39, %v3970_v36  ;;  %v4035_v42 = vpop.f32.mrf.mxu1 }
 0x13c   : > { %5245 = vst [vmem:[#allocation7_spill] sm:$0xff] %v5016_v32  ;;  %v3973_v43 = vpop.f32.mrf.mxu0  ;;  %v4036_v44 = vadd.f32 %v4035_v42, %v4034_v37 }
 0x13d   : > { %v2596_v46 = vadd.f32 %v3972_v41, %v4974_v48  ;;  %v4037_v47 = vpop.f32.mrf.mxu1 }
 0x13e   : > { %v3974_v38 = vpop.f32.mrf.mxu0 }
 0x13f   : > { %v5019_v28 = vadd.f32 %v4036_v44, %v2596_v46  ;;  %v3975_v50 = vadd.f32 %v3974_v38, %v3973_v43  ;;  %v4038_v51 = vpop.f32.mrf.mxu1 }
 0x140   : > { %v4039_v52 = vadd.f32 %v4038_v51, %v4037_v47  ;;  %v4056_v45 = vpop.f32.mrf.mxu0 }
 0x141   : > { %5246 = vst [vmem:[#allocation8_spill] sm:$0xff] %v5019_v28  ;;  %v2599_v53 = vadd.f32 %v3975_v50, %v4974_v48  ;;  %v5022_v33 = vpop.f32.mrf.mxu1 }
 0x142   : > { %v4057_v56 = vpop.f32.mrf.mxu0 }
 0x143   : > { %v5024_v57 = vadd.f32 %v4039_v52, %v2599_v53  ;;  %v5026_v58 = vpop.f32.mrf.mxu1 }
 0x144   : > { %v5028_v59 = vpop.f32.mrf.mxu0 }
 0x145   : > { %5247 = vst [vmem:[#allocation9_spill] sm:$0xff] %v5024_v57  ;;  %v5030_v60 = vpop.f32.mrf.mxu1 }
 0x146   : > { %v4060_v62 = vpop.f32.mrf.mxu0 }
 0x147   : > { %v5032_v63 = vpop.f32.mrf.mxu1 }
 0x148   : > { %v4062_v1 = vpop.f32.mrf.mxu0 }
 0x149   : > { %v4126_v2 = vpop.f32.mrf.mxu1 }
 0x14a   : > { %v4063_v3 = vpop.f32.mrf.mxu0 }
 0x14b   : > { %v4127_v4 = vpop.f32.mrf.mxu1 }
 0x14c   : > { %v4065_v6 = vpop.f32.mrf.mxu0 }
 0x14d   : > { %v4129_v48 = vpop.f32.mrf.mxu1 }
 0x14e   : > { %v4066_v7 = vpop.f32.mrf.mxu0 }
 0x14f   : > { %v4130_v8 = vpop.f32.mrf.mxu1 }
 0x150   : > { %v4068_v10 = vpop.f32.mrf.mxu0 }
 0x151   : > { %v5034_v34 = vpop.f32.mrf.mxu1 }
 0x152   : > { %v4069_v11 = vpop.f32.mrf.mxu0 }
 0x153   : > { %v5036_v13 = vpop.f32.mrf.mxu1 }
 0x154   : > { %v5038_v14 = vpop.f32.mrf.mxu0 }
 0x155   : > { %v5040_v15 = vpop.f32.mrf.mxu1 }
 0x156   : > { %v5042_v17 = vpop.f32.mrf.mxu0 }
 0x157   : > { %v5044_v18 = vpop.f32.mrf.mxu1 }
 0x158   : > { %v4074_v19 = vpop.f32.mrf.mxu0 }
 0x159   : > { %v5046_v20 = vpop.f32.mrf.mxu1 }
 0x15a   : > { %v4075_v21 = vpop.f32.mrf.mxu0 }
 0x15b   : > { %v5048_v22 = vpop.f32.mrf.mxu1 }
 0x15c   : > { %v4077_v23 = vpop.f32.mrf.mxu0 }
 0x15d   : > { %v5050_v24 = vpop.f32.mrf.mxu1 }
 0x15e   : > { %v4078_v26 = vpop.f32.mrf.mxu0 }
 0x15f   : > { %v5052_v29 = vpop.f32.mrf.mxu1 }
 0x160   : > { %v5054_v30 = vpop.f32.mrf.mxu0 }
 0x161   : > { %v5056_v31 = vpop.f32.mrf.mxu1 }
 0x162   : > { %v5058_v36 = vpop.f32.mrf.mxu0 }
 0x163   : > { %v5060_v37 = vpop.f32.mrf.mxu1 }
 0x164   : > { %v5062_v39 = vpop.f32.mrf.mxu0 }
 0x165   : > { %5248 = vst [vmem:[#allocation10_spill] sm:$0xff] %v5062_v39  ;;  %v5064_v41 = vpop.f32.mrf.mxu1  ;;  %v4067_v39 = vadd.f32 %v4066_v7, %v4065_v6 }
 0x166   : > { %5249 = vst [vmem:[#allocation11_spill] sm:$0xff] %v5064_v41  ;;  %v5066_v42 = vpop.f32.mrf.mxu0 }
 0x167   : > { %5250 = vst [vmem:[#allocation12_spill] sm:$0xff] %v5066_v42  ;;  %v5068_v43 = vpop.f32.mrf.mxu1 }
 0x168   : > { %5251 = vst [vmem:[#allocation13_spill] sm:$0xff] %v5068_v43  ;;  %v5070_v44 = vpop.f32.mrf.mxu0 }
 0x169   : > { %v5072_v46 = vpop.f32.mrf.mxu1 }
 0x16a   : > { %v5074_v47 = vpop.f32.mrf.mxu0 }
 0x16b   : > { %v5076_v38 = vpop.f32.mrf.mxu1 }
 0x16c   : > { %v5078_v50 = vpop.f32.mrf.mxu0 }
 0x16d   : > { %v5080_v51 = vpop.f32.mrf.mxu1 }
 0x16e   : > { %5252 = vst [vmem:[#allocation14_spill] sm:$0xff] %v5080_v51  ;;  %v5082_v52 = vpop.f32.mrf.mxu0  ;;  %v4064_v51 = vadd.f32 %v4063_v3, %v4062_v1  ;;  %v4122_v1 = vadd.f32 %v5026_v58, %v5022_v33  ;;  %v4061_v3 = vadd.f32 %v4060_v62, %v5028_v59  ;;  %v4125_v58 = vadd.f32 %v5032_v63, %v5030_v60 }
 0x16f   : > { %v5084_v53 = vpop.f32.mrf.mxu1  ;;  %v4079_v62 = vadd.f32 %v4078_v26, %v4077_v23  ;;  %v4073_v63 = vadd.f32 %v5042_v17, %v5038_v14  ;;  %v4143_v26 = vadd.f32 %v5052_v29, %v5050_v24 }
 0x170   : > { %5253 = vst [vmem:[#allocation15_spill] sm:$0xff] %v5084_v53  ;;  %v5086_v32 = vpop.f32.mrf.mxu0  ;;  %v4058_v53 = vadd.f32 %v4057_v56, %v4056_v45 }
 0x171   : > { %5254 = vst [vmem:[#allocation16_spill] sm:$0xff] %v5086_v32  ;;  %v5088_v57 = vpop.f32.mrf.mxu1 }
 0x172   : > { %5255 = vst [vmem:[#allocation17_spill] sm:$0xff] %v5088_v57  ;;  %v5090_v25 = vpop.f32.mrf.mxu0 }
 0x173   : > { %5256 = vst [vmem:[#allocation18_spill] sm:$0xff] %v5090_v25  ;;  %v5092_v28 = vpop.f32.mrf.mxu1  ;;  %v2742_v25 = vadd.f32 %v4064_v51, %v4983_v5  ;;  %v2745_v5 = vadd.f32 %v4067_v39, %v4986_v12  ;;  %v2737_v12 = vadd.f32 %v4061_v3, %v4980_v61  ;;  %v2753_v39 = vadd.f32 %v4073_v63, %v4992_v27 }
 0x174   : > { %5257 = vst [vmem:[#allocation19_spill] sm:$0xff] %v5092_v28  ;;  %v5094_v43 = vpop.f32.mrf.mxu0  ;;  %v4128_v28 = vadd.f32 %v4127_v4, %v4126_v2  ;;  %v4131_v2 = vadd.f32 %v4130_v8, %v4129_v48  ;;  %v4076_v4 = vadd.f32 %v4075_v21, %v4074_v19  ;;  %v4137_v51 = vadd.f32 %v5044_v18, %v5040_v15 }
 0x175   : > { %5258 = vst [vmem:[#allocation20_spill] sm:$0xff] %v5094_v43  ;;  %v5096_v41 = vpop.f32.mrf.mxu1  ;;  %v2834_v23 = vadd.f32 %v4125_v58, %v2737_v12  ;;  %v4152_v27 = vadd.f32 %v5076_v38, %v5072_v46  ;;  %v4091_v15 = vadd.f32 %v5082_v52, %v5078_v50  ;;  %v5261_v46 = vld [vmem:[#allocation10_spill] sm:$0xff]  ;;  %v5262_v38 = vld [vmem:[#allocation12_spill] sm:$0xff] }
 0x176   : > { %5259 = vst [vmem:[#allocation21_spill] sm:$0xff] %v5096_v41  ;;  %v5098_v0 = vpop.f32.mrf.mxu0  ;;  %v2839_v7 = vadd.f32 %v4128_v28, %v2742_v25  ;;  %v2758_v8 = vadd.f32 %v4076_v4, %v4995_v40  ;;  %v2842_v61 = vadd.f32 %v4131_v2, %v2745_v5  ;;  %v4085_v12 = vadd.f32 %v5262_v38, %v5261_v46 }
 0x177   : > { %5260 = vst [vmem:[#allocation22_spill] sm:$0xff] %v5098_v0  ;;  %v5100_v16 = vpop.f32.mrf.mxu1  ;;  %v2734_v0 = vadd.f32 %v4058_v53, %v4977_v54  ;;  %v4070_v54 = vadd.f32 %v4069_v11, %v4068_v10  ;;  %v4140_v10 = vadd.f32 %v5048_v22, %v5046_v20  ;;  %v2761_v22 = vadd.f32 %v4079_v62, %v4998_v49 }
 0x178   : > { %v5102_v42 = vpop.f32.mrf.mxu0  ;;  %v4082_v49 = vadd.f32 %v5058_v36, %v5054_v30  ;;  %v2850_v52 = vadd.f32 %v4137_v51, %v2753_v39 }
 0x179   : > { %v5104_v32 = vpop.f32.mrf.mxu1  ;;  %v2831_v28 = vadd.f32 %v4122_v1, %v2734_v0  ;;  %v2750_v60 = vadd.f32 %v4070_v54, %v4989_v35  ;;  %v4134_v0 = vadd.f32 %v5036_v13, %v5034_v34  ;;  %v4088_v35 = vadd.f32 %v5074_v47, %v5070_v44 }
 0x17a   : > { %v5106_v57 = vpop.f32.mrf.mxu0  ;;  %v2855_v14 = vadd.f32 %v4140_v10, %v2758_v8  ;;  %v2858_v30 = vadd.f32 %v4143_v26, %v2761_v22  ;;  %v5265_v10 = vld [vmem:[#allocation15_spill] sm:$0xff]  ;;  %v5268_v22 = vld [vmem:[#allocation13_spill] sm:$0xff] }
 0x17b   : > { %v5109_v43 = vpop.f32.mrf.mxu1  ;;  %v2847_v24 = vadd.f32 %v4134_v0, %v2750_v60  ;;  %v2774_v5 = vadd.f32 %v4088_v35, %v5007_v9  ;;  %v4146_v9 = vadd.f32 %v5060_v37, %v5056_v31  ;;  %v4100_v31 = vadd.f32 %v5106_v57, %v5102_v42  ;;  %v5269_v35 = vld [vmem:[#allocation16_spill] sm:$0xff] }
 0x17c   : > { %v5111_v41 = vpop.f32.mrf.mxu0 }
 0x17d   : > { %v5117_v45 = vpop.f32.mrf.mxu1 }
 0x17e   : > { %v5120_v56 = vpop.f32.mrf.mxu0 }
 0x17f   : > { %v5123_v6 = vpop.f32.mrf.mxu1 }
 0x180   : > { %v4218_v33 = vpop.f32.mrf.mxu0 }
 0x181   : > { %v2936_v25 = vadd.f32 %v4218_v33, %v2839_v7  ;;  %v4250_v59 = vpop.f32.mrf.mxu1  ;;  %v2766_v33 = vadd.f32 %v4082_v49, %v5001_v55  ;;  %v5264_v55 = vld [vmem:[#allocation14_spill] sm:$0xff] }
 0x182   : > { %v2927_v48 = vpop.f32.mrf.mxu0  ;;  %3303 = vst [vmem:[%s5128_s21 + $0x10] sm:$0xff] %v4250_v59 }
 0x183   : > { %2992 = vst [vmem:[%s5133_s25 + $0x10] sm:$0xff] %v2936_v25  ;;  %v2928_v11 = vadd.f32 %v2927_v48, %v2831_v28  ;;  %v3238_v19 = vpop.f32.mrf.mxu1  ;;  %v3029_v36 = vmul.f32 %v2936_v25, %v2936_v25  ;;  %v5263_v48 = vld [vmem:[#allocation5_spill] sm:$0xff]  ;;  %v2863_v42 = vadd.f32 %v4146_v9, %v2766_v33 }
 0x184   : > { %v4219_v21 = vpop.f32.mrf.mxu0  ;;  %3301 = vst [vmem:[%s5128_s21] sm:$0xff] %v3238_v19  ;;  %v2777_v8 = vadd.f32 %v4091_v15, %v5263_v48 }
 0x185   : > { %2990 = vst [vmem:[%s5133_s25] sm:$0xff] %v2928_v11  ;;  %v2939_v40 = vadd.f32 %v4219_v21, %v2842_v61  ;;  %v4251_v20 = vpop.f32.mrf.mxu1  ;;  %v3027_v29 = vmul.f32 %v2928_v11, %v2928_v11  ;;  %v2871_v61 = vadd.f32 %v4152_v27, %v2774_v5 }
 0x186   : > { %v2930_v34 = vpop.f32.mrf.mxu0  ;;  %3304 = vst [vmem:[%s5128_s21 + $0x18] sm:$0xff] %v4251_v20  ;;  %v5267_v20 = vld [vmem:[#allocation11_spill] sm:$0xff] }
 0x187   : > { %2993 = vst [vmem:[%s5133_s25 + $0x18] sm:$0xff] %v2939_v40  ;;  %v2931_v13 = vadd.f32 %v2930_v34, %v2834_v23  ;;  %v3241_v17 = vpop.f32.mrf.mxu1  ;;  %v3030_v58 = vmul.f32 %v2939_v40, %v2939_v40  ;;  %v4149_v26 = vadd.f32 %v5268_v22, %v5267_v20  ;;  %v5270_v34 = vld [vmem:[#allocation18_spill] sm:$0xff] }
 0x188   : > { %v4222_v53 = vpop.f32.mrf.mxu0  ;;  %3302 = vst [vmem:[%s5128_s21 + $0x8] sm:$0xff] %v3241_v17 }
 0x189   : > { %2991 = vst [vmem:[%s5133_s25 + $0x8] sm:$0xff] %v2931_v13  ;;  %v3006_v44 = vadd.f32 %v2931_v13, %v2928_v11  ;;  %v3028_v47 = vmul.f32 %v2931_v13, %v2931_v13  ;;  %v2952_v1 = vadd.f32 %v4222_v53, %v2855_v14  ;;  %v4254_v3 = vpop.f32.mrf.mxu1  ;;  %v4155_v11 = vadd.f32 %v5265_v10, %v5264_v55  ;;  %v5271_v53 = vld [vmem:[#allocation8_spill] sm:$0xff] }
 0x18a   : > { %v2943_v18 = vpop.f32.mrf.mxu0  ;;  %3307 = vst [vmem:[%s5128_s21 + $0x30] sm:$0xff] %v4254_v3  ;;  %v4094_v13 = vadd.f32 %v5270_v34, %v5269_v35 }
 0x18b   : > { %v3007_v2 = vadd.f32 %v3006_v44, %v2936_v25  ;;  %v3043_v4 = vadd.f32 %v3028_v47, %v3027_v29  ;;  %2996 = vst [vmem:[%s5133_s25 + $0x30] sm:$0xff] %v2952_v1  ;;  %v2944_v7 = vadd.f32 %v2943_v18, %v2847_v24  ;;  %v3254_v54 = vpop.f32.mrf.mxu1  ;;  %v2790_v24 = vadd.f32 %v4100_v31, %v5271_v53  ;;  %v5279_v31 = vld [vmem:[#allocation21_spill] sm:$0xff] }
 0x18c   : > { %v4223_v50 = vpop.f32.mrf.mxu0  ;;  %3305 = vst [vmem:[%s5128_s21 + $0x20] sm:$0xff] %v3254_v54  ;;  %v4164_v29 = vadd.f32 %v5109_v43, %v5104_v32  ;;  %v4103_v44 = vadd.f32 %v5120_v56, %v5111_v41  ;;  %v2874_v3 = vadd.f32 %v4155_v11, %v2777_v8  ;;  %v3033_v5 = vmul.f32 %v2952_v1, %v2952_v1  ;;  %v5275_v43 = vld [vmem:[#allocation20_spill] sm:$0xff]  ;;  %v5276_v54 = vld [vmem:[#allocation22_spill] sm:$0xff] }
 0x18d   : > { %v3044_v28 = vadd.f32 %v3043_v4, %v3029_v36  ;;  %2994 = vst [vmem:[%s5133_s25 + $0x20] sm:$0xff] %v2944_v7  ;;  %v3008_v25 = vadd.f32 %v3007_v2, %v2939_v40  ;;  %v2955_v59 = vadd.f32 %v4223_v50, %v2858_v30  ;;  %v4255_v62 = vpop.f32.mrf.mxu1  ;;  %v3031_v60 = vmul.f32 %v2944_v7, %v2944_v7  ;;  %v5266_v40 = vld [vmem:[#allocation4_spill] sm:$0xff]  ;;  %v5272_v36 = vld [vmem:[#allocation6_spill] sm:$0xff]  ;;  %v5273_v4 = vld [vmem:[#allocation17_spill] sm:$0xff] }
 0x18e   : > { %v2946_v37 = vpop.f32.mrf.mxu0  ;;  %3308 = vst [vmem:[%s5128_s21 + $0x38] sm:$0xff] %v4255_v62  ;;  %v2769_v23 = vadd.f32 %v4085_v12, %v5266_v40  ;;  %v2782_v2 = vadd.f32 %v4094_v13, %v5272_v36  ;;  %v4097_v33 = vadd.f32 %v5276_v54, %v5275_v43  ;;  %v5277_v50 = vld [vmem:[#allocation9_spill] sm:$0xff] }
 0x18f   : > { %v3009_v19 = vadd.f32 %v3008_v25, %v2944_v7  ;;  %v3045_v0 = vadd.f32 %v3044_v28, %v3030_v58  ;;  %2997 = vst [vmem:[%s5133_s25 + $0x38] sm:$0xff] %v2955_v59  ;;  %v2947_v63 = vadd.f32 %v2946_v37, %v2850_v52  ;;  %v3257_v21 = vpop.f32.mrf.mxu1  ;;  %v5274_v7 = vld [vmem:[#allocation19_spill] sm:$0xff]  ;;  %v3034_v9 = vmul.f32 %v2955_v59, %v2955_v59 }
 0x190   : > { %v4226_v57 = vpop.f32.mrf.mxu0  ;;  %3306 = vst [vmem:[%s5128_s21 + $0x28] sm:$0xff] %v3257_v21  ;;  %v4158_v32 = vadd.f32 %v5274_v7, %v5273_v4  ;;  %v2866_v56 = vadd.f32 %v4149_v26, %v2769_v23  ;;  %v2793_v52 = vadd.f32 %v4103_v44, %v5277_v50  ;;  %v4167_v58 = vadd.f32 %v5123_v6, %v5117_v45 }
 0x191   : > { %v3046_v14 = vadd.f32 %v3045_v0, %v3031_v60  ;;  %2995 = vst [vmem:[%s5133_s25 + $0x28] sm:$0xff] %v2947_v63  ;;  %v3010_v17 = vadd.f32 %v3009_v19, %v2947_v63  ;;  %v3032_v39 = vmul.f32 %v2947_v63, %v2947_v63  ;;  %v2968_v51 = vadd.f32 %v4226_v57, %v2871_v61  ;;  %v4258_v49 = vpop.f32.mrf.mxu1 }
 0x192   : > { %v2959_v47 = vpop.f32.mrf.mxu0  ;;  %3311 = vst [vmem:[%s5128_s21 + $0x50] sm:$0xff] %v4258_v49  ;;  %v2887_v25 = vadd.f32 %v4164_v29, %v2790_v24  ;;  %v4161_v37 = vadd.f32 %v5100_v16, %v5279_v31  ;;  %v2879_v19 = vadd.f32 %v4158_v32, %v2782_v2  ;;  %v2890_v40 = vadd.f32 %v4167_v58, %v2793_v52 }
 0x193   : > { %v3011_v27 = vadd.f32 %v3010_v17, %v2952_v1  ;;  %v3047_v15 = vadd.f32 %v3046_v14, %v3032_v39  ;;  %3000 = vst [vmem:[%s5133_s25 + $0x50] sm:$0xff] %v2968_v51  ;;  %v2960_v18 = vadd.f32 %v2959_v47, %v2863_v42  ;;  %v3270_v30 = vpop.f32.mrf.mxu1  ;;  %v3037_v23 = vmul.f32 %v2968_v51, %v2968_v51 }
 0x194   : > { %v4227_v41 = vpop.f32.mrf.mxu0  ;;  %3309 = vst [vmem:[%s5128_s21 + $0x40] sm:$0xff] %v3270_v30 }
 0x195   : > { %v3048_v46 = vadd.f32 %v3047_v15, %v3033_v5  ;;  %2998 = vst [vmem:[%s5133_s25 + $0x40] sm:$0xff] %v2960_v18  ;;  %v3012_v1 = vadd.f32 %v3011_v27, %v2955_v59  ;;  %v2971_v38 = vadd.f32 %v4227_v41, %v2874_v3  ;;  %v4259_v12 = vpop.f32.mrf.mxu1  ;;  %v3035_v48 = vmul.f32 %v2960_v18, %v2960_v18  ;;  %v5278_v59 = vld [vmem:[#allocation7_spill] sm:$0xff] }
 0x196   : > { %v2962_v28 = vpop.f32.mrf.mxu0  ;;  %3312 = vst [vmem:[%s5128_s21 + $0x58] sm:$0xff] %v4259_v12  ;;  %v2785_v11 = vadd.f32 %v4097_v33, %v5278_v59 }
 0x197   : > { %v3013_v62 = vadd.f32 %v3012_v1, %v2960_v18  ;;  %v3049_v8 = vadd.f32 %v3048_v46, %v3034_v9  ;;  %3001 = vst [vmem:[%s5133_s25 + $0x58] sm:$0xff] %v2971_v38  ;;  %v2963_v55 = vadd.f32 %v2962_v28, %v2866_v56  ;;  %v3273_v10 = vpop.f32.mrf.mxu1  ;;  %v3038_v13 = vmul.f32 %v2971_v38, %v2971_v38 }
 0x198   : > { %v4230_v61 = vpop.f32.mrf.mxu0  ;;  %3310 = vst [vmem:[%s5128_s21 + $0x48] sm:$0xff] %v3273_v10  ;;  %v2882_v34 = vadd.f32 %v4161_v37, %v2785_v11 }
 0x199   : > { %v3050_v45 = vadd.f32 %v3049_v8, %v3035_v48  ;;  %2999 = vst [vmem:[%s5133_s25 + $0x48] sm:$0xff] %v2963_v55  ;;  %v3014_v6 = vadd.f32 %v3013_v62, %v2963_v55  ;;  %v3036_v60 = vmul.f32 %v2963_v55, %v2963_v55  ;;  %v2984_v0 = vadd.f32 %v4230_v61, %v2887_v25  ;;  %v4262_v63 = vpop.f32.mrf.mxu1 }
 0x19a   : > { %v2975_v21 = vpop.f32.mrf.mxu0  ;;  %3315 = vst [vmem:[%s5128_s21 + $0x70] sm:$0xff] %v4262_v63 }
 0x19b   : > { %v3015_v20 = vadd.f32 %v3014_v6, %v2968_v51  ;;  %v3051_v22 = vadd.f32 %v3050_v45, %v3036_v60  ;;  %3004 = vst [vmem:[%s5133_s25 + $0x70] sm:$0xff] %v2984_v0  ;;  %v2976_v16 = vadd.f32 %v2975_v21, %v2879_v19  ;;  %v3286_v26 = vpop.f32.mrf.mxu1  ;;  %v3041_v5 = vmul.f32 %v2984_v0, %v2984_v0 }
 0x19c   : > { %v4231_v35 = vpop.f32.mrf.mxu0  ;;  %3313 = vst [vmem:[%s5128_s21 + $0x60] sm:$0xff] %v3286_v26 }
 0x19d   : > { %v3052_v57 = vadd.f32 %v3051_v22, %v3037_v23  ;;  %3002 = vst [vmem:[%s5133_s25 + $0x60] sm:$0xff] %v2976_v16  ;;  %v3016_v42 = vadd.f32 %v3015_v20, %v2971_v38  ;;  %v2987_v14 = vadd.f32 %v4231_v35, %v2890_v40  ;;  %v4263_v17 = vpop.f32.mrf.mxu1  ;;  %v3039_v51 = vmul.f32 %v2976_v16, %v2976_v16 }
 0x19e   : > { %v2978_v39 = vpop.f32.mrf.mxu0  ;;  %3316 = vst [vmem:[%s5128_s21 + $0x78] sm:$0xff] %v4263_v17 }
 0x19f   : > { %v3017_v49 = vadd.f32 %v3016_v42, %v2976_v16  ;;  %v3053_v53 = vadd.f32 %v3052_v57, %v3038_v13  ;;  %3005 = vst [vmem:[%s5133_s25 + $0x78] sm:$0xff] %v2987_v14  ;;  %v2979_v24 = vadd.f32 %v2978_v39, %v2882_v34  ;;  %v3289_v29 = vpop.f32.mrf.mxu1  ;;  %v3042_v18 = vmul.f32 %v2987_v14, %v2987_v14 }
 0x1a0   : > { %3314 = vst [vmem:[%s5128_s21 + $0x68] sm:$0xff] %v3289_v29 }
 0x1a1   : > { %v3054_v44 = vadd.f32 %v3053_v53, %v3039_v51  ;;  %3003 = vst [vmem:[%s5133_s25 + $0x68] sm:$0xff] %v2979_v24  ;;  %v3018_v47 = vadd.f32 %v3017_v49, %v2979_v24  ;;  %v3040_v3 = vmul.f32 %v2979_v24, %v2979_v24 }
 0x1a3   : > { %v3019_v27 = vadd.f32 %v3018_v47, %v2984_v0  ;;  %v3055_v15 = vadd.f32 %v3054_v44, %v3040_v3 }
 0x1a5   : > { %v3020_v30 = vadd.f32 %v3019_v27, %v2987_v14  ;;  %v3056_v36 = vadd.f32 %v3055_v15, %v3041_v5 }
 0x1a7   : > { %v3021_v2 = vrot.slane %v3020_v30, 4  ;;  %v3057_v4 = vadd.f32 %v3056_v36, %v3042_v18 }
 0x1a9   : > { %v3022_v7 = vadd.f32 %v3021_v2, %v3020_v30  ;;  %v3058_v32 = vrot.slane %v3057_v4, 4 }
 0x1ab   : > { %v3023_v43 = vrot.slane %v3022_v7, 2  ;;  %v3059_v54 = vadd.f32 %v3058_v32, %v3057_v4 }
 0x1ad   : > { %v3024_v33 = vadd.f32 %v3023_v43, %v3022_v7  ;;  %v3060_v41 = vrot.slane %v3059_v54, 2 }
 0x1af   : > { %v3025_v56 = vrot.slane %v3024_v33, 1  ;;  %v3061_v9 = vadd.f32 %v3060_v41, %v3059_v54 }
 0x1b1   : > { %v3062_v46 = vrot.slane %v3061_v9, 1  ;;  %v3026_v1 = vadd.f32 %v3025_v56, %v3024_v33 }
 0x1b3   : > { %v3063_v38 = vadd.f32 %v3062_v46, %v3061_v9 }
 0x1b5   : > { %v3065_v12 = vsel %vm3064_vm14, %v3026_v1, %v3063_v38 }
 0x1b6   : > { %v3067_v50 = vsel %vm3066_vm15, %v3065_v12, 0.0 }
 0x1b7   : > { %3068 = vst [vmem:[%s382_s29] sm:$0xff] %v3067_v50 }
 0x1b8 PF: > { %s21_s13 = sadd.s32 1, %s4465_s13  }
 0x1b9   : > { %p18_p4 = scmp.ge.s32.totalorder %s21_s13, 6  }
 0x1bb   :  { %20 = sbr.rel (!%p18_p4) target bundleno = 1 (0x1), region = 109 }

// kernel: spade_resnet_block.3
= control target key start
LH: loop header
LB: loop body
LE: loop exit
PB: predicated region body
PF: predicated region fallthrough
CT: control target
= control target key end

     0   :  { %s3995_s21 = smov 0   ;;  %s4566_s0 = inlined_call_operand.vmem [shape: f32[4,10,18,128], index: 0, kind: input, shape index: {}]   ;;  %s4567_s1 = inlined_call_operand.vmem [shape: f32[4,128,128], index: 1, kind: input, shape index: {}]   ;;  %s4568_s2 = inlined_call_operand.vmem [shape: bf16[1152,128], index: 2, kind: input, shape index: {}]   ;;  %s4569_s3 = inlined_call_operand.vmem [shape: f32[1,128], index: 3, kind: input, shape index: {}]   ;;  %s4570_s4 = inlined_call_operand.vmem [shape: f32[1,128], index: 4, kind: input, shape index: {}]   ;;  %s4571_s5 = inlined_call_operand.vmem [shape: f32[1,128], index: 5, kind: input, shape index: {}]   ;;  %s4572_s6 = inlined_call_operand.vmem [shape: f32[4,128,128], index: 6, kind: output, shape index: {}]  }
   0x1 LB: > { %s3010_s22 = sadd.s32 4294967295, %s3958_s21   ;;  %p3014_p0 = scmp.ge.s32.totalorder %s3958_s21, 1  ;;  %s3958_s21 = sphi %s3995_s21, %s16_s21  }
   0x2   : > { %p222_p1 = scmp.lt.s32.totalorder %s3958_s21, 5 }
   0x4   : > { %p223_p2 = pnand %p3014_p0, %p222_p1 }
   0x6   : > { %226 = sbr.rel (%p223_p2) target bundleno = 413 (0x19d), region = 44 }
   0xb   : > { %v3788_v0 = vld [vmem:[%s4568_s2 + $0x78] sm:$0xff]   ;;  %v3792_v4 = vld [vmem:[%s4568_s2 + $0x70] sm:$0xff]   ;;  %v3796_v8 = vld [vmem:[%s4568_s2 + $0x68] sm:$0xff]   ;;  %p257_p3 = scmp.lt.s32.totalorder %s3010_s22, 3 }
   0xc   : > { %v3789_v1 = vld [vmem:[%s4568_s2 + $0xf8] sm:$0xff]   ;;  %3459 = vmatprep.subr.bf16.mxu0 %v3788_v0  ;;  %v3793_v5 = vld [vmem:[%s4568_s2 + $0xf0] sm:$0xff]   ;;  %v3797_v9 = vld [vmem:[%s4568_s2 + $0xe8] sm:$0xff]  }
   0xd   : > { %v3790_v2 = vld [vmem:[%s4568_s2 + $0x38] sm:$0xff]   ;;  %3523 = vmatprep.subr.bf16.mxu1 %v3789_v1  ;;  %v3794_v6 = vld [vmem:[%s4568_s2 + $0x30] sm:$0xff]   ;;  %v3798_v10 = vld [vmem:[%s4568_s2 + $0x28] sm:$0xff]   ;;  %s4606_s22 = smov (!%p257_p3, %s3010_s22), 3 }
   0xe   : > { %v3791_v3 = vld [vmem:[%s4568_s2 + $0xb8] sm:$0xff]   ;;  %3460 = vmatpush3.bf16.msra.mxu0 %v3790_v2  ;;  %v3795_v7 = vld [vmem:[%s4568_s2 + $0xb0] sm:$0xff]   ;;  %v3799_v11 = vld [vmem:[%s4568_s2 + $0xa8] sm:$0xff]   ;;  %s3779_s7 = smul.u32 240, %s4606_s22  ;;  %s3313_s28 = sshll.u32 %s4606_s22, 7 }
   0xf   : > { %3524 = vmatpush3.bf16.msra.mxu1 %v3791_v3  ;;  %3461 = vmatprep.subr.bf16.mxu0 %v3792_v4  ;;  %v3800_v12 = vld [vmem:[%s4568_s2 + $0x60] sm:$0xff]   ;;  %v3804_v16 = vld [vmem:[%s4568_s2 + $0x58] sm:$0xff]   ;;  %v3808_v20 = vld [vmem:[%s4568_s2 + $0x50] sm:$0xff]   ;;  %s4505_s12 = scalar_lea.vmem %s4572_s6, %s3313_s28 }
  0x10   : > { %3525 = vmatprep.subr.bf16.mxu1 %v3793_v5  ;;  %v3801_v13 = vld [vmem:[%s4568_s2 + $0xe0] sm:$0xff]   ;;  %v3805_v17 = vld [vmem:[%s4568_s2 + $0xd8] sm:$0xff]   ;;  %v3809_v21 = vld [vmem:[%s4568_s2 + $0xd0] sm:$0xff]   ;;  %s4103_s18 = scalar_lea.vmem %s4566_s0, %s3779_s7  ;;  %s4465_s7 = scalar_lea.vmem %s4567_s1, %s3313_s28 }
  0x11   : > { %v3802_v14 = vld [vmem:[%s4568_s2 + $0x20] sm:$0xff]   ;;  %v3806_v18 = vld [vmem:[%s4568_s2 + $0x18] sm:$0xff]   ;;  %v3810_v22 = vld [vmem:[%s4568_s2 + $0x10] sm:$0xff]  }
  0x12   : > { %3462 = vmatpush3.bf16.msra.mxu0 %v3794_v6  ;;  %v3803_v15 = vld [vmem:[%s4568_s2 + $0xa0] sm:$0xff]   ;;  %v3807_v19 = vld [vmem:[%s4568_s2 + $0x98] sm:$0xff]   ;;  %v3811_v23 = vld [vmem:[%s4568_s2 + $0x90] sm:$0xff]  }
  0x13   : > { %3526 = vmatpush3.bf16.msra.mxu1 %v3795_v7  ;;  %3463 = vmatprep.subr.bf16.mxu0 %v3796_v8  ;;  %v3812_v24 = vld [vmem:[%s4568_s2 + $0x48] sm:$0xff]   ;;  %v3816_v28 = vld [vmem:[%s4568_s2 + $0x40] sm:$0xff]   ;;  %v275_v34 = vld [vmem:[%s4103_s18 + $0x10] sm:$0x3] }
  0x14   : > { %3527 = vmatprep.subr.bf16.mxu1 %v3797_v9  ;;  %v3813_v25 = vld [vmem:[%s4568_s2 + $0xc8] sm:$0xff]   ;;  %v3817_v29 = vld [vmem:[%s4568_s2 + $0xc0] sm:$0xff]   ;;  %v276_v37 = vld [vmem:[%s4103_s18 + $0x18] sm:$0xff] }
  0x15   : > { %v3814_v26 = vld [vmem:[%s4568_s2 + $0x8] sm:$0xff]   ;;  %v3818_v30 = vld [vmem:[%s4568_s2] sm:$0xff]   ;;  %v3826_v44 = vld [vmem:[%s4568_s2 + $0x178] sm:$0xff]  }
  0x16   : > { %3464 = vmatpush3.bf16.msra.mxu0 %v3798_v10  ;;  %v3815_v27 = vld [vmem:[%s4568_s2 + $0x88] sm:$0xff]   ;;  %v3819_v31 = vld [vmem:[%s4568_s2 + $0x80] sm:$0xff]   ;;  %v3827_v49 = vld [vmem:[%s4568_s2 + $0x1f8] sm:$0xff]  }
  0x17   : > { %3528 = vmatpush3.bf16.msra.mxu1 %v3799_v11  ;;  %3465 = vmatprep.subr.bf16.mxu0 %v3800_v12  ;;  %v273_v32 = vld [vmem:[%s4103_s18] sm:$0xff]  ;;  %v274_v33 = vld [vmem:[%s4103_s18 + $0x8] sm:$0xff]  ;;  %v279_v62 = vld [vmem:[%s4103_s18 + $0x30] sm:$0xff] }
  0x18   : > { %3529 = vmatprep.subr.bf16.mxu1 %v3801_v13  ;;  %v4117_v35 = vld [vmem:[%s4570_s4] ss:$0 sm:$0xff]  ;;  %v278_v57 = vld [vmem:[%s4103_s18 + $0x28] sm:$0x3]  ;;  %v280_v63 = vld [vmem:[%s4103_s18 + $0x38] sm:$0xff] }
  0x19   : > { %v4122_v36 = vld [vmem:[%s4571_s5] ss:$0 sm:$0xff]  ;;  %v310_v38 = vmul.f32 %v4117_v35, %v273_v32  ;;  %v311_v39 = vmul.f32 %v4117_v35, %v274_v33  ;;  %v312_v40 = vmul.f32 %v4117_v35, %v275_v34  ;;  %v313_v42 = vmul.f32 %v4117_v35, %v276_v37  ;;  %v282_v13 = vld [vmem:[%s4103_s18 + $0x48] sm:$0xff] }
  0x1a   : > { %3466 = vmatpush3.bf16.msra.mxu0 %v3802_v14  ;;  %v277_v41 = vld [vmem:[%s4103_s18 + $0x20] sm:$0xff]  ;;  %v315_v61 = vmul.f32 %v4117_v35, %v278_v57  ;;  %v316_v3 = vmul.f32 %v4117_v35, %v279_v62  ;;  %v317_v7 = vmul.f32 %v4117_v35, %v280_v63  ;;  %v3828_v62 = vld [vmem:[%s4568_s2 + $0x138] sm:$0xff]  }
  0x1b   : > { %3530 = vmatpush3.bf16.msra.mxu1 %v3803_v15  ;;  %3467 = vmatprep.subr.bf16.mxu0 %v3804_v16  ;;  %v314_v43 = vmul.f32 %v4117_v35, %v277_v41  ;;  %v347_v45 = vadd.f32 %v4122_v36, %v310_v38  ;;  %v348_v46 = vadd.f32 %v4122_v36, %v311_v39  ;;  %v281_v12 = vld [vmem:[%s4103_s18 + $0x40] sm:$0x3] }
  0x1c   : > { %3531 = vmatprep.subr.bf16.mxu1 %v3805_v17  ;;  %v349_v47 = vadd.f32 %v4122_v36, %v312_v40  ;;  %v350_v48 = vadd.f32 %v4122_v36, %v313_v42  ;;  %v352_v6 = vadd.f32 %v4122_v36, %v315_v61  ;;  %v353_v8 = vadd.f32 %v4122_v36, %v316_v3  ;;  %v283_v17 = vld [vmem:[%s4103_s18 + $0x50] sm:$0xff]  ;;  %v284_v42 = vld [vmem:[%s4103_s18 + $0x58] sm:$0x3] }
  0x1d   : > { %v351_v50 = vadd.f32 %v4122_v36, %v314_v43  ;;  %vm377_vm0 = vcmp.gt.f32.partialorder %v347_v45, 0.0  ;;  %vm378_vm1 = vcmp.gt.f32.partialorder %v348_v46, 0.0  ;;  %v407_v51 = vmul.f32 0.2, %v347_v45 }
  0x1e   : > { %3468 = vmatpush3.bf16.msra.mxu0 %v3806_v18  ;;  %vm379_vm2 = vcmp.gt.f32.partialorder %v349_v47, 0.0  ;;  %v408_v52 = vmul.f32 0.2, %v348_v46  ;;  %v409_v53 = vmul.f32 0.2, %v349_v47  ;;  %vm380_vm3 = vcmp.gt.f32.partialorder %v350_v48, 0.0 }
  0x1f   : > { %3532 = vmatpush3.bf16.msra.mxu1 %v3807_v19  ;;  %3469 = vmatprep.subr.bf16.mxu0 %v3808_v20  ;;  %vm381_vm4 = vcmp.gt.f32.partialorder %v351_v50, 0.0  ;;  %v437_v54 = vsel %vm377_vm0, %v347_v45, %v407_v51  ;;  %v410_v55 = vmul.f32 0.2, %v350_v48  ;;  %v411_v56 = vmul.f32 0.2, %v351_v50  ;;  %v285_v45 = vld [vmem:[%s4103_s18 + $0x60] sm:$0xff] }
  0x20   : > { %3533 = vmatprep.subr.bf16.mxu1 %v3809_v21  ;;  %v438_v58 = vsel %vm378_vm1, %v348_v46, %v408_v52  ;;  %v439_v59 = vsel %vm379_vm2, %v349_v47, %v409_v53  ;;  %467 = vst [vmem:[#allocation2] sm:$0xff] %v437_v54  ;;  %v3315_v60 = vpack.c.bf16 %v437_v54, %v437_v54  ;;  %vm382_vm5 = vcmp.gt.f32.partialorder %v352_v6, 0.0  ;;  %v286_v46 = vld [vmem:[%s4103_s18 + $0x68] sm:$0xff] }
  0x21   : > { %468 = vst [vmem:[#allocation2 + $0x8] sm:$0xff] %v438_v58  ;;  %469 = vst [vmem:[#allocation2 + $0x10] sm:$0x3] %v439_v59  ;;  %v3316_v0 = vpack.c.bf16 %v438_v58, %v438_v58  ;;  %v440_v1 = vsel %vm380_vm3, %v350_v48, %v410_v55  ;;  %v441_v2 = vsel %vm381_vm4, %v351_v50, %v411_v56  ;;  %v412_v9 = vmul.f32 0.2, %v352_v6 }
  0x22   : > { %3470 = vmatpush3.bf16.msra.mxu0 %v3810_v22  ;;  %577 = vst [vmem:[#allocation3] sm:$0xf] %v3315_v60  ;;  %470 = vst [vmem:[#allocation2 + $0x18] sm:$0xff] %v440_v1  ;;  %v3363_v4 = vpack.c.bf16 %v440_v1, %v440_v1  ;;  %v3364_v5 = vpack.c.bf16 %v441_v2, %v441_v2  ;;  %v354_v10 = vadd.f32 %v4122_v36, %v317_v7 }
  0x23   : > { %3534 = vmatpush3.bf16.msra.mxu1 %v3811_v23  ;;  %3471 = vmatprep.subr.bf16.mxu0 %v3812_v24  ;;  %471 = vst [vmem:[#allocation2 + $0x20] sm:$0xff] %v441_v2  ;;  %578 = vst [vmem:[#allocation3 + $0x24] sm:$0xf] %v3316_v0  ;;  %vm383_vm6 = vcmp.gt.f32.partialorder %v353_v8, 0.0  ;;  %v413_v11 = vmul.f32 0.2, %v353_v8  ;;  %v442_v14 = vsel %vm382_vm5, %v352_v6, %v412_v9 }
  0x24   : > { %3535 = vmatprep.subr.bf16.mxu1 %v3813_v25  ;;  %866 = vst [vmem:[#allocation3 + $0xc] sm:$0xf] %v3363_v4  ;;  %867 = vst [vmem:[#allocation3 + $0x30] sm:$0xf] %v3364_v5  ;;  %vm384_vm7 = vcmp.gt.f32.partialorder %v354_v10, 0.0  ;;  %v318_v16 = vmul.f32 %v4117_v35, %v281_v12  ;;  %v319_v19 = vmul.f32 %v4117_v35, %v282_v13 }
  0x25   : > { %579 = vst [vmem:[#allocation3 + $0x48] sm:$0xf] %v3363_v4  ;;  %580 = vst [vmem:[#allocation3 + $0x6c] sm:$0xf] %v3364_v5  ;;  %v414_v15 = vmul.f32 0.2, %v354_v10  ;;  %v443_v18 = vsel %vm383_vm6, %v353_v8, %v413_v11  ;;  %v320_v20 = vmul.f32 %v4117_v35, %v283_v17  ;;  %v321_v50 = vmul.f32 %v4117_v35, %v284_v42 }
  0x26   : > { %3472 = vmatpush3.bf16.msra.mxu0 %v3814_v26  ;;  %472 = vst [vmem:[#allocation2 + $0x28] sm:$0x3] %v442_v14  ;;  %473 = vst [vmem:[#allocation2 + $0x30] sm:$0xff] %v443_v18  ;;  %v3365_v25 = vpack.c.bf16 %v443_v18, %v443_v18  ;;  %v355_v26 = vadd.f32 %v4122_v36, %v318_v16  ;;  %v356_v40 = vadd.f32 %v4122_v36, %v319_v19  ;;  %v3829_v4 = vld [vmem:[%s4568_s2 + $0x1b8] sm:$0xff]   ;;  %v3834_v5 = vld [vmem:[%s4568_s2 + $0x170] sm:$0xff]  }
  0x27   : > { %3536 = vmatpush3.bf16.msra.mxu1 %v3815_v27  ;;  %3473 = vmatprep.subr.bf16.mxu0 %v3816_v28  ;;  %v444_v24 = vsel %vm384_vm7, %v354_v10, %v414_v15  ;;  %v357_v41 = vadd.f32 %v4122_v36, %v320_v20  ;;  %v322_v51 = vmul.f32 %v4117_v35, %v285_v45  ;;  %v3835_v10 = vld [vmem:[%s4568_s2 + $0x1f0] sm:$0xff]   ;;  %v3843_v20 = vld [vmem:[%s4568_s2 + $0x168] sm:$0xff]  }
  0x28   : > { %3537 = vmatprep.subr.bf16.mxu1 %v3817_v29  ;;  %v593_v21 = vld [vmem:[#allocation2 + $0x1] sm:$0xff]  ;;  %v594_v22 = vld [vmem:[#allocation2 + $0x9] sm:$0xff]  ;;  %474 = vst [vmem:[#allocation2 + $0x38] sm:$0xff] %v444_v24  ;;  %v3366_v33 = vpack.c.bf16 %v444_v24, %v444_v24  ;;  %868 = vst [vmem:[#allocation3 + $0x54] sm:$0xf] %v3365_v25  ;;  %vm385_vm8 = vcmp.gt.f32.partialorder %v355_v26, 0.0  ;;  %v323_v52 = vmul.f32 %v4117_v35, %v286_v46 }
  0x29   : > { %v689_v23 = vld [vmem:[#allocation2 + $0x2] sm:$0xff]  ;;  %v3331_v27 = vpack.c.bf16 %v593_v21, %v593_v21  ;;  %v3332_v28 = vpack.c.bf16 %v594_v22, %v594_v22  ;;  %v690_v29 = vld [vmem:[#allocation2 + $0xa] sm:$0xff]  ;;  %581 = vst [vmem:[#allocation3 + $0x90] sm:$0xf] %v3365_v25  ;;  %1155 = vst [vmem:[#allocation3 + $0x18] sm:$0xf] %v3365_v25  ;;  %v358_v60 = vadd.f32 %v4122_v36, %v321_v50 }
  0x2a   : > { %3474 = vmatpush3.bf16.msra.mxu0 %v3818_v30  ;;  %v3347_v30 = vpack.c.bf16 %v689_v23, %v689_v23  ;;  %v691_v32 = vld [vmem:[#allocation2 + $0x1a] sm:$0xff]  ;;  %v3348_v34 = vpack.c.bf16 %v690_v29, %v690_v29  ;;  %869 = vst [vmem:[#allocation3 + $0x78] sm:$0xf] %v3366_v33  ;;  %v415_v39 = vmul.f32 0.2, %v355_v26  ;;  %vm386_vm9 = vcmp.gt.f32.partialorder %v356_v40, 0.0 }
  0x2b   : > { %3538 = vmatpush3.bf16.msra.mxu1 %v3819_v31  ;;  %3587 = vmatprep.subr.bf16.mxu0 %v3826_v44  ;;  %v595_v31 = vld [vmem:[#allocation2 + $0x19] sm:$0xff]  ;;  %v3349_v38 = vpack.c.bf16 %v691_v32, %v691_v32  ;;  %673 = vst [vmem:[#allocation3 + $0x4] sm:$0xf] %v3331_v27  ;;  %674 = vst [vmem:[#allocation3 + $0x28] sm:$0xf] %v3332_v28  ;;  %vm387_vm10 = vcmp.gt.f32.partialorder %v357_v41, 0.0  ;;  %v359_v61 = vadd.f32 %v4122_v36, %v322_v51 }
  0x2c   : > { %3651 = vmatprep.subr.bf16.mxu1 %v3827_v49  ;;  %v3333_v37 = vpack.c.bf16 %v595_v31, %v595_v31  ;;  %769 = vst [vmem:[#allocation3 + $0x8] sm:$0xf] %v3347_v30  ;;  %582 = vst [vmem:[#allocation3 + $0xb4] sm:$0xf] %v3366_v33  ;;  %v445_v43 = vsel %vm385_vm8, %v355_v26, %v415_v39  ;;  %v416_v44 = vmul.f32 0.2, %v356_v40 }
  0x2d   : > { %1156 = vst [vmem:[#allocation3 + $0x3c] sm:$0xf] %v3366_v33  ;;  %770 = vst [vmem:[#allocation3 + $0x2c] sm:$0xf] %v3348_v34  ;;  %v596_v47 = vld [vmem:[#allocation2 + $0x21] sm:$0xff]  ;;  %v360_v2 = vadd.f32 %v4122_v36, %v323_v52  ;;  %vm388_vm11 = vcmp.gt.f32.partialorder %v358_v60, 0.0 }
  0x2e   : > { %675 = vst [vmem:[#allocation3 + $0x4c] sm:$0xf] %v3333_v37  ;;  %771 = vst [vmem:[#allocation3 + $0x50] sm:$0xf] %v3349_v38  ;;  %v692_v48 = vld [vmem:[#allocation2 + $0x22] sm:$0xff]  ;;  %v3334_v53 = vpack.c.bf16 %v596_v47, %v596_v47  ;;  %v446_v55 = vsel %vm386_vm9, %v356_v40, %v416_v44  ;;  %vm389_vm12 = vcmp.gt.f32.partialorder %v359_v61, 0.0 }
  0x2f   : > { %962 = vst [vmem:[#allocation3 + $0x10] sm:$0xf] %v3333_v37  ;;  %1058 = vst [vmem:[#allocation3 + $0x14] sm:$0xf] %v3349_v38  ;;  %v417_v49 = vmul.f32 0.2, %v357_v41  ;;  %v3350_v54 = vpack.c.bf16 %v692_v48, %v692_v48  ;;  %v3367_v59 = vpack.c.bf16 %v446_v55, %v446_v55 }
  0x30   : > { %475 = vst [vmem:[#allocation2 + $0x40] sm:$0x3] %v445_v43  ;;  %v597_v56 = vld [vmem:[#allocation2 + $0x31] sm:$0xff]  ;;  %476 = vst [vmem:[#allocation2 + $0x48] sm:$0xff] %v446_v55  ;;  %v418_v7 = vmul.f32 0.2, %v358_v60 }
  0x31   : > { %v447_v57 = vsel %vm387_vm10, %v357_v41, %v417_v49  ;;  %v693_v58 = vld [vmem:[#allocation2 + $0x32] sm:$0xff]  ;;  %676 = vst [vmem:[#allocation3 + $0x70] sm:$0xf] %v3334_v53  ;;  %772 = vst [vmem:[#allocation3 + $0x74] sm:$0xf] %v3350_v54  ;;  %v3335_v63 = vpack.c.bf16 %v597_v56, %v597_v56  ;;  %vm390_vm13 = vcmp.gt.f32.partialorder %v360_v2, 0.0 }
  0x32   : > { %477 = vst [vmem:[#allocation2 + $0x50] sm:$0xff] %v447_v57  ;;  %v3351_v0 = vpack.c.bf16 %v693_v58, %v693_v58  ;;  %v3368_v1 = vpack.c.bf16 %v447_v57, %v447_v57  ;;  %963 = vst [vmem:[#allocation3 + $0x34] sm:$0xf] %v3334_v53  ;;  %v3820_v3 = vld [vmem:[#allocation3] ss:$36 sps:$4 sm:$0xff]   ;;  %v448_v14 = vsel %vm388_vm11, %v358_v60, %v418_v7  ;;  %v3844_v22 = vld [vmem:[%s4568_s2 + $0x1e8] sm:$0xff]  }
  0x33   : > { %1059 = vst [vmem:[#allocation3 + $0x38] sm:$0xf] %v3350_v54  ;;  %870 = vst [vmem:[#allocation3 + $0x9c] sm:$0xf] %v3367_v59  ;;  %v3822_v6 = vld [vmem:[#allocation3 + $0x4] ss:$36 sps:$4 sm:$0xff]  }
  0x34   : > { %583 = vst [vmem:[#allocation3 + $0xd8] sm:$0xf] %v3367_v59  ;;  %1157 = vst [vmem:[#allocation3 + $0x60] sm:$0xf] %v3367_v59  ;;  %v3823_v8 = vld [vmem:[#allocation3 + $0x8] ss:$36 sps:$4 sm:$0xff]   ;;  %2419 = vmatprep.mubr.bf16.mxu0 %v3822_v6 }
  0x35   : > { %677 = vst [vmem:[#allocation3 + $0x94] sm:$0xf] %v3335_v63  ;;  %773 = vst [vmem:[#allocation3 + $0x98] sm:$0xf] %v3351_v0  ;;  %v3825_v9 = vld [vmem:[#allocation3 + $0xc] ss:$36 sps:$4 sm:$0xff]   ;;  %2420 = vmatmul.mubr.bf16.vlgmr.msra.gmra.mxu0 %v3820_v3 }
  0x36   : > { %871 = vst [vmem:[#allocation3 + $0xc0] sm:$0xf] %v3368_v1  ;;  %584 = vst [vmem:[#allocation3 + $0xfc] sm:$0xf] %v3368_v1  ;;  %v3837_v11 = vld [vmem:[%s4568_s2 + $0x130] sm:$0xff]   ;;  %2516 = vmatprep.mubr.bf16.mxu1 %v3825_v9  ;;  %v4188_v16 = vld [vmem:[#allocation3 + $0x48] sm:$0xff]  ;;  %3588 = vmatpush3.bf16.msra.mxu0 %v3828_v62 }
  0x37   : > { %1251 = vst [vmem:[#allocation3 + $0x1c] sm:$0xf] %v3335_v63  ;;  %964 = vst [vmem:[#allocation3 + $0x58] sm:$0xf] %v3335_v63  ;;  %v598_v12 = vld [vmem:[#allocation2 + $0x39] sm:$0xff]  ;;  %v3838_v17 = vld [vmem:[%s4568_s2 + $0x1b0] sm:$0xff]   ;;  %2517 = vmatmul.mubr.bf16.vlgmr.msra.gmra.mxu1 %v3823_v8  ;;  %3589 = vmatprep.subr.bf16.mxu0 %v3834_v5 }
  0x38   : > { %1060 = vst [vmem:[#allocation3 + $0x5c] sm:$0xf] %v3351_v0  ;;  %1158 = vst [vmem:[#allocation3 + $0x84] sm:$0xf] %v3368_v1  ;;  %v694_v13 = vld [vmem:[#allocation2 + $0x3a] sm:$0xff]  ;;  %v3336_v18 = vpack.c.bf16 %v598_v12, %v598_v12  ;;  %3652 = vmatpush3.bf16.msra.mxu1 %v3829_v4  ;;  %v3846_v32 = vld [vmem:[%s4568_s2 + $0x128] sm:$0xff]  }
  0x39   : > { %v419_v15 = vmul.f32 0.2, %v359_v61  ;;  %v3352_v19 = vpack.c.bf16 %v694_v13, %v694_v13  ;;  %478 = vst [vmem:[#allocation2 + $0x58] sm:$0x3] %v448_v14  ;;  %v420_v21 = vmul.f32 0.2, %v360_v2  ;;  %3653 = vmatprep.subr.bf16.mxu1 %v3835_v10 }
  0x3a   : > { %v287_v24 = vld [vmem:[%s4103_s18 + $0x70] sm:$0x3]  ;;  %v288_v25 = vld [vmem:[%s4103_s18 + $0x78] sm:$0xff]  ;;  %678 = vst [vmem:[#allocation3 + $0xb8] sm:$0xf] %v3336_v18  ;;  %v3847_v40 = vld [vmem:[%s4568_s2 + $0x1a8] sm:$0xff]   ;;  %3590 = vmatpush3.bf16.msra.mxu0 %v3837_v11 }
  0x3b   : > { %v449_v23 = vsel %vm389_vm12, %v359_v61, %v419_v15  ;;  %v1378_v26 = vld [vmem:[#allocation3 + $0x6c] sm:$0xff]  ;;  %774 = vst [vmem:[#allocation3 + $0xbc] sm:$0xf] %v3352_v19  ;;  %v450_v28 = vsel %vm390_vm13, %v360_v2, %v420_v21  ;;  %v324_v30 = vmul.f32 %v4117_v35, %v287_v24  ;;  %1252 = vst [vmem:[#allocation3 + $0x40] sm:$0xf] %v3336_v18  ;;  %v599_v33 = vld [vmem:[#allocation2 + $0x49] sm:$0xff]  ;;  %3591 = vmatprep.subr.bf16.mxu0 %v3843_v20 }
  0x3c   : > { %v3830_v27 = vld [vmem:[#allocation3 + $0x4c] ss:$36 sps:$4 sm:$0xff]   ;;  %479 = vst [vmem:[#allocation2 + $0x60] sm:$0xff] %v449_v23  ;;  %v3369_v29 = vpack.c.bf16 %v449_v23, %v449_v23  ;;  %965 = vst [vmem:[#allocation3 + $0x7c] sm:$0xf] %v3336_v18  ;;  %v3370_v34 = vpack.c.bf16 %v450_v28, %v450_v28  ;;  %v325_v37 = vmul.f32 %v4117_v35, %v288_v25  ;;  %v695_v42 = vld [vmem:[#allocation2 + $0x4a] sm:$0xff]  ;;  %3654 = vmatpush3.bf16.msra.mxu1 %v3838_v17 }
  0x3d   : > { %1061 = vst [vmem:[#allocation3 + $0x80] sm:$0xf] %v3352_v19  ;;  %v3832_v31 = vld [vmem:[#allocation3 + $0x54] ss:$36 sps:$4 sm:$0xff]   ;;  %480 = vst [vmem:[#allocation2 + $0x68] sm:$0xff] %v450_v28  ;;  %2427 = vmatprep.mubr.bf16.mxu0 %v3830_v27  ;;  %v3175_v38 = vcombine.low %v4188_v16, %v1378_v26  ;;  %v3337_v41 = vpack.c.bf16 %v599_v33, %v599_v33  ;;  %v361_v44 = vadd.f32 %v4122_v36, %v324_v30  ;;  %v3861_v3 = vld [vmem:[%s4568_s2 + $0x158] sm:$0xff]  }
  0x3e   : > { %v3836_v39 = vld [vmem:[#allocation3 + $0x50] ss:$36 sps:$4 sm:$0xff]   ;;  %872 = vst [vmem:[#allocation3 + $0xe4] sm:$0xf] %v3369_v29  ;;  %585 = vst [vmem:[#allocation3 + $0x120] sm:$0xf] %v3369_v29  ;;  %2524 = vmatprep.mubr.bf16.mxu1 %v3832_v31  ;;  %v3353_v45 = vpack.c.bf16 %v695_v42, %v695_v42  ;;  %v362_v47 = vadd.f32 %v4122_v36, %v325_v37  ;;  %3655 = vmatprep.subr.bf16.mxu1 %v3844_v22 }
  0x3f   : > { %v3852_v43 = vld [vmem:[%s4568_s2 + $0x160] sm:$0xff]   ;;  %1159 = vst [vmem:[#allocation3 + $0xa8] sm:$0xf] %v3369_v29  ;;  %873 = vst [vmem:[#allocation3 + $0x108] sm:$0xf] %v3370_v34  ;;  %vm391_vm14 = vcmp.gt.f32.partialorder %v361_v44, 0.0  ;;  %2428 = vmatmul.mubr.bf16.gmra.mxu0 %v3175_v38  ;;  %2525 = vmatmul.mubr.bf16.gmra.mxu1 %v3836_v39 }
  0x40   : > { %586 = vst [vmem:[#allocation3 + $0x144] sm:$0xf] %v3370_v34  ;;  %v289_v46 = vld [vmem:[%s4103_s18 + $0x80] sm:$0xff]  ;;  %1160 = vst [vmem:[#allocation3 + $0xcc] sm:$0xf] %v3370_v34  ;;  %v600_v52 = vld [vmem:[#allocation2 + $0x51] sm:$0xff]  ;;  %3592 = vmatpush3.bf16.msra.mxu0 %v3846_v32  ;;  %3656 = vmatpush3.bf16.msra.mxu1 %v3847_v40 }
  0x41   : > { %679 = vst [vmem:[#allocation3 + $0xdc] sm:$0xf] %v3337_v41  ;;  %v3853_v48 = vld [vmem:[%s4568_s2 + $0x1e0] sm:$0xff]   ;;  %v421_v49 = vmul.f32 0.2, %v361_v44  ;;  %v326_v50 = vmul.f32 %v4117_v35, %v289_v46  ;;  %v696_v53 = vld [vmem:[#allocation2 + $0x52] sm:$0xff]  ;;  %v3338_v56 = vpack.c.bf16 %v600_v52, %v600_v52  ;;  %3593 = vmatprep.subr.bf16.mxu0 %v3852_v43 }
  0x42   : > { %1253 = vst [vmem:[#allocation3 + $0x64] sm:$0xf] %v3337_v41  ;;  %966 = vst [vmem:[#allocation3 + $0xa0] sm:$0xf] %v3337_v41  ;;  %v4222_v51 = vld [vmem:[#allocation3 + $0x90] sm:$0xff]  ;;  %vm392_vm15 = vcmp.gt.f32.partialorder %v362_v47, 0.0  ;;  %v3354_v57 = vpack.c.bf16 %v696_v53, %v696_v53  ;;  %3657 = vmatprep.subr.bf16.mxu1 %v3853_v48 }
  0x43   : > { %775 = vst [vmem:[#allocation3 + $0xe0] sm:$0xf] %v3353_v45  ;;  %v3855_v54 = vld [vmem:[%s4568_s2 + $0x120] sm:$0xff]   ;;  %v422_v55 = vmul.f32 0.2, %v362_v47  ;;  %v451_v59 = vsel %vm391_vm14, %v361_v44, %v421_v49  ;;  %v363_v60 = vadd.f32 %v4122_v36, %v326_v50  ;;  %v3862_v8 = vld [vmem:[%s4568_s2 + $0x1d8] sm:$0xff]  }
  0x44   : > { %1062 = vst [vmem:[#allocation3 + $0xa4] sm:$0xf] %v3353_v45  ;;  %v3856_v58 = vld [vmem:[%s4568_s2 + $0x1a0] sm:$0xff]   ;;  %481 = vst [vmem:[#allocation2 + $0x70] sm:$0x3] %v451_v59  ;;  %v3864_v11 = vld [vmem:[%s4568_s2 + $0x118] sm:$0xff]   ;;  %3594 = vmatpush3.bf16.msra.mxu0 %v3855_v54 }
  0x45   : > { %v1388_v61 = vld [vmem:[#allocation3 + $0xb4] sm:$0xff]  ;;  %v452_v63 = vsel %vm392_vm15, %v362_v47, %v422_v55  ;;  %v3841_v0 = vld [vmem:[#allocation3 + $0x9c] ss:$36 sps:$4 sm:$0xff]   ;;  %680 = vst [vmem:[#allocation3 + $0x100] sm:$0xf] %v3338_v56  ;;  %vm393_vm0 = vcmp.gt.f32.partialorder %v363_v60, 0.0  ;;  %3658 = vmatpush3.bf16.msra.mxu1 %v3856_v58  ;;  %3595 = vmatprep.subr.bf16.mxu0 %v3861_v3 }
  0x46   : > { %v3839_v62 = vld [vmem:[#allocation3 + $0x94] ss:$36 sps:$4 sm:$0xff]   ;;  %776 = vst [vmem:[#allocation3 + $0x104] sm:$0xf] %v3354_v57  ;;  %482 = vst [vmem:[#allocation2 + $0x78] sm:$0xff] %v452_v63  ;;  %v3371_v2 = vpack.c.bf16 %v452_v63, %v452_v63  ;;  %2532 = vmatprep.mubr.bf16.mxu1 %v3841_v0  ;;  %v3184_v9 = vcombine.low %v4222_v51, %v1388_v61  ;;  %v3865_v14 = vld [vmem:[%s4568_s2 + $0x198] sm:$0xff]   ;;  %3659 = vmatprep.subr.bf16.mxu1 %v3862_v8 }
  0x47   : > { %v601_v1 = vld [vmem:[#allocation2 + $0x61] sm:$0xff]  ;;  %1254 = vst [vmem:[#allocation3 + $0x88] sm:$0xf] %v3338_v56  ;;  %967 = vst [vmem:[#allocation3 + $0xc4] sm:$0xf] %v3338_v56  ;;  %2435 = vmatprep.mubr.bf16.mxu0 %v3839_v62  ;;  %v291_v16 = vld [vmem:[%s4103_s18 + $0x90] sm:$0xff] }
  0x48   : > { %1063 = vst [vmem:[#allocation3 + $0xc8] sm:$0xf] %v3354_v57  ;;  %v3845_v4 = vld [vmem:[#allocation3 + $0x98] ss:$36 sps:$4 sm:$0xff]   ;;  %v3339_v5 = vpack.c.bf16 %v601_v1, %v601_v1  ;;  %v423_v6 = vmul.f32 0.2, %v363_v60  ;;  %v328_v19 = vmul.f32 %v4117_v35, %v291_v16  ;;  %2436 = vmatmul.mubr.bf16.gmra.mxu0 %v3184_v9 }
  0x49   : > { %v697_v7 = vld [vmem:[#allocation2 + $0x62] sm:$0xff]  ;;  %874 = vst [vmem:[#allocation3 + $0x12c] sm:$0xf] %v3371_v2  ;;  %587 = vst [vmem:[#allocation3 + $0x168] sm:$0xf] %v3371_v2  ;;  %v292_v17 = vld [vmem:[%s4103_s18 + $0x98] sm:$0xff]  ;;  %2533 = vmatmul.mubr.bf16.gmra.mxu1 %v3845_v4  ;;  %3596 = vmatpush3.bf16.msra.mxu0 %v3864_v11 }
  0x4a   : > { %v3355_v10 = vpack.c.bf16 %v697_v7, %v697_v7  ;;  %v290_v12 = vld [vmem:[%s4103_s18 + $0x88] sm:$0x3]  ;;  %1161 = vst [vmem:[#allocation3 + $0xf0] sm:$0xf] %v3371_v2  ;;  %681 = vst [vmem:[#allocation3 + $0x124] sm:$0xf] %v3339_v5  ;;  %v453_v13 = vsel %vm393_vm0, %v363_v60, %v423_v6  ;;  %v329_v20 = vmul.f32 %v4117_v35, %v292_v17  ;;  %3660 = vmatpush3.bf16.msra.mxu1 %v3865_v14 }
  0x4b   : > { %v327_v15 = vmul.f32 %v4117_v35, %v290_v12  ;;  %1255 = vst [vmem:[#allocation3 + $0xac] sm:$0xf] %v3339_v5  ;;  %968 = vst [vmem:[#allocation3 + $0xe8] sm:$0xf] %v3339_v5  ;;  %v3372_v18 = vpack.c.bf16 %v453_v13, %v453_v13  ;;  %v1393_v21 = vld [vmem:[#allocation3 + $0xd8] sm:$0xff]  ;;  %v3870_v23 = vld [vmem:[%s4568_s2 + $0x150] sm:$0xff]   ;;  %v365_v26 = vadd.f32 %v4122_v36, %v328_v19 }
  0x4c   : > { %483 = vst [vmem:[#allocation2 + $0x80] sm:$0xff] %v453_v13  ;;  %777 = vst [vmem:[#allocation3 + $0x128] sm:$0xf] %v3355_v10  ;;  %v602_v24 = vld [vmem:[#allocation2 + $0x69] sm:$0xff]  ;;  %v366_v27 = vadd.f32 %v4122_v36, %v329_v20  ;;  %v3850_v33 = vld [vmem:[#allocation3 + $0xe4] ss:$36 sps:$4 sm:$0xff]   ;;  %3597 = vmatprep.subr.bf16.mxu0 %v3870_v23 }
  0x4d   : > { %1064 = vst [vmem:[#allocation3 + $0xec] sm:$0xf] %v3355_v10  ;;  %v364_v22 = vadd.f32 %v4122_v36, %v327_v15  ;;  %v698_v25 = vld [vmem:[#allocation2 + $0x6a] sm:$0xff]  ;;  %875 = vst [vmem:[#allocation3 + $0x150] sm:$0xf] %v3372_v18  ;;  %v3340_v31 = vpack.c.bf16 %v602_v24, %v602_v24  ;;  %vm395_vm2 = vcmp.gt.f32.partialorder %v365_v26, 0.0  ;;  %2540 = vmatprep.mubr.bf16.mxu1 %v3850_v33 }
  0x4e   : > { %588 = vst [vmem:[#allocation3 + $0x18c] sm:$0xf] %v3372_v18  ;;  %v3871_v28 = vld [vmem:[%s4568_s2 + $0x1d0] sm:$0xff]   ;;  %1162 = vst [vmem:[#allocation3 + $0x114] sm:$0xf] %v3372_v18  ;;  %v3356_v32 = vpack.c.bf16 %v698_v25, %v698_v25  ;;  %vm396_vm3 = vcmp.gt.f32.partialorder %v366_v27, 0.0 }
  0x4f   : > { %v1398_v29 = vld [vmem:[#allocation3 + $0xfc] sm:$0xff]  ;;  %vm394_vm1 = vcmp.gt.f32.partialorder %v364_v22, 0.0  ;;  %v424_v34 = vmul.f32 0.2, %v364_v22  ;;  %682 = vst [vmem:[#allocation3 + $0x148] sm:$0xf] %v3340_v31  ;;  %3661 = vmatprep.subr.bf16.mxu1 %v3871_v28 }
  0x50   : > { %v3848_v30 = vld [vmem:[#allocation3 + $0xdc] ss:$36 sps:$4 sm:$0xff]   ;;  %778 = vst [vmem:[#allocation3 + $0x14c] sm:$0xf] %v3356_v32  ;;  %v425_v37 = vmul.f32 0.2, %v365_v26  ;;  %v3193_v39 = vcombine.low %v1393_v21, %v1398_v29 }
  0x51   : > { %2443 = vmatprep.mubr.bf16.mxu0 %v3848_v30  ;;  %v426_v38 = vmul.f32 0.2, %v366_v27  ;;  %1256 = vst [vmem:[#allocation3 + $0xd0] sm:$0xf] %v3340_v31  ;;  %969 = vst [vmem:[#allocation3 + $0x10c] sm:$0xf] %v3340_v31  ;;  %v454_v41 = vsel %vm394_vm1, %v364_v22, %v424_v34 }
  0x52   : > { %1065 = vst [vmem:[#allocation3 + $0x110] sm:$0xf] %v3356_v32  ;;  %v3854_v40 = vld [vmem:[#allocation3 + $0xe0] ss:$36 sps:$4 sm:$0xff]   ;;  %484 = vst [vmem:[#allocation2 + $0x88] sm:$0x3] %v454_v41  ;;  %v455_v43 = vsel %vm395_vm2, %v365_v26, %v425_v37  ;;  %2444 = vmatmul.mubr.bf16.gmra.mxu0 %v3193_v39 }
  0x53   : > { %v603_v42 = vld [vmem:[#allocation2 + $0x79] sm:$0xff]  ;;  %v456_v44 = vsel %vm396_vm3, %v366_v27, %v426_v38  ;;  %485 = vst [vmem:[#allocation2 + $0x90] sm:$0xff] %v455_v43  ;;  %v3373_v48 = vpack.c.bf16 %v455_v43, %v455_v43  ;;  %v3873_v50 = vld [vmem:[%s4568_s2 + $0x110] sm:$0xff]   ;;  %v294_v54 = vld [vmem:[%s4103_s18 + $0xa8] sm:$0xff]  ;;  %2541 = vmatmul.mubr.bf16.gmra.mxu1 %v3854_v40 }
  0x54   : > { %v699_v45 = vld [vmem:[#allocation2 + $0x7a] sm:$0xff]  ;;  %v3341_v46 = vpack.c.bf16 %v603_v42, %v603_v42  ;;  %486 = vst [vmem:[#allocation2 + $0x98] sm:$0xff] %v456_v44  ;;  %v3374_v49 = vpack.c.bf16 %v456_v44, %v456_v44  ;;  %v1403_v51 = vld [vmem:[#allocation3 + $0x120] sm:$0xff]  ;;  %v331_v57 = vmul.f32 %v4117_v35, %v294_v54  ;;  %3598 = vmatpush3.bf16.msra.mxu0 %v3873_v50  ;;  %v3879_v59 = vld [vmem:[%s4568_s2 + $0x148] sm:$0xff]  }
  0x55   : > { %v3357_v47 = vpack.c.bf16 %v699_v45, %v699_v45  ;;  %v3874_v52 = vld [vmem:[%s4568_s2 + $0x190] sm:$0xff]   ;;  %v293_v53 = vld [vmem:[%s4103_s18 + $0xa0] sm:$0x3]  ;;  %876 = vst [vmem:[#allocation3 + $0x174] sm:$0xf] %v3373_v48  ;;  %3599 = vmatprep.subr.bf16.mxu0 %v3879_v59  ;;  %v3880_v3 = vld [vmem:[%s4568_s2 + $0x1c8] sm:$0xff]  }
  0x56   : > { %683 = vst [vmem:[#allocation3 + $0x16c] sm:$0xf] %v3341_v46  ;;  %877 = vst [vmem:[#allocation3 + $0x198] sm:$0xf] %v3374_v49  ;;  %v330_v55 = vmul.f32 %v4117_v35, %v293_v53  ;;  %v295_v56 = vld [vmem:[%s4103_s18 + $0xb0] sm:$0xff]  ;;  %3662 = vmatpush3.bf16.msra.mxu1 %v3874_v52  ;;  %v368_v63 = vadd.f32 %v4122_v36, %v331_v57  ;;  %v3882_v13 = vld [vmem:[%s4568_s2 + $0x108] sm:$0xff]  }
  0x57   : > { %779 = vst [vmem:[#allocation3 + $0x170] sm:$0xf] %v3357_v47  ;;  %589 = vst [vmem:[#allocation3 + $0x1b0] sm:$0xf] %v3373_v48  ;;  %v332_v58 = vmul.f32 %v4117_v35, %v295_v56  ;;  %v1408_v60 = vld [vmem:[#allocation3 + $0x144] sm:$0xff]  ;;  %3663 = vmatprep.subr.bf16.mxu1 %v3880_v3  ;;  %v3883_v21 = vld [vmem:[%s4568_s2 + $0x188] sm:$0xff]  }
  0x58   : > { %590 = vst [vmem:[#allocation3 + $0x1d4] sm:$0xf] %v3374_v49  ;;  %1257 = vst [vmem:[#allocation3 + $0xf4] sm:$0xf] %v3341_v46  ;;  %v3857_v61 = vld [vmem:[#allocation3 + $0x124] ss:$36 sps:$4 sm:$0xff]   ;;  %v367_v62 = vadd.f32 %v4122_v36, %v330_v55  ;;  %v3202_v4 = vcombine.low %v1403_v51, %v1408_v60  ;;  %3600 = vmatpush3.bf16.msra.mxu0 %v3882_v13 }
  0x59   : > { %970 = vst [vmem:[#allocation3 + $0x130] sm:$0xf] %v3341_v46  ;;  %1066 = vst [vmem:[#allocation3 + $0x134] sm:$0xf] %v3357_v47  ;;  %v3859_v0 = vld [vmem:[#allocation3 + $0x12c] ss:$36 sps:$4 sm:$0xff]   ;;  %v369_v2 = vadd.f32 %v4122_v36, %v332_v58  ;;  %2451 = vmatprep.mubr.bf16.mxu0 %v3857_v61 }
  0x5a   : > { %1163 = vst [vmem:[#allocation3 + $0x138] sm:$0xf] %v3373_v48  ;;  %1164 = vst [vmem:[#allocation3 + $0x15c] sm:$0xf] %v3374_v49  ;;  %v3863_v1 = vld [vmem:[#allocation3 + $0x128] ss:$36 sps:$4 sm:$0xff]   ;;  %2548 = vmatprep.mubr.bf16.mxu1 %v3859_v0  ;;  %2452 = vmatmul.mubr.bf16.gmra.mxu0 %v3202_v4 }
  0x5b   : > { %v604_v5 = vld [vmem:[#allocation2 + $0x81] sm:$0xff]  ;;  %vm397_vm4 = vcmp.gt.f32.partialorder %v367_v62, 0.0  ;;  %v427_v7 = vmul.f32 0.2, %v367_v62  ;;  %vm398_vm5 = vcmp.gt.f32.partialorder %v368_v63, 0.0  ;;  %v605_v10 = vld [vmem:[#allocation2 + $0x91] sm:$0xff]  ;;  %2549 = vmatmul.mubr.bf16.gmra.mxu1 %v3863_v1 }
  0x5c   : > { %v700_v6 = vld [vmem:[#allocation2 + $0x82] sm:$0xff]  ;;  %v3342_v8 = vpack.c.bf16 %v604_v5, %v604_v5  ;;  %vm399_vm6 = vcmp.gt.f32.partialorder %v369_v2, 0.0  ;;  %v428_v11 = vmul.f32 0.2, %v368_v63  ;;  %v701_v12 = vld [vmem:[#allocation2 + $0x92] sm:$0xff]  ;;  %v3343_v15 = vpack.c.bf16 %v605_v10, %v605_v10  ;;  %3664 = vmatpush3.bf16.msra.mxu1 %v3883_v21 }
  0x5d   : > { %v3358_v9 = vpack.c.bf16 %v700_v6, %v700_v6  ;;  %v457_v14 = vsel %vm397_vm4, %v367_v62, %v427_v7  ;;  %v429_v16 = vmul.f32 0.2, %v369_v2  ;;  %v3359_v17 = vpack.c.bf16 %v701_v12, %v701_v12  ;;  %v296_v22 = vld [vmem:[%s4103_s18 + $0xb8] sm:$0x3]  ;;  %v297_v25 = vld [vmem:[%s4103_s18 + $0xc0] sm:$0xff]  ;;  %v298_v26 = vld [vmem:[%s4103_s18 + $0xc8] sm:$0xff] }
  0x5e   : > { %684 = vst [vmem:[#allocation3 + $0x190] sm:$0xf] %v3342_v8  ;;  %487 = vst [vmem:[#allocation2 + $0xa0] sm:$0x3] %v457_v14  ;;  %v458_v18 = vsel %vm398_vm5, %v368_v63, %v428_v11  ;;  %v333_v24 = vmul.f32 %v4117_v35, %v296_v22  ;;  %v1413_v27 = vld [vmem:[#allocation3 + $0x168] sm:$0xff]  ;;  %v334_v28 = vmul.f32 %v4117_v35, %v297_v25  ;;  %v3888_v30 = vld [vmem:[%s4568_s2 + $0x140] sm:$0xff]  }
  0x5f   : > { %780 = vst [vmem:[#allocation3 + $0x194] sm:$0xf] %v3358_v9  ;;  %1258 = vst [vmem:[#allocation3 + $0x118] sm:$0xf] %v3342_v8  ;;  %v459_v19 = vsel %vm399_vm6, %v369_v2, %v429_v16  ;;  %v3375_v20 = vpack.c.bf16 %v458_v18, %v458_v18  ;;  %v335_v29 = vmul.f32 %v4117_v35, %v298_v26  ;;  %v3889_v32 = vld [vmem:[%s4568_s2 + $0x1c0] sm:$0xff]   ;;  %3601 = vmatprep.subr.bf16.mxu0 %v3888_v30  ;;  %v3899_v59 = vld [vmem:[%s4568_s2 + $0x238] sm:$0xff]  }
  0x60   : > { %971 = vst [vmem:[#allocation3 + $0x154] sm:$0xf] %v3342_v8  ;;  %1067 = vst [vmem:[#allocation3 + $0x158] sm:$0xf] %v3358_v9  ;;  %v3376_v23 = vpack.c.bf16 %v459_v19, %v459_v19  ;;  %v370_v31 = vadd.f32 %v4122_v36, %v333_v24  ;;  %v4307_v33 = vld [vmem:[%s4571_s5] ss:$0 sm:$0xff]  ;;  %3665 = vmatprep.subr.bf16.mxu1 %v3889_v32 }
  0x61   : > { %685 = vst [vmem:[#allocation3 + $0x1b4] sm:$0xf] %v3343_v15  ;;  %488 = vst [vmem:[#allocation2 + $0xa8] sm:$0xff] %v458_v18  ;;  %v371_v35 = vadd.f32 %v4307_v33, %v334_v28  ;;  %v372_v34 = vadd.f32 %v4307_v33, %v335_v29  ;;  %v3891_v36 = vld [vmem:[%s4568_s2 + $0x100] sm:$0xff]   ;;  %v3898_v8 = vld [vmem:[#allocation3 + $0x1c] ss:$36 sps:$4 sm:$0xff]  }
  0x62   : > { %781 = vst [vmem:[#allocation3 + $0x1b8] sm:$0xf] %v3359_v17  ;;  %1259 = vst [vmem:[#allocation3 + $0x13c] sm:$0xf] %v3343_v15  ;;  %vm400_vm7 = vcmp.gt.f32.partialorder %v370_v31, 0.0  ;;  %v3892_v38 = vld [vmem:[%s4568_s2 + $0x180] sm:$0xff]   ;;  %3602 = vmatpush3.bf16.msra.mxu0 %v3891_v36 }
  0x63   : > { %972 = vst [vmem:[#allocation3 + $0x178] sm:$0xf] %v3343_v15  ;;  %1068 = vst [vmem:[#allocation3 + $0x17c] sm:$0xf] %v3359_v17  ;;  %v430_v37 = vmul.f32 0.2, %v370_v31  ;;  %3666 = vmatpush3.bf16.msra.mxu1 %v3892_v38  ;;  %3731 = vmatprep.subr.bf16.mxu0 %v3899_v59 }
  0x64   : > { %1355 = vst [vmem:[#allocation3 + $0x140] sm:$0xf] %v3359_v17  ;;  %489 = vst [vmem:[#allocation2 + $0xb0] sm:$0xff] %v459_v19  ;;  %v3868_v41 = vld [vmem:[#allocation3 + $0x174] ss:$36 sps:$4 sm:$0xff]   ;;  %vm401_vm8 = vcmp.gt.f32.partialorder %v371_v35, 0.0  ;;  %3763 = vmatprep.subr.bf16.mxu1 %v3899_v59 }
  0x65   : > { %878 = vst [vmem:[#allocation3 + $0x1bc] sm:$0xf] %v3375_v20  ;;  %591 = vst [vmem:[#allocation3 + $0x1f8] sm:$0xf] %v3375_v20  ;;  %v1418_v39 = vld [vmem:[#allocation3 + $0x18c] sm:$0xff]  ;;  %v460_v45 = vsel %vm400_vm7, %v370_v31, %v430_v37  ;;  %vm402_vm9 = vcmp.gt.f32.partialorder %v372_v34, 0.0  ;;  %2556 = vmatprep.mubr.bf16.mxu1 %v3868_v41 }
  0x66   : > { %1165 = vst [vmem:[#allocation3 + $0x180] sm:$0xf] %v3375_v20  ;;  %879 = vst [vmem:[#allocation3 + $0x1e0] sm:$0xf] %v3376_v23  ;;  %v3866_v40 = vld [vmem:[#allocation3 + $0x16c] ss:$36 sps:$4 sm:$0xff]   ;;  %v3211_v42 = vcombine.low %v1413_v27, %v1418_v39 }
  0x67   : > { %592 = vst [vmem:[#allocation3 + $0x21c] sm:$0xf] %v3376_v23  ;;  %1166 = vst [vmem:[#allocation3 + $0x1a4] sm:$0xf] %v3376_v23  ;;  %v3872_v43 = vld [vmem:[#allocation3 + $0x170] ss:$36 sps:$4 sm:$0xff]   ;;  %2459 = vmatprep.mubr.bf16.mxu0 %v3866_v40 }
  0x68   : > { %v606_v44 = vld [vmem:[#allocation2 + $0x99] sm:$0xff]  ;;  %490 = vst [vmem:[#allocation2 + $0xb8] sm:$0x3] %v460_v45  ;;  %v431_v49 = vmul.f32 0.2, %v371_v35  ;;  %2460 = vmatmul.mubr.bf16.gmra.mxu0 %v3211_v42  ;;  %2557 = vmatmul.mubr.bf16.gmra.mxu1 %v3872_v43  ;;  %v4322_v16 = vld [vmem:[#allocation3 + $0x58] sm:$0xff] }
  0x69   : > { %v3344_v46 = vpack.c.bf16 %v606_v44, %v606_v44  ;;  %v702_v47 = vld [vmem:[#allocation2 + $0x9a] sm:$0xff]  ;;  %v432_v52 = vmul.f32 0.2, %v372_v34  ;;  %v3895_v7 = vld [vmem:[#allocation3 + $0x14] ss:$36 sps:$4 sm:$0xff]   ;;  %v4324_v17 = vld [vmem:[#allocation3 + $0x7c] sm:$0xff] }
  0x6a   : > { %v3360_v50 = vpack.c.bf16 %v702_v47, %v702_v47  ;;  %v461_v54 = vsel %vm401_vm8, %v371_v35, %v431_v49  ;;  %v1423_v60 = vld [vmem:[#allocation3 + $0x1b0] sm:$0xff]  ;;  %v3896_v15 = vld [vmem:[#allocation3 + $0x18] ss:$36 sps:$4 sm:$0xff]   ;;  %v3902_v19 = vld [vmem:[#allocation3 + $0x64] ss:$36 sps:$4 sm:$0xff]  }
  0x6b   : > { %v607_v48 = vld [vmem:[#allocation2 + $0xa9] sm:$0xff]  ;;  %686 = vst [vmem:[#allocation3 + $0x1d8] sm:$0xf] %v3344_v46  ;;  %1260 = vst [vmem:[#allocation3 + $0x160] sm:$0xf] %v3344_v46  ;;  %v462_v56 = vsel %vm402_vm9, %v372_v34, %v432_v52  ;;  %v3377_v57 = vpack.c.bf16 %v461_v54, %v461_v54  ;;  %v300_v28 = vld [vmem:[%s4103_s18 + $0xd8] sm:$0xff]  ;;  %v3179_v34 = vcombine.low %v4322_v16, %v4324_v17 }
  0x6c   : > { %v3345_v51 = vpack.c.bf16 %v607_v48, %v607_v48  ;;  %v703_v53 = vld [vmem:[#allocation2 + $0xaa] sm:$0xff]  ;;  %973 = vst [vmem:[#allocation3 + $0x19c] sm:$0xf] %v3344_v46  ;;  %782 = vst [vmem:[#allocation3 + $0x1dc] sm:$0xf] %v3360_v50  ;;  %v3378_v58 = vpack.c.bf16 %v462_v56, %v462_v56  ;;  %v301_v31 = vld [vmem:[%s4103_s18 + $0xe0] sm:$0xff] }
  0x6d   : > { %v3361_v55 = vpack.c.bf16 %v703_v53, %v703_v53  ;;  %491 = vst [vmem:[#allocation2 + $0xc0] sm:$0xff] %v461_v54  ;;  %1069 = vst [vmem:[#allocation3 + $0x1a0] sm:$0xf] %v3360_v50  ;;  %v3877_v3 = vld [vmem:[#allocation3 + $0x1bc] ss:$36 sps:$4 sm:$0xff]   ;;  %v1268_v44 = vld [vmem:[#allocation2 + $0x3a] sm:$0xff] }
  0x6e   : > { %687 = vst [vmem:[#allocation3 + $0x1fc] sm:$0xf] %v3345_v51  ;;  %1261 = vst [vmem:[#allocation3 + $0x184] sm:$0xf] %v3345_v51  ;;  %2564 = vmatprep.mubr.bf16.mxu1 %v3877_v3  ;;  %v3893_v14 = vld [vmem:[#allocation3 + $0x10] ss:$36 sps:$4 sm:$0xff]   ;;  %v3444_v49 = vpack.c.bf16 %v1268_v44, %v1268_v44 }
  0x6f   : > { %974 = vst [vmem:[#allocation3 + $0x1c0] sm:$0xf] %v3345_v51  ;;  %1356 = vst [vmem:[#allocation3 + $0x164] sm:$0xf] %v3360_v50  ;;  %v608_v61 = vld [vmem:[#allocation2 + $0xb1] sm:$0xff]  ;;  %v4336_v25 = vld [vmem:[%s4568_s2 + $0x228] sm:$0xff]  }
  0x70   : > { %492 = vst [vmem:[#allocation2 + $0xc8] sm:$0xff] %v462_v56  ;;  %783 = vst [vmem:[#allocation3 + $0x200] sm:$0xf] %v3361_v55  ;;  %v704_v62 = vld [vmem:[#allocation2 + $0xb2] sm:$0xff]  ;;  %v3346_v63 = vpack.c.bf16 %v608_v61, %v608_v61  ;;  %v299_v21 = vld [vmem:[%s4103_s18 + $0xd0] sm:$0x3] }
  0x71   : > { %1070 = vst [vmem:[#allocation3 + $0x1c4] sm:$0xf] %v3361_v55  ;;  %1357 = vst [vmem:[#allocation3 + $0x188] sm:$0xf] %v3361_v55  ;;  %v3362_v0 = vpack.c.bf16 %v704_v62, %v704_v62  ;;  %v3900_v18 = vld [vmem:[#allocation3 + $0x5c] ss:$36 sps:$4 sm:$0xff]  }
  0x72   : > { %880 = vst [vmem:[#allocation3 + $0x204] sm:$0xf] %v3377_v57  ;;  %1167 = vst [vmem:[#allocation3 + $0x1c8] sm:$0xf] %v3377_v57  ;;  %v1428_v1 = vld [vmem:[#allocation3 + $0x1d4] sm:$0xff]  ;;  %v3904_v20 = vld [vmem:[%s4568_s2 + $0x230] sm:$0xff]  }
  0x73   : > { %881 = vst [vmem:[#allocation3 + $0x228] sm:$0xf] %v3378_v58  ;;  %1168 = vst [vmem:[#allocation3 + $0x1ec] sm:$0xf] %v3378_v58  ;;  %v3875_v2 = vld [vmem:[#allocation3 + $0x1b4] ss:$36 sps:$4 sm:$0xff]   ;;  %v3220_v4 = vcombine.low %v1423_v60, %v1428_v1 }
  0x74   : > { %v3881_v5 = vld [vmem:[#allocation3 + $0x1b8] ss:$36 sps:$4 sm:$0xff]   ;;  %688 = vst [vmem:[#allocation3 + $0x220] sm:$0xf] %v3346_v63  ;;  %784 = vst [vmem:[#allocation3 + $0x224] sm:$0xf] %v3362_v0  ;;  %2467 = vmatprep.mubr.bf16.mxu0 %v3875_v2 }
  0x75   : > { %1262 = vst [vmem:[#allocation3 + $0x1a8] sm:$0xf] %v3346_v63  ;;  %975 = vst [vmem:[#allocation3 + $0x1e4] sm:$0xf] %v3346_v63  ;;  %2468 = vmatmul.mubr.bf16.gmra.mxu0 %v3220_v4  ;;  %2565 = vmatmul.mubr.bf16.gmra.mxu1 %v3881_v5  ;;  %v1433_v6 = vld [vmem:[#allocation3 + $0x1f8] sm:$0xff]  ;;  %v1267_v40 = vld [vmem:[#allocation2 + $0x32] sm:$0xff] }
  0x76   : > { %1071 = vst [vmem:[#allocation3 + $0x1e8] sm:$0xf] %v3362_v0  ;;  %1358 = vst [vmem:[#allocation3 + $0x1ac] sm:$0xf] %v3362_v0  ;;  %v3951_v22 = vld [vmem:[%s4570_s4] ss:$0 sm:$0xff]  ;;  %v3443_v45 = vpack.c.bf16 %v1267_v40, %v1267_v40 }
  0x77   : > { %v336_v23 = vmul.f32 %v3951_v22, %v299_v21  ;;  %v1183_v24 = vld [vmem:[#allocation2 + $0xc1] sm:$0xff]  ;;  %v337_v35 = vmul.f32 %v3951_v22, %v300_v28  ;;  %v3905_v36 = vld [vmem:[#allocation3 + $0x60] ss:$36 sps:$4 sm:$0xff]   ;;  %v338_v38 = vmul.f32 %v3951_v22, %v301_v31  ;;  %1348 = vst [vmem:[#allocation3 + $0x44] sm:$0xf] %v3444_v49 }
  0x78   : > { %v3439_v26 = vpack.c.bf16 %v1183_v24, %v1183_v24  ;;  %v992_v27 = vld [vmem:[#allocation2 + $0xc2] sm:$0xff]  ;;  %v3906_v37 = vld [vmem:[#allocation3 + $0xa4] ss:$36 sps:$4 sm:$0xff]   ;;  %v1269_v50 = vld [vmem:[#allocation2 + $0x4a] sm:$0xff]  ;;  %1347 = vst [vmem:[#allocation3 + $0x20] sm:$0xf] %v3443_v45 }
  0x79   : > { %v373_v29 = vadd.f32 %v4307_v33, %v336_v23  ;;  %v3409_v30 = vpack.c.bf16 %v992_v27, %v992_v27  ;;  %v302_v32 = vld [vmem:[%s4103_s18 + $0xe8] sm:$0x3]  ;;  %v3908_v41 = vld [vmem:[#allocation3 + $0xac] ss:$36 sps:$4 sm:$0xff]   ;;  %v374_v43 = vadd.f32 %v4307_v33, %v337_v35  ;;  %v375_v47 = vadd.f32 %v4307_v33, %v338_v38  ;;  %v1270_v53 = vld [vmem:[#allocation2 + $0x52] sm:$0xff] }
  0x7a   : > { %v3886_v11 = vld [vmem:[#allocation3 + $0x204] ss:$36 sps:$4 sm:$0xff]   ;;  %1263 = vst [vmem:[#allocation3 + $0x1cc] sm:$0xf] %v3439_v26  ;;  %976 = vst [vmem:[#allocation3 + $0x208] sm:$0xf] %v3439_v26  ;;  %v339_v39 = vmul.f32 %v3951_v22, %v302_v32  ;;  %v3445_v54 = vpack.c.bf16 %v1269_v50, %v1269_v50 }
  0x7b   : > { %v1438_v9 = vld [vmem:[#allocation3 + $0x21c] sm:$0xff]  ;;  %2572 = vmatprep.mubr.bf16.mxu1 %v3886_v11  ;;  %vm403_vm10 = vcmp.gt.f32.partialorder %v373_v29, 0.0  ;;  %v433_v42 = vmul.f32 0.2, %v373_v29  ;;  %1072 = vst [vmem:[#allocation3 + $0x20c] sm:$0xf] %v3409_v30 }
  0x7c   : > { %v3884_v10 = vld [vmem:[#allocation3 + $0x1fc] ss:$36 sps:$4 sm:$0xff]   ;;  %v3229_v12 = vcombine.low %v1433_v6, %v1438_v9  ;;  %1359 = vst [vmem:[#allocation3 + $0x1d0] sm:$0xf] %v3409_v30  ;;  %v3916_v46 = vld [vmem:[%s4568_s2 + $0x220] sm:$0xff]   ;;  %v376_v48 = vadd.f32 %v4307_v33, %v339_v39  ;;  %vm404_vm11 = vcmp.gt.f32.partialorder %v374_v43, 0.0 }
  0x7d   : > { %v3890_v13 = vld [vmem:[#allocation3 + $0x200] ss:$36 sps:$4 sm:$0xff]   ;;  %2475 = vmatprep.mubr.bf16.mxu0 %v3884_v10  ;;  %v463_v51 = vsel %vm403_vm10, %v373_v29, %v433_v42  ;;  %v434_v52 = vmul.f32 0.2, %v374_v43  ;;  %vm405_vm12 = vcmp.gt.f32.partialorder %v375_v47, 0.0  ;;  %v1271_v60 = vld [vmem:[#allocation2 + $0x62] sm:$0xff] }
  0x7e   : > { %2476 = vmatmul.mubr.bf16.gmra.mxu0 %v3229_v12  ;;  %2573 = vmatmul.mubr.bf16.gmra.mxu1 %v3890_v13  ;;  %v1385_v55 = vld [vmem:[#allocation3 + $0xa0] sm:$0xff]  ;;  %493 = vst [vmem:[#allocation2 + $0xd0] sm:$0x3] %v463_v51  ;;  %vm406_vm13 = vcmp.gt.f32.partialorder %v376_v48, 0.0  ;;  %v435_v56 = vmul.f32 0.2, %v375_v47  ;;  %v3447_v4 = vpack.c.bf16 %v1271_v60, %v1271_v60 }
  0x7f   : > { %2613 = vmatprep.mubr.bf16.mxu0 %v3895_v7  ;;  %2710 = vmatprep.mubr.bf16.mxu1 %v3898_v8  ;;  %v436_v57 = vmul.f32 0.2, %v376_v48  ;;  %v1390_v33 = vld [vmem:[#allocation3 + $0xc4] sm:$0xff]  ;;  %v464_v58 = vsel %vm404_vm11, %v374_v43, %v434_v52  ;;  %1349 = vst [vmem:[#allocation3 + $0x68] sm:$0xf] %v3445_v54  ;;  %v1272_v0 = vld [vmem:[#allocation2 + $0x6a] sm:$0xff] }
  0x80   : > { %v465_v61 = vsel %vm405_vm12, %v375_v47, %v435_v56  ;;  %494 = vst [vmem:[#allocation2 + $0xd8] sm:$0xff] %v464_v58  ;;  %v3425_v63 = vpack.c.bf16 %v464_v58, %v464_v58  ;;  %v1273_v1 = vld [vmem:[#allocation2 + $0x7a] sm:$0xff]  ;;  %v1274_v2 = vld [vmem:[#allocation2 + $0x82] sm:$0xff]  ;;  %v3448_v5 = vpack.c.bf16 %v1272_v0, %v1272_v0  ;;  %v3188_v9 = vcombine.low %v1385_v55, %v1390_v33  ;;  %v3920_v32 = vld [vmem:[#allocation3 + $0x13c] ss:$36 sps:$4 sm:$0xff]  }
  0x81   : > { %v466_v62 = vsel %vm406_vm13, %v376_v48, %v436_v57  ;;  %495 = vst [vmem:[#allocation2 + $0xe0] sm:$0xff] %v465_v61  ;;  %v3426_v3 = vpack.c.bf16 %v465_v61, %v465_v61  ;;  %v3922_v6 = vld [vmem:[%s4568_s2 + $0x218] sm:$0xff]   ;;  %v3449_v7 = vpack.c.bf16 %v1273_v1, %v1273_v1  ;;  %v3450_v8 = vpack.c.bf16 %v1274_v2, %v1274_v2  ;;  %v3914_v12 = vld [vmem:[#allocation3 + $0xf4] ss:$36 sps:$4 sm:$0xff]   ;;  %v3924_v39 = vld [vmem:[#allocation3 + $0x17c] ss:$36 sps:$4 sm:$0xff]  }
  0x82   : > { %496 = vst [vmem:[#allocation2 + $0xe8] sm:$0x3] %v466_v62  ;;  %1169 = vst [vmem:[#allocation3 + $0x210] sm:$0xf] %v3425_v63  ;;  %v3911_v10 = vld [vmem:[#allocation3 + $0xa8] ss:$36 sps:$4 sm:$0xff]  }
  0x83   : > { %1170 = vst [vmem:[#allocation3 + $0x234] sm:$0xf] %v3426_v3  ;;  %1351 = vst [vmem:[#allocation3 + $0xb0] sm:$0xf] %v3447_v4  ;;  %v3912_v11 = vld [vmem:[#allocation3 + $0xec] ss:$36 sps:$4 sm:$0xff]  }
  0x84   : > { %1352 = vst [vmem:[#allocation3 + $0xd4] sm:$0xf] %v3448_v5  ;;  %1353 = vst [vmem:[#allocation3 + $0xf8] sm:$0xf] %v3449_v7  ;;  %v3934_v26 = vld [vmem:[%s4568_s2 + $0x208] sm:$0xff]   ;;  %v3940_v35 = vld [vmem:[%s4568_s2 + $0x200] sm:$0xff]  }
  0x85   : > { %1354 = vst [vmem:[#allocation3 + $0x11c] sm:$0xf] %v3450_v8  ;;  %v1184_v13 = vld [vmem:[#allocation2 + $0xc9] sm:$0xff]  ;;  %v3917_v30 = vld [vmem:[#allocation3 + $0xf0] ss:$36 sps:$4 sm:$0xff]   ;;  %v1430_v48 = vld [vmem:[#allocation3 + $0x1e4] sm:$0xff] }
  0x86   : > { %2614 = vmatmul.mubr.bf16.vlgmr.msra.gmra.mxu0 %v3893_v14  ;;  %2711 = vmatmul.mubr.bf16.vlgmr.msra.gmra.mxu1 %v3896_v15  ;;  %v993_v14 = vld [vmem:[#allocation2 + $0xca] sm:$0xff]  ;;  %v3440_v16 = vpack.c.bf16 %v1184_v13, %v1184_v13  ;;  %v3926_v40 = vld [vmem:[#allocation3 + $0x184] ss:$36 sps:$4 sm:$0xff]  }
  0x87   : > { %3732 = vmatpush3.bf16.msra.mxu0 %v3899_v59  ;;  %3771 = vmatpush3.bf16.msra.mxu1 %v3899_v59  ;;  %v3446_v59 = vpack.c.bf16 %v1270_v53, %v1270_v53  ;;  %v3928_v15 = vld [vmem:[%s4568_s2 + $0x210] sm:$0xff]   ;;  %v3410_v17 = vpack.c.bf16 %v993_v14, %v993_v14  ;;  %v3918_v31 = vld [vmem:[#allocation3 + $0x134] ss:$36 sps:$4 sm:$0xff]   ;;  %v3935_v50 = vld [vmem:[#allocation3 + $0x1c8] ss:$36 sps:$4 sm:$0xff]  }
  0x88   : > { %2621 = vmatprep.mubr.bf16.mxu0 %v3900_v18  ;;  %2718 = vmatprep.mubr.bf16.mxu1 %v3902_v19  ;;  %v1395_v18 = vld [vmem:[#allocation3 + $0xe8] sm:$0xff]  ;;  %1264 = vst [vmem:[#allocation3 + $0x1f0] sm:$0xf] %v3440_v16  ;;  %977 = vst [vmem:[#allocation3 + $0x22c] sm:$0xf] %v3440_v16  ;;  %v1420_v42 = vld [vmem:[#allocation3 + $0x19c] sm:$0xff] }
  0x89   : > { %3733 = vmatprep.subr.bf16.mxu0 %v3904_v20  ;;  %3764 = vmatprep.subr.bf16.mxu1 %v3904_v20  ;;  %1350 = vst [vmem:[#allocation3 + $0x8c] sm:$0xf] %v3446_v59  ;;  %v1400_v19 = vld [vmem:[#allocation3 + $0x10c] sm:$0xff]  ;;  %1073 = vst [vmem:[#allocation3 + $0x230] sm:$0xf] %v3410_v17  ;;  %v1425_v47 = vld [vmem:[#allocation3 + $0x1c0] sm:$0xff] }
  0x8a   : > { %v1186_v21 = vld [vmem:[#allocation2 + $0xe1] sm:$0xff]  ;;  %1360 = vst [vmem:[#allocation3 + $0x1f4] sm:$0xf] %v3410_v17  ;;  %v3197_v29 = vcombine.low %v1395_v18, %v1400_v19  ;;  %v3929_v44 = vld [vmem:[#allocation3 + $0x180] ss:$36 sps:$4 sm:$0xff]   ;;  %v3224_v49 = vcombine.low %v1425_v47, %v1430_v48  ;;  %v1435_v53 = vld [vmem:[#allocation3 + $0x208] sm:$0xff] }
  0x8b   : > { %3734 = vmatpush3.bf16.msra.mxu0 %v3904_v20  ;;  %3772 = vmatpush3.bf16.msra.mxu1 %v3904_v20  ;;  %v1185_v20 = vld [vmem:[#allocation2 + $0xd9] sm:$0xff]  ;;  %v3442_v23 = vpack.c.bf16 %v1186_v21, %v1186_v21  ;;  %v3923_v38 = vld [vmem:[#allocation3 + $0x138] ss:$36 sps:$4 sm:$0xff]   ;;  %v3942_v57 = vld [vmem:[#allocation3 + $0x20] ss:$36 sps:$4 sm:$0xff]  }
  0x8c   : > { %3735 = vmatprep.subr.bf16.mxu0 %v4336_v25  ;;  %3765 = vmatprep.subr.bf16.mxu1 %v4336_v25  ;;  %v3441_v22 = vpack.c.bf16 %v1185_v20, %v1185_v20  ;;  %v1281_v24 = vld [vmem:[#allocation2 + $0xda] sm:$0xff]  ;;  %v3943_v33 = vld [vmem:[#allocation3 + $0x140] ss:$36 sps:$4 sm:$0xff]   ;;  %v3948_v62 = vld [vmem:[#allocation3 + $0xf8] ss:$36 sps:$4 sm:$0xff]  }
  0x8d   : > { %v3457_v27 = vpack.c.bf16 %v1281_v24, %v1281_v24  ;;  %1266 = vst [vmem:[#allocation3 + $0x238] sm:$0xf] %v3442_v23  ;;  %v3930_v45 = vld [vmem:[#allocation3 + $0x1c4] ss:$36 sps:$4 sm:$0xff]   ;;  %v3941_v56 = vld [vmem:[#allocation3 + $0x210] ss:$36 sps:$4 sm:$0xff]  }
  0x8e   : > { %2622 = vmatmul.mubr.bf16.gmra.mxu0 %v3179_v34  ;;  %2719 = vmatmul.mubr.bf16.gmra.mxu1 %v3905_v36  ;;  %1265 = vst [vmem:[#allocation3 + $0x214] sm:$0xf] %v3441_v22  ;;  %v1405_v34 = vld [vmem:[#allocation3 + $0x130] sm:$0xff]  ;;  %v3945_v59 = vld [vmem:[#allocation3 + $0x188] ss:$36 sps:$4 sm:$0xff]  }
  0x8f   : > { %2629 = vmatprep.mubr.bf16.mxu0 %v3906_v37  ;;  %2726 = vmatprep.mubr.bf16.mxu1 %v3908_v41  ;;  %1361 = vst [vmem:[#allocation3 + $0x218] sm:$0xf] %v3457_v27  ;;  %v1410_v36 = vld [vmem:[#allocation3 + $0x154] sm:$0xff] }
  0x90   : > { %3736 = vmatpush3.bf16.msra.mxu0 %v4336_v25  ;;  %3773 = vmatpush3.bf16.msra.mxu1 %v4336_v25  ;;  %v1282_v25 = vld [vmem:[#allocation2 + $0xe2] sm:$0xff]  ;;  %v3206_v37 = vcombine.low %v1405_v34, %v1410_v36  ;;  %v3944_v58 = vld [vmem:[#allocation3 + $0x68] ss:$36 sps:$4 sm:$0xff]  }
  0x91   : > { %3737 = vmatprep.subr.bf16.mxu0 %v3916_v46  ;;  %3766 = vmatprep.subr.bf16.mxu1 %v3916_v46  ;;  %v3458_v28 = vpack.c.bf16 %v1282_v25, %v1282_v25  ;;  %v1415_v41 = vld [vmem:[#allocation3 + $0x178] sm:$0xff]  ;;  %v3936_v51 = vld [vmem:[#allocation3 + $0x20c] ss:$36 sps:$4 sm:$0xff]  }
  0x92   : > { %v3215_v43 = vcombine.low %v1415_v41, %v1420_v42  ;;  %v1440_v54 = vld [vmem:[#allocation3 + $0x22c] sm:$0xff] }
  0x93   : > { %1362 = vst [vmem:[#allocation3 + $0x23c] sm:$0xf] %v3458_v28  ;;  %v3233_v55 = vcombine.low %v1435_v53, %v1440_v54  ;;  %v3946_v60 = vld [vmem:[#allocation3 + $0xb0] ss:$36 sps:$4 sm:$0xff]  }
  0x94   : > { %3738 = vmatpush3.bf16.msra.mxu0 %v3916_v46  ;;  %3774 = vmatpush3.bf16.msra.mxu1 %v3916_v46  ;;  %v3932_v46 = vld [vmem:[#allocation3 + $0x1cc] ss:$36 sps:$4 sm:$0xff]  }
  0x95   : > { %3739 = vmatprep.subr.bf16.mxu0 %v3922_v6  ;;  %3767 = vmatprep.subr.bf16.mxu1 %v3922_v6  ;;  %v3938_v52 = vld [vmem:[#allocation3 + $0x214] ss:$36 sps:$4 sm:$0xff]  }
  0x96   : > { %2630 = vmatmul.mubr.bf16.gmra.mxu0 %v3188_v9  ;;  %2727 = vmatmul.mubr.bf16.gmra.mxu1 %v3911_v10  ;;  %v3947_v61 = vld [vmem:[#allocation3 + $0x1d0] ss:$36 sps:$4 sm:$0xff]  }
  0x97   : > { %2637 = vmatprep.mubr.bf16.mxu0 %v3912_v11  ;;  %2734 = vmatprep.mubr.bf16.mxu1 %v3914_v12 }
  0x98   : > { %3740 = vmatpush3.bf16.msra.mxu0 %v3922_v6  ;;  %3775 = vmatpush3.bf16.msra.mxu1 %v3922_v6 }
  0x99   : > { %3741 = vmatprep.subr.bf16.mxu0 %v3928_v15  ;;  %3768 = vmatprep.subr.bf16.mxu1 %v3928_v15 }
  0x9a   : > { %v3949_v63 = vld [vmem:[#allocation3 + $0x218] ss:$36 sps:$4 sm:$0xff]  }
  0x9c   : > { %3742 = vmatpush3.bf16.msra.mxu0 %v3928_v15  ;;  %3776 = vmatpush3.bf16.msra.mxu1 %v3928_v15 }
  0x9d   : > { %3743 = vmatprep.subr.bf16.mxu0 %v3934_v26  ;;  %3769 = vmatprep.subr.bf16.mxu1 %v3934_v26 }
  0x9e   : > { %2638 = vmatmul.mubr.bf16.gmra.mxu0 %v3197_v29  ;;  %2735 = vmatmul.mubr.bf16.gmra.mxu1 %v3917_v30 }
  0x9f   : > { %2645 = vmatprep.mubr.bf16.mxu0 %v3918_v31  ;;  %2742 = vmatprep.mubr.bf16.mxu1 %v3920_v32 }
  0xa0   : > { %3744 = vmatpush3.bf16.msra.mxu0 %v3934_v26  ;;  %3777 = vmatpush3.bf16.msra.mxu1 %v3934_v26 }
  0xa1   : > { %3745 = vmatprep.subr.bf16.mxu0 %v3940_v35  ;;  %3770 = vmatprep.subr.bf16.mxu1 %v3940_v35 }
  0xa4   : > { %3746 = vmatpush3.bf16.msra.mxu0 %v3940_v35  ;;  %3778 = vmatpush3.bf16.msra.mxu1 %v3940_v35 }
  0xa6   : > { %2646 = vmatmul.mubr.bf16.gmra.mxu0 %v3206_v37  ;;  %2743 = vmatmul.mubr.bf16.gmra.mxu1 %v3923_v38 }
  0xa7   : > { %2653 = vmatprep.mubr.bf16.mxu0 %v3924_v39  ;;  %2750 = vmatprep.mubr.bf16.mxu1 %v3926_v40 }
  0xae   : > { %2654 = vmatmul.mubr.bf16.gmra.mxu0 %v3215_v43  ;;  %2751 = vmatmul.mubr.bf16.gmra.mxu1 %v3929_v44 }
  0xaf   : > { %2661 = vmatprep.mubr.bf16.mxu0 %v3930_v45  ;;  %2758 = vmatprep.mubr.bf16.mxu1 %v3932_v46 }
  0xb6   : > { %2662 = vmatmul.mubr.bf16.gmra.mxu0 %v3224_v49  ;;  %2759 = vmatmul.mubr.bf16.gmra.mxu1 %v3935_v50 }
  0xb7   : > { %2669 = vmatprep.mubr.bf16.mxu0 %v3936_v51  ;;  %2766 = vmatprep.mubr.bf16.mxu1 %v3938_v52 }
  0xbe   : > { %2670 = vmatmul.mubr.bf16.gmra.mxu0 %v3233_v55  ;;  %2767 = vmatmul.mubr.bf16.gmra.mxu1 %v3941_v56 }
  0xbf   : > { %3747 = vmatprep.mubr.bf16.mxu0 %v3942_v57  ;;  %3755 = vmatprep.mubr.bf16.mxu1 %v3943_v33 }
  0xc6   : > { %3748 = vmatmul.mubr.bf16.vlgmr.msra.gmra.mxu0 %v3944_v58  ;;  %3756 = vmatmul.mubr.bf16.vlgmr.msra.gmra.mxu1 %v3945_v59 }
  0xc7   : > { %3751 = vmatprep.mubr.bf16.mxu0 %v3946_v60  ;;  %3759 = vmatprep.mubr.bf16.mxu1 %v3947_v61 }
  0xce   : > { %3752 = vmatmul.mubr.bf16.gmra.mxu0 %v3948_v62  ;;  %3760 = vmatmul.mubr.bf16.gmra.mxu1 %v3949_v63 }
  0xf5   : > { %v3475_v0 = vpop.f32.mrf.mxu0 }
  0xf7   : > { %v3539_v1 = vpop.f32.mrf.mxu1  ;;  %v3476_v2 = vpop.f32.mrf.mxu0 }
  0xf8   : > { %v3477_v3 = vadd.f32 %v3476_v2, %v3475_v0 }
  0xf9   : > { %v3540_v4 = vpop.f32.mrf.mxu1  ;;  %v3478_v6 = vpop.f32.mrf.mxu0 }
  0xfa   : > { %v3541_v5 = vadd.f32 %v3540_v4, %v3539_v1 }
  0xfb   : > { %v3542_v7 = vpop.f32.mrf.mxu1  ;;  %v3479_v9 = vpop.f32.mrf.mxu0 }
  0xfc   : > { %v4366_v8 = vadd.f32 %v3541_v5, %v3477_v3  ;;  %v3480_v10 = vadd.f32 %v3479_v9, %v3478_v6 }
  0xfd   : > { %v3543_v11 = vpop.f32.mrf.mxu1 }
  0xfe   : > { %v3544_v12 = vadd.f32 %v3543_v11, %v3542_v7 }
  0xff   : > { %v3481_v13 = vpop.f32.mrf.mxu0  ;;  %v3545_v14 = vpop.f32.mrf.mxu1 }
 0x100   : > { %v4368_v15 = vadd.f32 %v3544_v12, %v3480_v10 }
 0x101   : > { %v3482_v16 = vpop.f32.mrf.mxu0  ;;  %v3546_v18 = vpop.f32.mrf.mxu1 }
 0x102   : > { %v3483_v17 = vadd.f32 %v3482_v16, %v3481_v13  ;;  %v3547_v19 = vadd.f32 %v3546_v18, %v3545_v14 }
 0x103   : > { %v3484_v20 = vpop.f32.mrf.mxu0  ;;  %v3548_v21 = vpop.f32.mrf.mxu1 }
 0x104   : > { %v4370_v22 = vadd.f32 %v3547_v19, %v3483_v17 }
 0x105   : > { %v3485_v23 = vpop.f32.mrf.mxu0  ;;  %v3549_v25 = vpop.f32.mrf.mxu1 }
 0x106   : > { %v3486_v24 = vadd.f32 %v3485_v23, %v3484_v20  ;;  %v3550_v26 = vadd.f32 %v3549_v25, %v3548_v21 }
 0x108   : > { %v3487_v27 = vpop.f32.mrf.mxu0  ;;  %v4372_v29 = vadd.f32 %v3550_v26, %v3486_v24 }
 0x109   : > { %v3551_v28 = vpop.f32.mrf.mxu1 }
 0x10a   : > { %v3488_v30 = vpop.f32.mrf.mxu0 }
 0x10b   : > { %v3489_v31 = vadd.f32 %v3488_v30, %v3487_v27  ;;  %v3552_v32 = vpop.f32.mrf.mxu1 }
 0x10c   : > { %v3553_v35 = vadd.f32 %v3552_v32, %v3551_v28  ;;  %v3490_v34 = vpop.f32.mrf.mxu0 }
 0x10d   : > { %v3554_v36 = vpop.f32.mrf.mxu1 }
 0x10e   : > { %v4374_v37 = vadd.f32 %v3553_v35, %v3489_v31  ;;  %v3491_v38 = vpop.f32.mrf.mxu0 }
 0x10f   : > { %v3492_v39 = vadd.f32 %v3491_v38, %v3490_v34  ;;  %v3555_v40 = vpop.f32.mrf.mxu1 }
 0x110   : > { %v3556_v41 = vadd.f32 %v3555_v40, %v3554_v36 }
 0x112   : > { %v3493_v42 = vpop.f32.mrf.mxu0  ;;  %v4376_v44 = vadd.f32 %v3556_v41, %v3492_v39 }
 0x113   : > { %v3557_v43 = vpop.f32.mrf.mxu1 }
 0x114   : > { %4573 = vst [vmem:[#allocation4_spill] sm:$0xff] %v4376_v44  ;;  %v3494_v45 = vpop.f32.mrf.mxu0 }
 0x115   : > { %v3495_v46 = vadd.f32 %v3494_v45, %v3493_v42  ;;  %v3558_v47 = vpop.f32.mrf.mxu1 }
 0x116   : > { %v3559_v48 = vadd.f32 %v3558_v47, %v3557_v43  ;;  %v3496_v49 = vpop.f32.mrf.mxu0 }
 0x117   : > { %v3560_v50 = vpop.f32.mrf.mxu1 }
 0x118   : > { %v4378_v51 = vadd.f32 %v3559_v48, %v3495_v46  ;;  %v3497_v52 = vpop.f32.mrf.mxu0 }
 0x119   : > { %v3498_v53 = vadd.f32 %v3497_v52, %v3496_v49  ;;  %v3561_v54 = vpop.f32.mrf.mxu1 }
 0x11a   : > { %v3562_v55 = vadd.f32 %v3561_v54, %v3560_v50  ;;  %v3499_v56 = vpop.f32.mrf.mxu0 }
 0x11b   : > { %v3563_v57 = vpop.f32.mrf.mxu1 }
 0x11c   : > { %v4380_v33 = vadd.f32 %v3562_v55, %v3498_v53  ;;  %v3500_v58 = vpop.f32.mrf.mxu0 }
 0x11d   : > { %v3501_v59 = vadd.f32 %v3500_v58, %v3499_v56  ;;  %v3564_v60 = vpop.f32.mrf.mxu1 }
 0x11e   : > { %v3565_v61 = vadd.f32 %v3564_v60, %v3563_v57  ;;  %v3502_v62 = vpop.f32.mrf.mxu0 }
 0x11f   : > { %v3566_v63 = vpop.f32.mrf.mxu1 }
 0x120   : > { %v4382_v0 = vadd.f32 %v3565_v61, %v3501_v59  ;;  %v3503_v1 = vpop.f32.mrf.mxu0 }
 0x121   : > { %v3504_v2 = vadd.f32 %v3503_v1, %v3502_v62  ;;  %v3567_v3 = vpop.f32.mrf.mxu1 }
 0x122   : > { %v3568_v4 = vadd.f32 %v3567_v3, %v3566_v63 }
 0x124   : > { %v4384_v6 = vadd.f32 %v3568_v4, %v3504_v2 }
 0x128   : > { %v3505_v5 = vpop.f32.mrf.mxu0  ;;  %v3569_v7 = vpop.f32.mrf.mxu1 }
 0x12a   : > { %v3506_v9 = vpop.f32.mrf.mxu0  ;;  %v3570_v11 = vpop.f32.mrf.mxu1 }
 0x12b   : > { %v3507_v10 = vadd.f32 %v3506_v9, %v3505_v5  ;;  %v3571_v12 = vadd.f32 %v3570_v11, %v3569_v7 }
 0x12c   : > { %v3508_v13 = vpop.f32.mrf.mxu0  ;;  %v3572_v14 = vpop.f32.mrf.mxu1 }
 0x12d   : > { %v4386_v16 = vadd.f32 %v3571_v12, %v3507_v10 }
 0x12e   : > { %v3509_v17 = vpop.f32.mrf.mxu0  ;;  %v3573_v19 = vpop.f32.mrf.mxu1 }
 0x12f   : > { %v3510_v18 = vadd.f32 %v3509_v17, %v3508_v13  ;;  %v3574_v20 = vadd.f32 %v3573_v19, %v3572_v14 }
 0x131   : > { %v4388_v21 = vadd.f32 %v3574_v20, %v3510_v18 }
 0x133   : > { %4574 = vst [vmem:[#allocation5_spill] sm:$0xff] %v4388_v21 }
 0x135   : > { %v3511_v23 = vpop.f32.mrf.mxu0  ;;  %v3575_v24 = vpop.f32.mrf.mxu1 }
 0x137   : > { %v3512_v25 = vpop.f32.mrf.mxu0  ;;  %v3576_v27 = vpop.f32.mrf.mxu1 }
 0x138   : > { %v3513_v26 = vadd.f32 %v3512_v25, %v3511_v23  ;;  %v3577_v28 = vadd.f32 %v3576_v27, %v3575_v24 }
 0x139   : > { %v3514_v30 = vpop.f32.mrf.mxu0  ;;  %v3578_v31 = vpop.f32.mrf.mxu1 }
 0x13a   : > { %v4390_v32 = vadd.f32 %v3577_v28, %v3513_v26 }
 0x13b   : > { %v3515_v35 = vpop.f32.mrf.mxu0  ;;  %v3579_v36 = vpop.f32.mrf.mxu1 }
 0x13c   : > { %4575 = vst [vmem:[#allocation6_spill] sm:$0xff] %v4390_v32  ;;  %v3516_v34 = vadd.f32 %v3515_v35, %v3514_v30  ;;  %v3580_v38 = vadd.f32 %v3579_v36, %v3578_v31 }
 0x13e   : > { %v3517_v39 = vpop.f32.mrf.mxu0  ;;  %v3581_v40 = vpop.f32.mrf.mxu1  ;;  %v4392_v41 = vadd.f32 %v3580_v38, %v3516_v34 }
 0x140   : > { %4576 = vst [vmem:[#allocation7_spill] sm:$0xff] %v4392_v41  ;;  %v3518_v42 = vpop.f32.mrf.mxu0  ;;  %v3582_v45 = vpop.f32.mrf.mxu1 }
 0x141   : > { %v3519_v43 = vadd.f32 %v3518_v42, %v3517_v39  ;;  %v3583_v46 = vadd.f32 %v3582_v45, %v3581_v40 }
 0x142   : > { %v3520_v47 = vpop.f32.mrf.mxu0  ;;  %v3584_v48 = vpop.f32.mrf.mxu1 }
 0x143   : > { %v4394_v49 = vadd.f32 %v3583_v46, %v3519_v43 }
 0x144   : > { %v3521_v50 = vpop.f32.mrf.mxu0  ;;  %v3585_v53 = vpop.f32.mrf.mxu1 }
 0x145   : > { %4577 = vst [vmem:[#allocation8_spill] sm:$0xff] %v4394_v49  ;;  %v3522_v52 = vadd.f32 %v3521_v50, %v3520_v47  ;;  %v3586_v54 = vadd.f32 %v3585_v53, %v3584_v48 }
 0x146   : > { %v3603_v55 = vpop.f32.mrf.mxu0  ;;  %v3667_v56 = vpop.f32.mrf.mxu1 }
 0x147   : > { %v4396_v57 = vadd.f32 %v3586_v54, %v3522_v52 }
 0x148   : > { %v3604_v58 = vpop.f32.mrf.mxu0  ;;  %v3668_v59 = vpop.f32.mrf.mxu1 }
 0x149   : > { %4578 = vst [vmem:[#allocation9_spill] sm:$0xff] %v4396_v57  ;;  %v3605_v32 = vadd.f32 %v3604_v58, %v3603_v55 }
 0x14a   : > { %v3606_v60 = vpop.f32.mrf.mxu0  ;;  %v3670_v61 = vpop.f32.mrf.mxu1 }
 0x14c   : > { %v3607_v62 = vpop.f32.mrf.mxu0  ;;  %v3671_v63 = vpop.f32.mrf.mxu1 }
 0x14d   : > { %v3608_v44 = vadd.f32 %v3607_v62, %v3606_v60  ;;  %v3672_v58 = vadd.f32 %v3671_v63, %v3670_v61 }
 0x14e   : > { %v3609_v1 = vpop.f32.mrf.mxu0  ;;  %v3673_v2 = vpop.f32.mrf.mxu1 }
 0x14f   : > { %v2619_v21 = vadd.f32 %v3608_v44, %v4368_v15 }
 0x150   : > { %v3610_v3 = vpop.f32.mrf.mxu0  ;;  %v3674_v4 = vpop.f32.mrf.mxu1 }
 0x151   : > { %v4444_v63 = vadd.f32 %v3672_v58, %v2619_v21  ;;  %v2882_v58 = vld [vmem:[%s4465_s7 + $0x50] sm:$0xff] }
 0x152   : > { %v3612_v5 = vpop.f32.mrf.mxu0  ;;  %v3676_v7 = vpop.f32.mrf.mxu1 }
 0x154   : > { %v3613_v9 = vpop.f32.mrf.mxu0  ;;  %v3677_v10 = vpop.f32.mrf.mxu1 }
 0x156   : > { %v3615_v11 = vpop.f32.mrf.mxu0  ;;  %v3679_v12 = vpop.f32.mrf.mxu1 }
 0x158   : > { %v3616_v13 = vpop.f32.mrf.mxu0  ;;  %v3680_v14 = vpop.f32.mrf.mxu1 }
 0x159   : > { %v3681_v15 = vadd.f32 %v3680_v14, %v3679_v12 }
 0x15a   : > { %v4398_v17 = vpop.f32.mrf.mxu0  ;;  %v4400_v18 = vpop.f32.mrf.mxu1 }
 0x15c   : > { %v4402_v19 = vpop.f32.mrf.mxu0  ;;  %v4404_v20 = vpop.f32.mrf.mxu1 }
 0x15e   : > { %v3621_v23 = vpop.f32.mrf.mxu0  ;;  %v4406_v24 = vpop.f32.mrf.mxu1 }
 0x15f   : > { %4579 = vst [vmem:[#allocation10_spill] sm:$0xff] %v4406_v24  ;;  %v3669_v24 = vadd.f32 %v3668_v59, %v3667_v56 }
 0x160   : > { %v3622_v25 = vpop.f32.mrf.mxu0  ;;  %v4408_v26 = vpop.f32.mrf.mxu1 }
 0x161   : > { %4580 = vst [vmem:[#allocation11_spill] sm:$0xff] %v4408_v26 }
 0x162   : > { %v3624_v27 = vpop.f32.mrf.mxu0  ;;  %v4410_v28 = vpop.f32.mrf.mxu1 }
 0x163   : > { %4581 = vst [vmem:[#allocation12_spill] sm:$0xff] %v4410_v28 }
 0x164   : > { %v3625_v30 = vpop.f32.mrf.mxu0  ;;  %v4412_v31 = vpop.f32.mrf.mxu1 }
 0x165   : > { %4582 = vst [vmem:[#allocation13_spill] sm:$0xff] %v4412_v31 }
 0x166   : > { %v3627_v35 = vpop.f32.mrf.mxu0  ;;  %v4414_v34 = vpop.f32.mrf.mxu1 }
 0x167   : > { %4583 = vst [vmem:[#allocation14_spill] sm:$0xff] %v4414_v34  ;;  %v3614_v34 = vadd.f32 %v3613_v9, %v3612_v5  ;;  %v3675_v5 = vadd.f32 %v3674_v4, %v3673_v2  ;;  %v3623_v9 = vadd.f32 %v3622_v25, %v3621_v23 }
 0x168   : > { %v3628_v36 = vpop.f32.mrf.mxu0  ;;  %v4416_v38 = vpop.f32.mrf.mxu1 }
 0x169   : > { %4584 = vst [vmem:[#allocation15_spill] sm:$0xff] %v4416_v38  ;;  %v3611_v38 = vadd.f32 %v3610_v3, %v3609_v1  ;;  %v2627_v60 = vadd.f32 %v3614_v34, %v4372_v29 }
 0x16a   : > { %v3630_v39 = vpop.f32.mrf.mxu0  ;;  %v4418_v40 = vpop.f32.mrf.mxu1 }
 0x16b   : > { %4585 = vst [vmem:[#allocation16_spill] sm:$0xff] %v4418_v40 }
 0x16c   : > { %v3631_v42 = vpop.f32.mrf.mxu0  ;;  %v4420_v43 = vpop.f32.mrf.mxu1 }
 0x16d   : > { %4586 = vst [vmem:[#allocation17_spill] sm:$0xff] %v4420_v43  ;;  %v3617_v43 = vadd.f32 %v3616_v13, %v3615_v11  ;;  %v3626_v11 = vadd.f32 %v3625_v30, %v3624_v27  ;;  %v3629_v13 = vadd.f32 %v3628_v36, %v3627_v35  ;;  %v3632_v44 = vadd.f32 %v3631_v42, %v3630_v39  ;;  %v4593_v27 = vld [vmem:[#allocation13_spill] sm:$0xff]  ;;  %v4596_v42 = vld [vmem:[#allocation4_spill] sm:$0xff] }
 0x16e   : > { %v3633_v45 = vpop.f32.mrf.mxu0  ;;  %v3697_v46 = vpop.f32.mrf.mxu1  ;;  %v4594_v35 = vld [vmem:[#allocation14_spill] sm:$0xff] }
 0x16f   : > { %v2632_v62 = vadd.f32 %v3617_v43, %v4374_v37  ;;  %v3620_v37 = vadd.f32 %v4402_v19, %v4398_v17  ;;  %v2648_v21 = vadd.f32 %v3629_v13, %v4382_v0  ;;  %v4589_v17 = vld [vmem:[#allocation5_spill] sm:$0xff]  ;;  %v2872_v13 = vld [vmem:[%s4465_s7] sm:$0xff] }
 0x170   : > { %v3634_v47 = vpop.f32.mrf.mxu0  ;;  %v3698_v48 = vpop.f32.mrf.mxu1  ;;  %v4595_v34 = vld [vmem:[#allocation15_spill] sm:$0xff] }
 0x171   : > { %v3635_v1 = vadd.f32 %v3634_v47, %v3633_v45  ;;  %v4449_v25 = vadd.f32 %v3681_v15, %v2632_v62  ;;  %v3699_v14 = vadd.f32 %v3698_v48, %v3697_v46  ;;  %v3693_v36 = vadd.f32 %v4595_v34, %v4594_v35  ;;  %v2874_v48 = vld [vmem:[%s4465_s7 + $0x10] sm:$0xff] }
 0x172   : > { %v3636_v50 = vpop.f32.mrf.mxu0  ;;  %v4422_v52 = vpop.f32.mrf.mxu1  ;;  %v4597_v43 = vld [vmem:[#allocation16_spill] sm:$0xff] }
 0x173   : > { %4587 = vst [vmem:[#allocation18_spill] sm:$0xff] %v4422_v52  ;;  %v2616_v52 = vadd.f32 %v3605_v32, %v4366_v8  ;;  %v3678_v32 = vadd.f32 %v3677_v10, %v3676_v7  ;;  %v2656_v2 = vadd.f32 %v3635_v1, %v4386_v16  ;;  %v4453_v7 = vadd.f32 %v4404_v20, %v4400_v18  ;;  %v4591_v20 = vld [vmem:[#allocation11_spill] sm:$0xff] }
 0x174   : > { %v3637_v53 = vpop.f32.mrf.mxu0  ;;  %v3701_v54 = vpop.f32.mrf.mxu1  ;;  %v2640_v10 = vadd.f32 %v3623_v9, %v4378_v51  ;;  %v2651_v16 = vadd.f32 %v3632_v44, %v4384_v6  ;;  %v4478_v6 = vadd.f32 %v3620_v37, %v4596_v42  ;;  %v4598_v45 = vld [vmem:[#allocation17_spill] sm:$0xff]  ;;  %v4491_v9 = vld [vmem:[%s4569_s3] ss:$0 sm:$0xff] }
 0x175   : > { %v2713_v29 = vadd.f32 %v3669_v24, %v2616_v52  ;;  %v2724_v23 = vadd.f32 %v3678_v32, %v2627_v60  ;;  %v4592_v24 = vld [vmem:[#allocation12_spill] sm:$0xff]  ;;  %v2745_v60 = vadd.f32 %v3693_v36, %v2648_v21 }
 0x176   : > { %v3639_v41 = vpop.f32.mrf.mxu0  ;;  %v4424_v57 = vpop.f32.mrf.mxu1  ;;  %v3690_v30 = vadd.f32 %v4593_v27, %v4592_v24  ;;  %v2873_v27 = vld [vmem:[%s4465_s7 + $0x8] sm:$0xff] }
 0x177   : > { %4588 = vst [vmem:[#allocation19_spill] sm:$0xff] %v4424_v57  ;;  %v2624_v57 = vadd.f32 %v3611_v38, %v4370_v22  ;;  %v3638_v22 = vadd.f32 %v3637_v53, %v3636_v50  ;;  %v2753_v50 = vadd.f32 %v3699_v14, %v2656_v2 }
 0x178   : > { %v3640_v49 = vpop.f32.mrf.mxu0  ;;  %v4426_v40 = vpop.f32.mrf.mxu1 }
 0x179   : > { %v2721_v61 = vadd.f32 %v3675_v5, %v2624_v57  ;;  %v2643_v57 = vadd.f32 %v3626_v11, %v4380_v33  ;;  %v2659_v18 = vadd.f32 %v3638_v22, %v4589_v17  ;;  %v3641_v51 = vadd.f32 %v3640_v49, %v3639_v41  ;;  %v4590_v33 = vld [vmem:[#allocation10_spill] sm:$0xff] }
 0x17a   : > { %v4428_v31 = vpop.f32.mrf.mxu0  ;;  %v4430_v28 = vpop.f32.mrf.mxu1  ;;  %v3687_v0 = vadd.f32 %v4591_v20, %v4590_v33  ;;  %v3696_v41 = vadd.f32 %v4598_v45, %v4597_v43  ;;  %v4599_v49 = vld [vmem:[#allocation18_spill] sm:$0xff] }
 0x17b   : > { %v3702_v46 = vadd.f32 %v3701_v54, %v4599_v49  ;;  %v4485_v1 = vadd.f32 %v3690_v30, %v2643_v57  ;;  %v2880_v57 = vld [vmem:[%s4465_s7 + $0x40] sm:$0xff] }
 0x17c   : > { %v4432_v26 = vpop.f32.mrf.mxu0  ;;  %v4437_v55 = vpop.f32.mrf.mxu1  ;;  %v2737_v62 = vadd.f32 %v3687_v0, %v2640_v10  ;;  %v2748_v15 = vadd.f32 %v3696_v41, %v2651_v16 }
 0x17d   : > { %v2756_v32 = vadd.f32 %v3702_v46, %v2659_v18  ;;  %v3644_v21 = vadd.f32 %v4432_v26, %v4428_v31  ;;  %v2875_v18 = vld [vmem:[%s4465_s7 + $0x18] sm:$0xff]  ;;  %v2878_v46 = vld [vmem:[%s4465_s7 + $0x30] sm:$0xff] }
 0x17e   : > { %v3645_v3 = vpop.f32.mrf.mxu0  ;;  %v4441_v8 = vpop.f32.mrf.mxu1  ;;  %v4601_v44 = vld [vmem:[#allocation19_spill] sm:$0xff] }
 0x17f   : > { %v3705_v22 = vadd.f32 %v4426_v40, %v4601_v44 }
 0x180   : > { %v3646_v56 = vpop.f32.mrf.mxu0  ;;  %v3710_v59 = vpop.f32.mrf.mxu1 }
 0x181   : > { %v3647_v38 = vadd.f32 %v3646_v56, %v3645_v3  ;;  %v4600_v3 = vld [vmem:[#allocation6_spill] sm:$0xff]  ;;  %v4602_v56 = vld [vmem:[#allocation8_spill] sm:$0xff] }
 0x182   : > { %v3648_v4 = vpop.f32.mrf.mxu0  ;;  %v4458_v12 = vpop.f32.mrf.mxu1  ;;  %v2664_v5 = vadd.f32 %v3641_v51, %v4600_v3 }
 0x184   : > { %v3649_v19 = vpop.f32.mrf.mxu0  ;;  %v4475_v39 = vpop.f32.mrf.mxu1  ;;  %v2761_v30 = vadd.f32 %v3705_v22, %v2664_v5 }
 0x185   : > { %v3650_v14 = vadd.f32 %v3649_v19, %v3648_v4  ;;  %v2883_v4 = vld [vmem:[%s4465_s7 + $0x58] sm:$0xff] }
 0x186   : > { %v3749_v47 = vpop.f32.mrf.mxu0  ;;  %v3757_v53 = vpop.f32.mrf.mxu1 }
 0x187   : > { %v2818_v52 = vadd.f32 %v3749_v47, %v2721_v61  ;;  %v2850_v54 = vadd.f32 %v3757_v53, %v2753_v50  ;;  %v2672_v61 = vadd.f32 %v3647_v38, %v4602_v56  ;;  %v4603_v38 = vld [vmem:[#allocation9_spill] sm:$0xff]  ;;  %v4604_v47 = vld [vmem:[#allocation7_spill] sm:$0xff] }
 0x188   : > { %v2809_v11 = vpop.f32.mrf.mxu0  ;;  %v2841_v10 = vpop.f32.mrf.mxu1  ;;  %v2675_v42 = vadd.f32 %v3650_v14, %v4603_v38  ;;  %v2732_v14 = vadd.f32 %v4453_v7, %v4478_v6  ;;  %v2885_v7 = vld [vmem:[%s4465_s7 + $0x68] sm:$0xff] }
 0x189   : > { %v2890_v37 = vadd.f32 %v2874_v48, %v2818_v52  ;;  %v2810_v2 = vadd.f32 %v2809_v11, %v2713_v29  ;;  %v2898_v16 = vadd.f32 %v2882_v58, %v2850_v54  ;;  %v2842_v40 = vadd.f32 %v2841_v10, %v2745_v60  ;;  %v2886_v58 = vld [vmem:[%s4465_s7 + $0x70] sm:$0xff] }
 0x18a   : > { %v3750_v17 = vpop.f32.mrf.mxu0  ;;  %v3711_v29 = vadd.f32 %v3710_v59, %v4441_v8  ;;  %v3758_v31 = vpop.f32.mrf.mxu1  ;;  %v2667_v48 = vadd.f32 %v3644_v21, %v4604_v47  ;;  %v3714_v60 = vadd.f32 %v4475_v39, %v4458_v12  ;;  %v2884_v39 = vld [vmem:[%s4465_s7 + $0x60] sm:$0xff]  ;;  %v2887_v21 = vld [vmem:[%s4465_s7 + $0x78] sm:$0xff] }
 0x18b   : > { %v2913_v51 = vadd.f32 %v4491_v9, %v2890_v37  ;;  %v2888_v33 = vadd.f32 %v2872_v13, %v2810_v2  ;;  %v2821_v26 = vadd.f32 %v3750_v17, %v2724_v23  ;;  %v2921_v19 = vadd.f32 %v4491_v9, %v2898_v16  ;;  %v2881_v23 = vld [vmem:[%s4465_s7 + $0x48] sm:$0xff]  ;;  %v2876_v13 = vld [vmem:[%s4465_s7 + $0x20] sm:$0xff]  ;;  %v2879_v2 = vld [vmem:[%s4465_s7 + $0x38] sm:$0xff] }
 0x18c   : > { %v2896_v20 = vadd.f32 %v2880_v57, %v2842_v40  ;;  %v2853_v0 = vadd.f32 %v3758_v31, %v2756_v32  ;;  %v2812_v24 = vpop.f32.mrf.mxu0  ;;  %v2844_v34 = vpop.f32.mrf.mxu1  ;;  %v2769_v36 = vadd.f32 %v3711_v29, %v2672_v61  ;;  %v3708_v32 = vadd.f32 %v4437_v55, %v4430_v28  ;;  %v2877_v29 = vld [vmem:[%s4465_s7 + $0x28] sm:$0xff] }
 0x18d   : > { %2929 = vst [vmem:[%s4505_s12 + $0x10] sm:$0xff] %v2913_v51  ;;  %v2911_v8 = vadd.f32 %v4491_v9, %v2888_v33  ;;  %v2891_v59 = vadd.f32 %v2875_v18, %v2821_v26  ;;  %v2813_v35 = vadd.f32 %v2812_v24, %v4444_v63  ;;  %2937 = vst [vmem:[%s4505_s12 + $0x50] sm:$0xff] %v2921_v19 }
 0x18e   : > { %v2919_v43 = vadd.f32 %v4491_v9, %v2896_v20  ;;  %v2899_v45 = vadd.f32 %v2883_v4, %v2853_v0  ;;  %v2845_v41 = vadd.f32 %v2844_v34, %v2748_v15  ;;  %v3753_v49 = vpop.f32.mrf.mxu0  ;;  %v3761_v53 = vpop.f32.mrf.mxu1  ;;  %v2772_v28 = vadd.f32 %v3714_v60, %v2675_v42 }
 0x18f   : > { %2927 = vst [vmem:[%s4505_s12] sm:$0xff] %v2911_v8  ;;  %v2914_v63 = vadd.f32 %v4491_v9, %v2891_v59  ;;  %v2889_v50 = vadd.f32 %v2873_v27, %v2813_v35  ;;  %v2834_v52 = vadd.f32 %v3753_v49, %v2737_v62  ;;  %v2866_v54 = vadd.f32 %v3761_v53, %v2769_v36 }
 0x190   : > { %2935 = vst [vmem:[%s4505_s12 + $0x40] sm:$0xff] %v2919_v43  ;;  %v2922_v3 = vadd.f32 %v4491_v9, %v2899_v45  ;;  %v2897_v5 = vadd.f32 %v2881_v23, %v2845_v41  ;;  %v2825_v11 = vpop.f32.mrf.mxu0  ;;  %v2857_v12 = vpop.f32.mrf.mxu1  ;;  %v2764_v51 = vadd.f32 %v3708_v32, %v2667_v48 }
 0x191   : > { %2930 = vst [vmem:[%s4505_s12 + $0x18] sm:$0xff] %v2914_v63  ;;  %v2912_v62 = vadd.f32 %v4491_v9, %v2889_v50  ;;  %v2894_v15 = vadd.f32 %v2878_v46, %v2834_v52  ;;  %v2826_v44 = vadd.f32 %v2825_v11, %v4449_v25  ;;  %v2902_v56 = vadd.f32 %v2886_v58, %v2866_v54 }
 0x192   : > { %2938 = vst [vmem:[%s4505_s12 + $0x58] sm:$0xff] %v2922_v3  ;;  %v2920_v22 = vadd.f32 %v4491_v9, %v2897_v5  ;;  %v2858_v61 = vadd.f32 %v2857_v12, %v2761_v30  ;;  %v3754_v37 = vpop.f32.mrf.mxu0  ;;  %v3762_v25 = vpop.f32.mrf.mxu1 }
 0x193   : > { %2928 = vst [vmem:[%s4505_s12 + $0x8] sm:$0xff] %v2912_v62  ;;  %v2917_v55 = vadd.f32 %v4491_v9, %v2894_v15  ;;  %v2892_v10 = vadd.f32 %v2876_v13, %v2826_v44  ;;  %v2837_v57 = vadd.f32 %v3754_v37, %v4485_v1  ;;  %v2925_v16 = vadd.f32 %v4491_v9, %v2902_v56 }
 0x194   : > { %2936 = vst [vmem:[%s4505_s12 + $0x48] sm:$0xff] %v2920_v22  ;;  %v2900_v40 = vadd.f32 %v2884_v39, %v2858_v61  ;;  %v2869_v17 = vadd.f32 %v3762_v25, %v2772_v28  ;;  %v2828_v18 = vpop.f32.mrf.mxu0  ;;  %v2860_v31 = vpop.f32.mrf.mxu1 }
 0x195   : > { %2933 = vst [vmem:[%s4505_s12 + $0x30] sm:$0xff] %v2917_v55  ;;  %v2915_v1 = vadd.f32 %v4491_v9, %v2892_v10  ;;  %v2895_v33 = vadd.f32 %v2879_v2, %v2837_v57  ;;  %v2829_v26 = vadd.f32 %v2828_v18, %v2732_v14  ;;  %2941 = vst [vmem:[%s4505_s12 + $0x70] sm:$0xff] %v2925_v16 }
 0x196   : > { %v2923_v6 = vadd.f32 %v4491_v9, %v2900_v40  ;;  %v2903_v4 = vadd.f32 %v2887_v21, %v2869_v17  ;;  %v2861_v19 = vadd.f32 %v2860_v31, %v2764_v51 }
 0x197   : > { %2931 = vst [vmem:[%s4505_s12 + $0x20] sm:$0xff] %v2915_v1  ;;  %v2918_v20 = vadd.f32 %v4491_v9, %v2895_v33  ;;  %v2893_v0 = vadd.f32 %v2877_v29, %v2829_v26 }
 0x198   : > { %2939 = vst [vmem:[%s4505_s12 + $0x60] sm:$0xff] %v2923_v6  ;;  %v2926_v24 = vadd.f32 %v4491_v9, %v2903_v4  ;;  %v2901_v27 = vadd.f32 %v2885_v7, %v2861_v19 }
 0x199   : > { %2934 = vst [vmem:[%s4505_s12 + $0x38] sm:$0xff] %v2918_v20  ;;  %v2916_v30 = vadd.f32 %v4491_v9, %v2893_v0 }
 0x19a   : > { %2942 = vst [vmem:[%s4505_s12 + $0x78] sm:$0xff] %v2926_v24  ;;  %v2924_v8 = vadd.f32 %v4491_v9, %v2901_v27 }
 0x19b   : > { %2932 = vst [vmem:[%s4505_s12 + $0x28] sm:$0xff] %v2916_v30 }
 0x19c   : > { %2940 = vst [vmem:[%s4505_s12 + $0x68] sm:$0xff] %v2924_v8 }
 0x19d PF: > { %s16_s21 = sadd.s32 1, %s3958_s21  }
 0x19e   : > { %p13_p4 = scmp.ge.s32.totalorder %s16_s21, 6  }
 0x1a0   :  { %15 = sbr.rel (!%p13_p4) target bundleno = 1 (0x1), region = 79 }

</bundles_post_ra>
